<compile_context>
chip_gen: v6e
topology: v6e:2x2x1
jax: 0.10.0
libtpu: 0.0.40
codegen_flags: <defaults>
</compile_context>

<pallas_src>
import jax
import jax.numpy as jnp
import numpy as np
from jax.experimental import pallas as pl
from jax.experimental.pallas import tpu as pltpu

_VMEM_LIMIT = 48 * 1024 * 1024  # explicit scoped-VMEM limit (v5e default is 16 MiB)


# ---------------------------------------------------------------------------
# One-time weight preparation (hoisted out of the forward pass)
# ---------------------------------------------------------------------------
def _prep_conv3_w(w_torch):
    """Conv2d weight (Cout, Cin, 3, 3) -> lane-dense (Cin, 9*Cout) bf16.

    Column index = (ty*3 + tx)*Cout + co, i.e. tap-major, so the kernel slices
    contiguous [t*Cout : (t+1)*Cout] lane windows per tap.
    """
    cout, cin = w_torch.shape[0], w_torch.shape[1]
    w = jnp.transpose(w_torch, (1, 2, 3, 0)).reshape(cin, 9 * cout)
    return w.astype(jnp.bfloat16)


def _prep_deconv_w(w_torch):
    """ConvTranspose2d weight (Cin, Cout, 4, 4) -> subpixel taps
    (2, 2, 2, 2, Cin, Cout) bf16 with ky = 3-ry-2*dy, kx = 3-rx-2*dx."""
    wt = jnp.transpose(w_torch, (2, 3, 0, 1))  # (4, 4, Cin, Cout)
    ry = jnp.arange(2)[:, None, None, None]
    rx = jnp.arange(2)[None, :, None, None]
    dy = jnp.arange(2)[None, None, :, None]
    dx = jnp.arange(2)[None, None, None, :]
    w_sub = wt[3 - ry - 2 * dy, 3 - rx - 2 * dx]  # (2,2,2,2,Cin,Cout)
    return w_sub.astype(jnp.bfloat16)


def prepare_params(params):
    """Reformat PyTorch-layout f32 weights into TPU-friendly bf16 tensors (run once)."""
    return {
        'deconv5': _prep_deconv_w(params['deconv5']),
        'deconv4': _prep_deconv_w(params['deconv4']),
        'deconv3': _prep_deconv_w(params['deconv3']),
        'deconv2': _prep_deconv_w(params['deconv2']),
        'flow5': _prep_conv3_w(params['flow5']),
        'flow4': _prep_conv3_w(params['flow4']),
        'flow3': _prep_conv3_w(params['flow3']),
        'flow2': _prep_conv3_w(params['flow2']),
        'flow1': _prep_conv3_w(params['flow1']),
        'up6to5': _prep_deconv_w(params['up6to5']),
        'up5to4': _prep_deconv_w(params['up5to4']),
        'up4to3': _prep_deconv_w(params['up4to3']),
        'up3to2': _prep_deconv_w(params['up3to2']),
    }


def _prep_input(x_nhwc):
    """Cast to bf16 and zero-pad spatially by 1 (shared by all ops of a level)."""
    return jnp.pad(x_nhwc.astype(jnp.bfloat16), ((0, 0), (1, 1), (1, 1), (0, 0)))


# ---------------------------------------------------------------------------
# Kernel 1 (fused, one per decoder level):
#   up_conv = LeakyReLU(0.1)(ConvTranspose2d(Cin, Cout, k=4, s=2, p=1)(x))
#   flow    = Conv2d(Cin, 2, k=3, s=1, p=1)(x)        (kept in VMEM only)
#   up_flow = ConvTranspose2d(2, 2, k=4, s=2, p=1)(flow)
# The deconv is expressed as 4 subpixel outputs (ry, rx), each a 2x2-tap conv
# over the 1-pixel zero-padded input.  The 9 distinct shifted windows
# (sy, sx) = (ry+dy, rx+dx) are built once and shared by the deconv taps and
# the 3x3 flow-head taps (which use exactly the same windows).
# ---------------------------------------------------------------------------
_PAIRS = {0: ((0, 0),), 1: ((0, 1), (1, 0)), 2: ((1, 1),)}  # (r, d) with r + d == s


def _level_kernel(x_ref, wd_ref, wf_ref, wu_ref, od_ref, of_ref, fpad_ref):
    # x_ref:  (H+2, W+2, Cin) bf16          (zero-padded input)
    # wd_ref: (2, 2, 2, 2, Cin, tco) bf16   (deconv subpixel taps)
    # wf_ref: (Cin, 18) bf16                (flow head, tap-major lanes)
    # wu_ref: (2, 2, 2, 2, 2, 2) bf16       (2->2 flow upsampling taps)
    # od_ref: (2, 2, H, W, tco) bf16        (deconv output, subpixel-major)
    # of_ref: (2, 2, H, W, 2) bf16          (upsampled flow, subpixel-major)
    # fpad_ref: (H+2, W+2, 2) bf16 scratch  (zero-padded flow)
    _, _, H, W, tco = od_ref.shape
    cin = x_ref.shape[-1]

    accs = [[jnp.zeros((H * W, tco), jnp.float32) for _ in range(2)] for _ in range(2)]
    acc_f = jnp.zeros((H * W, 2), jnp.float32)

    for sy in range(3):
        for sx in range(3):
            # Each distinct shifted window is materialized exactly once.
            patch = x_ref[sy:sy + H, sx:sx + W, :].reshape(H * W, cin)
            t = sy * 3 + sx
            acc_f = acc_f + jnp.dot(patch, wf_ref[:, 2 * t:2 * t + 2],
                                    preferred_element_type=jnp.float32)
            for (ry, dy) in _PAIRS[sy]:
                for (rx, dx) in _PAIRS[sx]:
                    accs[ry][rx] = accs[ry][rx] + jnp.dot(
                        patch, wd_ref[ry, rx, dy, dx],
                        preferred_element_type=jnp.float32)

    # LeakyReLU(0.1) + store deconv output.
    for ry in range(2):
        for rx in range(2):
            a = accs[ry][rx]
            a = jnp.where(a >= 0, a, 0.1 * a)
            od_ref[ry, rx] = a.reshape(H, W, tco).astype(od_ref.dtype)

    # Zero-padded flow lives only in VMEM scratch; 2->2 ConvTranspose on it.
    fpad_ref[...] = jnp.zeros(fpad_ref.shape, fpad_ref.dtype)
    fpad_ref[1:H + 1, 1:W + 1, :] = acc_f.reshape(H, W, 2).astype(fpad_ref.dtype)
    for ry in range(2):
        for rx in range(2):
            up = jnp.zeros((H * W, 2), jnp.float32)
            for dy in range(2):
                for dx in range(2):
                    p = fpad_ref[ry + dy:ry + dy + H, rx + dx:rx + dx + W, :]
                    up = up + jnp.dot(p.reshape(H * W, 2), wu_ref[ry, rx, dy, dx],
                                      preferred_element_type=jnp.float32)
            of_ref[ry, rx] = up.reshape(H, W, 2).astype(of_ref.dtype)


def decoder_level(x_pad, w_deconv, w_flow, w_up):
    """One fused decoder level.

    x_pad:    (N, H+2, W+2, Cin) bf16 (already padded)
    w_deconv: (2,2,2,2,Cin,Cout) bf16,  w_flow: (Cin,18) bf16,  w_up: (2,2,2,2,2,2) bf16
    returns (up_conv (N,2H,2W,Cout) bf16, up_flow (N,2H,2W,2) bf16)
    """
    N, Hp2, Wp2, Cin = x_pad.shape
    H, W = Hp2 - 2, Wp2 - 2
    Cout = w_deconv.shape[-1]
    if Cout % 256 == 0:          # fill the 256-wide v6e/v7x MXU, 8 MiB weight tile
        tco = 256
    elif Cout % 128 == 0:
        tco = 128
    else:
        tco = Cout
    J = Cout // tco

    out_d, out_f = pl.pallas_call(
        _level_kernel,
        out_shape=(jax.ShapeDtypeStruct((N, 2, 2, H, W, Cout), jnp.bfloat16),
                   jax.ShapeDtypeStruct((N, 2, 2, H, W, 2), jnp.bfloat16)),
        grid=(N, J),
        in_specs=[
            pl.BlockSpec((None, Hp2, Wp2, Cin), lambda n, j: (n, 0, 0, 0)),
            pl.BlockSpec((2, 2, 2, 2, Cin, tco), lambda n, j: (0, 0, 0, 0, 0, j)),
            pl.BlockSpec((Cin, 18), lambda n, j: (0, 0)),
            pl.BlockSpec((2, 2, 2, 2, 2, 2), lambda n, j: (0, 0, 0, 0, 0, 0)),
        ],
        out_specs=(
            pl.BlockSpec((None, 2, 2, H, W, tco), lambda n, j: (n, 0, 0, 0, 0, j)),
            pl.BlockSpec((None, 2, 2, H, W, 2), lambda n, j: (n, 0, 0, 0, 0, 0)),
        ),
        scratch_shapes=[pltpu.VMEM((H + 2, W + 2, 2), jnp.bfloat16)],
        compiler_params=pltpu.CompilerParams(
            dimension_semantics=("parallel", "arbitrary"),
            vmem_limit_bytes=_VMEM_LIMIT),
    )(x_pad, w_deconv, w_flow, w_up)

    # (n, ry, rx, q, p, c) -> (n, 2q+ry, 2p+rx, c)   (tiny bf16 transpose in XLA)
    up_conv = jnp.transpose(out_d, (0, 3, 1, 4, 2, 5)).reshape(N, 2 * H, 2 * W, Cout)
    up_flow = jnp.transpose(out_f, (0, 3, 1, 4, 2, 5)).reshape(N, 2 * H, 2 * W, 2)
    return up_conv, up_flow


# ---------------------------------------------------------------------------
# Kernel 2: plain Conv2d(k=3, s=1, p=1) (used for the final flow_1 head)
# ---------------------------------------------------------------------------
def _conv3x3_kernel(x_ref, w_ref, o_ref):
    H, W, Cout = o_ref.shape
    cin = x_ref.shape[-1]
    acc = jnp.zeros((H * W, Cout), jnp.float32)
    for t in range(9):
        sy, sx = t // 3, t % 3
        patch = x_ref[sy:sy + H, sx:sx + W, :].reshape(H * W, cin)
        acc = acc + jnp.dot(patch, w_ref[:, t * Cout:(t + 1) * Cout],
                            preferred_element_type=jnp.float32)
    o_ref[...] = acc.reshape(H, W, Cout)


def conv3x3(x_pad, w_packed):
    """x_pad: (N, H+2, W+2, Cin) bf16;  w_packed: (Cin, 9*Cout) bf16."""
    N, Hp2, Wp2, Cin = x_pad.shape
    H, W = Hp2 - 2, Wp2 - 2
    Cout = w_packed.shape[-1] // 9
    return pl.pallas_call(
        _conv3x3_kernel,
        out_shape=jax.ShapeDtypeStruct((N, H, W, Cout), jnp.float32),
        grid=(N,),
        in_specs=[
            pl.BlockSpec((None, Hp2, Wp2, Cin), lambda n: (n, 0, 0, 0)),
            pl.BlockSpec((Cin, 9 * Cout), lambda n: (0, 0)),
        ],
        out_specs=pl.BlockSpec((None, H, W, Cout), lambda n: (n, 0, 0, 0)),
        compiler_params=pltpu.CompilerParams(
            dimension_semantics=("parallel",), vmem_limit_bytes=_VMEM_LIMIT),
    )(x_pad, w_packed)


# ---------------------------------------------------------------------------
# Kernel 3: bilinear x4 upsample (align_corners=False) as A @ X @ B^T per plane
# ---------------------------------------------------------------------------
def _bilinear_matrix_np(in_size, out_size):
    # PyTorch F.interpolate(..., mode='bilinear', align_corners=False) semantics.
    scale = in_size / out_size
    dst = np.arange(out_size, dtype=np.float64)
    src = np.maximum(scale * (dst + 0.5) - 0.5, 0.0)
    i0 = np.minimum(np.floor(src).astype(np.int64), in_size - 1)
    i1 = np.minimum(i0 + 1, in_size - 1)
    lam = src - i0
    A = np.zeros((out_size, in_size), dtype=np.float32)
    rows = np.arange(out_size)
    A[rows, i0] += 1.0 - lam
    A[rows, i1] += lam
    return A


def _bilinear_kernel(x_ref, a_ref, bt_ref, o_ref):
    t = jnp.dot(a_ref[...], x_ref[...], preferred_element_type=jnp.float32)
    o_ref[...] = jnp.dot(t, bt_ref[...], preferred_element_type=jnp.float32)


def bilinear_x4(planes, a_mat, bt_mat):
    """planes: (B, H, W) f32 -> (B, 4H, 4W) f32 (one grid step per plane)."""
    B, H, W = planes.shape
    OH, OW = 4 * H, 4 * W
    return pl.pallas_call(
        _bilinear_kernel,
        out_shape=jax.ShapeDtypeStruct((B, OH, OW), jnp.float32),
        grid=(B,),
        in_specs=[
            pl.BlockSpec((None, H, W), lambda b: (b, 0, 0)),
            pl.BlockSpec((OH, H), lambda b: (0, 0)),
            pl.BlockSpec((W, OW), lambda b: (0, 0)),
        ],
        out_specs=pl.BlockSpec((None, OH, OW), lambda b: (b, 0, 0)),
        compiler_params=pltpu.CompilerParams(
            dimension_semantics=("parallel",), vmem_limit_bytes=_VMEM_LIMIT),
    )(planes, a_mat, bt_mat)


def _bilinear_ref_np(x):
    """Direct per-pixel reference of PyTorch's align_corners=False x4 bilinear."""
    B, H, W = x.shape
    out = np.zeros((B, 4 * H, 4 * W), np.float32)
    for oy in range(4 * H):
        sy = max(0.25 * (oy + 0.5) - 0.5, 0.0)
        y0 = min(int(np.floor(sy)), H - 1)
        y1 = min(y0 + 1, H - 1)
        ly = sy - y0
        for ox in range(4 * W):
            sx = max(0.25 * (ox + 0.5) - 0.5, 0.0)
            x0 = min(int(np.floor(sx)), W - 1)
            x1 = min(x0 + 1, W - 1)
            lx = sx - x0
            out[:, oy, ox] = ((1 - ly) * (1 - lx) * x[:, y0, x0]
                              + (1 - ly) * lx * x[:, y0, x1]
                              + ly * (1 - lx) * x[:, y1, x0]
                              + ly * lx * x[:, y1, x1])
    return out


# ---------------------------------------------------------------------------
# Decoder parameters + forward (mirrors the PyTorch module's executed path)
# ---------------------------------------------------------------------------
def init_params(key):
    def w(k, shape, scale=0.05):
        return scale * jax.random.normal(k, shape, dtype=jnp.float32)
    ks = jax.random.split(key, 13)
    return {
        'deconv5': w(ks[0], (1024, 512, 4, 4)),   # ConvTranspose2d (Cin,Cout,4,4)
        'deconv4': w(ks[1], (1026, 256, 4, 4)),
        'deconv3': w(ks[2], (770, 128, 4, 4)),
        'deconv2': w(ks[3], (386, 64, 4, 4)),
        'flow5': w(ks[4], (2, 1024, 3, 3)),       # Conv2d (Cout,Cin,3,3)
        'flow4': w(ks[5], (2, 1026, 3, 3)),
        'flow3': w(ks[6], (2, 770, 3, 3)),
        'flow2': w(ks[7], (2, 386, 3, 3)),
        'flow1': w(ks[8], (2, 194, 3, 3)),
        'up6to5': w(ks[9], (2, 2, 4, 4)),
        'up5to4': w(ks[10], (2, 2, 4, 4)),
        'up4to3': w(ks[11], (2, 2, 4, 4)),
        'up3to2': w(ks[12], (2, 2, 4, 4)),
    }


def decoder_forward(prepped, x_list_nchw):
    # NOTE: inter-level activations are kept in bf16 (f32 accumulation inside
    # every kernel); PyTorch runs in f32 end-to-end.
    to_nhwc = lambda t: jnp.transpose(t, (0, 2, 3, 1)).astype(jnp.bfloat16)
    x_2a, x3_1, x4_1, x5_1, x6_1 = [to_nhwc(t) for t in x_list_nchw]

    x6p = _prep_input(x6_1)                                          # padded once per level
    up_conv5, up_flow5 = decoder_level(x6p, prepped['deconv5'],
                                       prepped['flow5'], prepped['up6to5'])
    merged_5 = jnp.concatenate([x5_1, up_conv5, up_flow5], axis=-1)   # 1026 ch

    m5p = _prep_input(merged_5)
    up_conv4, up_flow4 = decoder_level(m5p, prepped['deconv4'],
                                       prepped['flow4'], prepped['up5to4'])
    merged_4 = jnp.concatenate([x4_1, up_conv4, up_flow4], axis=-1)   # 770 ch

    m4p = _prep_input(merged_4)
    up_conv3, up_flow3 = decoder_level(m4p, prepped['deconv3'],
                                       prepped['flow3'], prepped['up4to3'])
    merged_3 = jnp.concatenate([x3_1, up_conv3, up_flow3], axis=-1)   # 386 ch

    m3p = _prep_input(merged_3)
    up_conv2, up_flow2 = decoder_level(m3p, prepped['deconv2'],
                                       prepped['flow2'], prepped['up3to2'])
    merged_2 = jnp.concatenate([x_2a, up_conv2, up_flow2], axis=-1)   # 194 ch

    m2p = _prep_input(merged_2)
    flow_1 = conv3x3(m2p, prepped['flow1'])                           # (N, H, W, 2) f32

    N, H, W, _ = flow_1.shape
    A = jnp.asarray(_bilinear_matrix_np(H, 4 * H), dtype=jnp.float32)     # trace-time consts
    Bt = jnp.asarray(_bilinear_matrix_np(W, 4 * W).T, dtype=jnp.float32)
    planes = jnp.transpose(flow_1, (0, 3, 1, 2)).reshape(N * 2, H, W)     # tiny (4 KB/plane)
    out = bilinear_x4(planes, A, Bt)                                      # (N*2, 4H, 4W)
    return out.reshape(N, 2, 4 * H, 4 * W)                                # NCHW flow field


if __name__ == "__main__":
    key = jax.random.PRNGKey(0)
    kp, k1, k2, k3, k4, k5, kc = jax.random.split(key, 7)
    params = init_params(kp)
    prepped = prepare_params(params)

    # Channel counts are fixed by the module; spatial kept small (x6_1 at 2x2).
    N = 1
    x_2a = 0.1 * jax.random.normal(k1, (N, 128, 32, 32), jnp.float32)
    x3_1 = 0.1 * jax.random.normal(k2, (N, 256, 16, 16), jnp.float32)
    x4_1 = 0.1 * jax.random.normal(k3, (N, 512, 8, 8), jnp.float32)
    x5_1 = 0.1 * jax.random.normal(k4, (N, 512, 4, 4), jnp.float32)
    x6_1 = 0.1 * jax.random.normal(k5, (N, 1024, 2, 2), jnp.float32)

    # --- self tests against lax / numpy references (bf16-rounded inputs) -----
    kt1, kt2, kt3, kt4 = jax.random.split(kc, 4)
    xt = jax.random.normal(kt1, (1, 5, 5, 6), jnp.float32)             # NHWC
    xt_b = xt.astype(jnp.bfloat16).astype(jnp.float32)
    xp = _prep_input(xt)

    wd = 0.2 * jax.random.normal(kt2, (6, 4, 4, 4), jnp.float32)       # ConvT (Cin,Cout,4,4)
    wf = 0.2 * jax.random.normal(kt3, (2, 6, 3, 3), jnp.float32)       # Conv  (Cout,Cin,3,3)
    wu = 0.2 * jax.random.normal(kt4, (2, 2, 4, 4), jnp.float32)       # ConvT 2->2
    wd_b = wd.astype(jnp.bfloat16).astype(jnp.float32)
    wf_b = wf.astype(jnp.bfloat16).astype(jnp.float32)
    wu_b = wu.astype(jnp.bfloat16).astype(jnp.float32)

    dn = ('NHWC', 'HWIO', 'NHWC')
    ref_d = jax.lax.conv_general_dilated(
        xt_b, jnp.transpose(wd_b[:, :, ::-1, ::-1], (2, 3, 0, 1)),
        (1, 1), ((2, 2), (2, 2)), lhs_dilation=(2, 2), dimension_numbers=dn)
    ref_d = jnp.where(ref_d >= 0, ref_d, 0.1 * ref_d)                  # LeakyReLU(0.1)
    ref_f = jax.lax.conv_general_dilated(
        xt_b, jnp.transpose(wf_b, (2, 3, 1, 0)), (1, 1), ((1, 1), (1, 1)),
        dimension_numbers=dn)
    ref_u = jax.lax.conv_general_dilated(
        ref_f, jnp.transpose(wu_b[:, :, ::-1, ::-1], (2, 3, 0, 1)),
        (1, 1), ((2, 2), (2, 2)), lhs_dilation=(2, 2), dimension_numbers=dn)

    got_d, got_u = decoder_level(xp, _prep_deconv_w(wd), _prep_conv3_w(wf),
                                 _prep_deconv_w(wu))
    np.testing.assert_allclose(np.asarray(got_d.astype(jnp.float32)),
                               np.asarray(ref_d), rtol=5e-2, atol=5e-2)
    np.testing.assert_allclose(np.asarray(got_u.astype(jnp.float32)),
                               np.asarray(ref_u), rtol=5e-2, atol=1e-1)

    # Plain 3x3 conv head (flow_1 path)
    got_c = conv3x3(xp, _prep_conv3_w(wf))
    np.testing.assert_allclose(np.asarray(got_c), np.asarray(ref_f),
                               rtol=5e-2, atol=5e-2)

    # Bilinear x4 (align_corners=False) vs direct PyTorch-formula reference
    xb = jax.random.normal(kt1, (2, 8, 8), jnp.float32)
    A_t = jnp.asarray(_bilinear_matrix_np(8, 32), jnp.float32)
    Bt_t = jnp.asarray(_bilinear_matrix_np(8, 32).T, jnp.float32)
    got_b = bilinear_x4(xb, A_t, Bt_t)
    np.testing.assert_allclose(np.asarray(got_b), _bilinear_ref_np(np.asarray(xb)),
                               rtol=2e-2, atol=2e-2)

    # --- full decoder forward -------------------------------------------------
    out = jax.jit(decoder_forward)(prepped, [x_2a, x3_1, x4_1, x5_1, x6_1])
    out = jax.block_until_ready(out)
    assert out.shape == (N, 2, 128, 128), out.shape
    assert bool(jnp.isfinite(out).all())
    print("KERNEL_OK")
</pallas_src>

<mosaic_0001>
module attributes {stable_mosaic.version = 11 : i64} {
  func.func @_level_kernel(%arg0: i32, %arg1: i32, %arg2: memref<1x7x7x6xbf16, #tpu.memory_space<vmem>>, %arg3: memref<2x2x2x2x6x4xbf16, #tpu.memory_space<vmem>>, %arg4: memref<6x18xbf16, #tpu.memory_space<vmem>>, %arg5: memref<2x2x2x2x2x2xbf16, #tpu.memory_space<vmem>>, %arg6: memref<1x2x2x5x5x4xbf16, #tpu.memory_space<vmem>>, %arg7: memref<1x2x2x5x5x2xbf16, #tpu.memory_space<vmem>>, %arg8: memref<7x7x2xbf16, #tpu.memory_space<vmem>>) attributes {dimension_semantics = [#tpu.dimension_semantics<parallel>, #tpu.dimension_semantics<arbitrary>], iteration_bounds = array<i64: 1, 1>, scalar_prefetch = 0 : i64, scratch_operands = 1 : i64, tpu.core_type = #tpu.core_type<tc>, window_params = [{transform_indices = @transform_0, window_bounds = array<i64: 1, 7, 7, 6>}, {transform_indices = @transform_1, window_bounds = array<i64: 2, 2, 2, 2, 6, 4>}, {pipeline_mode = #tpu.pipeline_mode<synchronous>, transform_indices = @transform_2, window_bounds = array<i64: 6, 18>}, {pipeline_mode = #tpu.pipeline_mode<synchronous>, transform_indices = @transform_3, window_bounds = array<i64: 2, 2, 2, 2, 2, 2>}, {transform_indices = @transform_4, window_bounds = array<i64: 1, 2, 2, 5, 5, 4>}, {transform_indices = @transform_5, window_bounds = array<i64: 1, 2, 2, 5, 5, 2>}]} {
    %cst = arith.constant 0.000000e+00 : f32
    %0 = vector.broadcast %cst : f32 to vector<25x4xf32>
    %cst_0 = arith.constant 0.000000e+00 : f32
    %1 = vector.broadcast %cst_0 : f32 to vector<25x4xf32>
    %cst_1 = arith.constant 0.000000e+00 : f32
    %2 = vector.broadcast %cst_1 : f32 to vector<25x4xf32>
    %cst_2 = arith.constant 0.000000e+00 : f32
    %3 = vector.broadcast %cst_2 : f32 to vector<25x4xf32>
    %cst_3 = arith.constant 0.000000e+00 : f32
    %4 = vector.broadcast %cst_3 : f32 to vector<25x2xf32>
    %c0 = arith.constant 0 : index
    %c0_4 = arith.constant 0 : index
    %c0_5 = arith.constant 0 : index
    %c0_6 = arith.constant 0 : index
    %5 = vector.load %arg2[%c0, %c0_4, %c0_5, %c0_6] : memref<1x7x7x6xbf16, #tpu.memory_space<vmem>>, vector<1x5x5x6xbf16>
    %6 = vector.shape_cast %5 : vector<1x5x5x6xbf16> to vector<5x5x6xbf16>
    %7 = vector.shape_cast %6 : vector<5x5x6xbf16> to vector<25x6xbf16>
    %c0_7 = arith.constant 0 : index
    %c0_8 = arith.constant 0 : index
    %8 = vector.load %arg4[%c0_7, %c0_8] : memref<6x18xbf16, #tpu.memory_space<vmem>>, vector<6x2xbf16>
    %cst_9 = arith.constant dense<0.000000e+00> : vector<25x2xf32>
    %9 = tpu.matmul %7, %8, %cst_9 {dimension_numbers = #tpu.dot_dimension_numbers<[1], [0], [0], [1], [0, 0, 1, 1], [], []>} : vector<25x6xbf16>, vector<6x2xbf16>, vector<25x2xf32> -> vector<25x2xf32>
    %10 = arith.addf %4, %9 : vector<25x2xf32>
    %c0_10 = arith.constant 0 : index
    %c0_11 = arith.constant 0 : index
    %c0_12 = arith.constant 0 : index
    %c0_13 = arith.constant 0 : index
    %c0_14 = arith.constant 0 : index
    %c0_15 = arith.constant 0 : index
    %11 = vector.load %arg3[%c0_10, %c0_11, %c0_12, %c0_13, %c0_14, %c0_15] : memref<2x2x2x2x6x4xbf16, #tpu.memory_space<vmem>>, vector<1x1x1x1x6x4xbf16>
    %12 = vector.shape_cast %11 : vector<1x1x1x1x6x4xbf16> to vector<6x4xbf16>
    %cst_16 = arith.constant dense<0.000000e+00> : vector<25x4xf32>
    %13 = tpu.matmul %7, %12, %cst_16 {dimension_numbers = #tpu.dot_dimension_numbers<[1], [0], [0], [1], [0, 0, 1, 1], [], []>} : vector<25x6xbf16>, vector<6x4xbf16>, vector<25x4xf32> -> vector<25x4xf32>
    %14 = arith.addf %0, %13 : vector<25x4xf32>
    %c0_17 = arith.constant 0 : index
    %c0_18 = arith.constant 0 : index
    %c1 = arith.constant 1 : index
    %c0_19 = arith.constant 0 : index
    %15 = vector.load %arg2[%c0_17, %c0_18, %c1, %c0_19] : memref<1x7x7x6xbf16, #tpu.memory_space<vmem>>, vector<1x5x5x6xbf16>
    %16 = vector.shape_cast %15 : vector<1x5x5x6xbf16> to vector<5x5x6xbf16>
    %17 = vector.shape_cast %16 : vector<5x5x6xbf16> to vector<25x6xbf16>
    %c0_20 = arith.constant 0 : index
    %c2 = arith.constant 2 : index
    %18 = vector.load %arg4[%c0_20, %c2] : memref<6x18xbf16, #tpu.memory_space<vmem>>, vector<6x2xbf16>
    %cst_21 = arith.constant dense<0.000000e+00> : vector<25x2xf32>
    %19 = tpu.matmul %17, %18, %cst_21 {dimension_numbers = #tpu.dot_dimension_numbers<[1], [0], [0], [1], [0, 0, 1, 1], [], []>} : vector<25x6xbf16>, vector<6x2xbf16>, vector<25x2xf32> -> vector<25x2xf32>
    %20 = arith.addf %10, %19 : vector<25x2xf32>
    %c0_22 = arith.constant 0 : index
    %c0_23 = arith.constant 0 : index
    %c0_24 = arith.constant 0 : index
    %c1_25 = arith.constant 1 : index
    %c0_26 = arith.constant 0 : index
    %c0_27 = arith.constant 0 : index
    %21 = vector.load %arg3[%c0_22, %c0_23, %c0_24, %c1_25, %c0_26, %c0_27] : memref<2x2x2x2x6x4xbf16, #tpu.memory_space<vmem>>, vector<1x1x1x1x6x4xbf16>
    %22 = vector.shape_cast %21 : vector<1x1x1x1x6x4xbf16> to vector<6x4xbf16>
    %cst_28 = arith.constant dense<0.000000e+00> : vector<25x4xf32>
    %23 = tpu.matmul %17, %22, %cst_28 {dimension_numbers = #tpu.dot_dimension_numbers<[1], [0], [0], [1], [0, 0, 1, 1], [], []>} : vector<25x6xbf16>, vector<6x4xbf16>, vector<25x4xf32> -> vector<25x4xf32>
    %24 = arith.addf %14, %23 : vector<25x4xf32>
    %c0_29 = arith.constant 0 : index
    %c1_30 = arith.constant 1 : index
    %c0_31 = arith.constant 0 : index
    %c0_32 = arith.constant 0 : index
    %c0_33 = arith.constant 0 : index
    %c0_34 = arith.constant 0 : index
    %25 = vector.load %arg3[%c0_29, %c1_30, %c0_31, %c0_32, %c0_33, %c0_34] : memref<2x2x2x2x6x4xbf16, #tpu.memory_space<vmem>>, vector<1x1x1x1x6x4xbf16>
    %26 = vector.shape_cast %25 : vector<1x1x1x1x6x4xbf16> to vector<6x4xbf16>
    %cst_35 = arith.constant dense<0.000000e+00> : vector<25x4xf32>
    %27 = tpu.matmul %17, %26, %cst_35 {dimension_numbers = #tpu.dot_dimension_numbers<[1], [0], [0], [1], [0, 0, 1, 1], [], []>} : vector<25x6xbf16>, vector<6x4xbf16>, vector<25x4xf32> -> vector<25x4xf32>
    %28 = arith.addf %1, %27 : vector<25x4xf32>
    %c0_36 = arith.constant 0 : index
    %c0_37 = arith.constant 0 : index
    %c2_38 = arith.constant 2 : index
    %c0_39 = arith.constant 0 : index
    %29 = vector.load %arg2[%c0_36, %c0_37, %c2_38, %c0_39] : memref<1x7x7x6xbf16, #tpu.memory_space<vmem>>, vector<1x5x5x6xbf16>
    %30 = vector.shape_cast %29 : vector<1x5x5x6xbf16> to vector<5x5x6xbf16>
    %31 = vector.shape_cast %30 : vector<5x5x6xbf16> to vector<25x6xbf16>
    %c0_40 = arith.constant 0 : index
    %c4 = arith.constant 4 : index
    %32 = vector.load %arg4[%c0_40, %c4] : memref<6x18xbf16, #tpu.memory_space<vmem>>, vector<6x2xbf16>
    %cst_41 = arith.constant dense<0.000000e+00> : vector<25x2xf32>
    %33 = tpu.matmul %31, %32, %cst_41 {dimension_numbers = #tpu.dot_dimension_numbers<[1], [0], [0], [1], [0, 0, 1, 1], [], []>} : vector<25x6xbf16>, vector<6x2xbf16>, vector<25x2xf32> -> vector<25x2xf32>
    %34 = arith.addf %20, %33 : vector<25x2xf32>
    %c0_42 = arith.constant 0 : index
    %c1_43 = arith.constant 1 : index
    %c0_44 = arith.constant 0 : index
    %c1_45 = arith.constant 1 : index
    %c0_46 = arith.constant 0 : index
    %c0_47 = arith.constant 0 : index
    %35 = vector.load %arg3[%c0_42, %c1_43, %c0_44, %c1_45, %c0_46, %c0_47] : memref<2x2x2x2x6x4xbf16, #tpu.memory_space<vmem>>, vector<1x1x1x1x6x4xbf16>
    %36 = vector.shape_cast %35 : vector<1x1x1x1x6x4xbf16> to vector<6x4xbf16>
    %cst_48 = arith.constant dense<0.000000e+00> : vector<25x4xf32>
    %37 = tpu.matmul %31, %36, %cst_48 {dimension_numbers = #tpu.dot_dimension_numbers<[1], [0], [0], [1], [0, 0, 1, 1], [], []>} : vector<25x6xbf16>, vector<6x4xbf16>, vector<25x4xf32> -> vector<25x4xf32>
    %38 = arith.addf %28, %37 : vector<25x4xf32>
    %c0_49 = arith.constant 0 : index
    %c1_50 = arith.constant 1 : index
    %c0_51 = arith.constant 0 : index
    %c0_52 = arith.constant 0 : index
    %39 = vector.load %arg2[%c0_49, %c1_50, %c0_51, %c0_52] : memref<1x7x7x6xbf16, #tpu.memory_space<vmem>>, vector<1x5x5x6xbf16>
    %40 = vector.shape_cast %39 : vector<1x5x5x6xbf16> to vector<5x5x6xbf16>
    %41 = vector.shape_cast %40 : vector<5x5x6xbf16> to vector<25x6xbf16>
    %c0_53 = arith.constant 0 : index
    %c6 = arith.constant 6 : index
    %42 = vector.load %arg4[%c0_53, %c6] : memref<6x18xbf16, #tpu.memory_space<vmem>>, vector<6x2xbf16>
    %cst_54 = arith.constant dense<0.000000e+00> : vector<25x2xf32>
    %43 = tpu.matmul %41, %42, %cst_54 {dimension_numbers = #tpu.dot_dimension_numbers<[1], [0], [0], [1], [0, 0, 1, 1], [], []>} : vector<25x6xbf16>, vector<6x2xbf16>, vector<25x2xf32> -> vector<25x2xf32>
    %44 = arith.addf %34, %43 : vector<25x2xf32>
    %c0_55 = arith.constant 0 : index
    %c0_56 = arith.constant 0 : index
    %c1_57 = arith.constant 1 : index
    %c0_58 = arith.constant 0 : index
    %c0_59 = arith.constant 0 : index
    %c0_60 = arith.constant 0 : index
    %45 = vector.load %arg3[%c0_55, %c0_56, %c1_57, %c0_58, %c0_59, %c0_60] : memref<2x2x2x2x6x4xbf16, #tpu.memory_space<vmem>>, vector<1x1x1x1x6x4xbf16>
    %46 = vector.shape_cast %45 : vector<1x1x1x1x6x4xbf16> to vector<6x4xbf16>
    %cst_61 = arith.constant dense<0.000000e+00> : vector<25x4xf32>
    %47 = tpu.matmul %41, %46, %cst_61 {dimension_numbers = #tpu.dot_dimension_numbers<[1], [0], [0], [1], [0, 0, 1, 1], [], []>} : vector<25x6xbf16>, vector<6x4xbf16>, vector<25x4xf32> -> vector<25x4xf32>
    %48 = arith.addf %24, %47 : vector<25x4xf32>
    %c1_62 = arith.constant 1 : index
    %c0_63 = arith.constant 0 : index
    %c0_64 = arith.constant 0 : index
    %c0_65 = arith.constant 0 : index
    %c0_66 = arith.constant 0 : index
    %c0_67 = arith.constant 0 : index
    %49 = vector.load %arg3[%c1_62, %c0_63, %c0_64, %c0_65, %c0_66, %c0_67] : memref<2x2x2x2x6x4xbf16, #tpu.memory_space<vmem>>, vector<1x1x1x1x6x4xbf16>
    %50 = vector.shape_cast %49 : vector<1x1x1x1x6x4xbf16> to vector<6x4xbf16>
    %cst_68 = arith.constant dense<0.000000e+00> : vector<25x4xf32>
    %51 = tpu.matmul %41, %50, %cst_68 {dimension_numbers = #tpu.dot_dimension_numbers<[1], [0], [0], [1], [0, 0, 1, 1], [], []>} : vector<25x6xbf16>, vector<6x4xbf16>, vector<25x4xf32> -> vector<25x4xf32>
    %52 = arith.addf %2, %51 : vector<25x4xf32>
    %c0_69 = arith.constant 0 : index
    %c1_70 = arith.constant 1 : index
    %c1_71 = arith.constant 1 : index
    %c0_72 = arith.constant 0 : index
    %53 = vector.load %arg2[%c0_69, %c1_70, %c1_71, %c0_72] : memref<1x7x7x6xbf16, #tpu.memory_space<vmem>>, vector<1x5x5x6xbf16>
    %54 = vector.shape_cast %53 : vector<1x5x5x6xbf16> to vector<5x5x6xbf16>
    %55 = vector.shape_cast %54 : vector<5x5x6xbf16> to vector<25x6xbf16>
    %c0_73 = arith.constant 0 : index
    %c8 = arith.constant 8 : index
    %56 = vector.load %arg4[%c0_73, %c8] : memref<6x18xbf16, #tpu.memory_space<vmem>>, vector<6x2xbf16>
    %cst_74 = arith.constant dense<0.000000e+00> : vector<25x2xf32>
    %57 = tpu.matmul %55, %56, %cst_74 {dimension_numbers = #tpu.dot_dimension_numbers<[1], [0], [0], [1], [0, 0, 1, 1], [], []>} : vector<25x6xbf16>, vector<6x2xbf16>, vector<25x2xf32> -> vector<25x2xf32>
    %58 = arith.addf %44, %57 : vector<25x2xf32>
    %c0_75 = arith.constant 0 : index
    %c0_76 = arith.constant 0 : index
    %c1_77 = arith.constant 1 : index
    %c1_78 = arith.constant 1 : index
    %c0_79 = arith.constant 0 : index
    %c0_80 = arith.constant 0 : index
    %59 = vector.load %arg3[%c0_75, %c0_76, %c1_77, %c1_78, %c0_79, %c0_80] : memref<2x2x2x2x6x4xbf16, #tpu.memory_space<vmem>>, vector<1x1x1x1x6x4xbf16>
    %60 = vector.shape_cast %59 : vector<1x1x1x1x6x4xbf16> to vector<6x4xbf16>
    %cst_81 = arith.constant dense<0.000000e+00> : vector<25x4xf32>
    %61 = tpu.matmul %55, %60, %cst_81 {dimension_numbers = #tpu.dot_dimension_numbers<[1], [0], [0], [1], [0, 0, 1, 1], [], []>} : vector<25x6xbf16>, vector<6x4xbf16>, vector<25x4xf32> -> vector<25x4xf32>
    %62 = arith.addf %48, %61 : vector<25x4xf32>
    %c0_82 = arith.constant 0 : index
    %c1_83 = arith.constant 1 : index
    %c1_84 = arith.constant 1 : index
    %c0_85 = arith.constant 0 : index
    %c0_86 = arith.constant 0 : index
    %c0_87 = arith.constant 0 : index
    %63 = vector.load %arg3[%c0_82, %c1_83, %c1_84, %c0_85, %c0_86, %c0_87] : memref<2x2x2x2x6x4xbf16, #tpu.memory_space<vmem>>, vector<1x1x1x1x6x4xbf16>
    %64 = vector.shape_cast %63 : vector<1x1x1x1x6x4xbf16> to vector<6x4xbf16>
    %cst_88 = arith.constant dense<0.000000e+00> : vector<25x4xf32>
    %65 = tpu.matmul %55, %64, %cst_88 {dimension_numbers = #tpu.dot_dimension_numbers<[1], [0], [0], [1], [0, 0, 1, 1], [], []>} : vector<25x6xbf16>, vector<6x4xbf16>, vector<25x4xf32> -> vector<25x4xf32>
    %66 = arith.addf %38, %65 : vector<25x4xf32>
    %c1_89 = arith.constant 1 : index
    %c0_90 = arith.constant 0 : index
    %c0_91 = arith.constant 0 : index
    %c1_92 = arith.constant 1 : index
    %c0_93 = arith.constant 0 : index
    %c0_94 = arith.constant 0 : index
    %67 = vector.load %arg3[%c1_89, %c0_90, %c0_91, %c1_92, %c0_93, %c0_94] : memref<2x2x2x2x6x4xbf16, #tpu.memory_space<vmem>>, vector<1x1x1x1x6x4xbf16>
    %68 = vector.shape_cast %67 : vector<1x1x1x1x6x4xbf16> to vector<6x4xbf16>
    %cst_95 = arith.constant dense<0.000000e+00> : vector<25x4xf32>
    %69 = tpu.matmul %55, %68, %cst_95 {dimension_numbers = #tpu.dot_dimension_numbers<[1], [0], [0], [1], [0, 0, 1, 1], [], []>} : vector<25x6xbf16>, vector<6x4xbf16>, vector<25x4xf32> -> vector<25x4xf32>
    %70 = arith.addf %52, %69 : vector<25x4xf32>
    %c1_96 = arith.constant 1 : index
    %c1_97 = arith.constant 1 : index
    %c0_98 = arith.constant 0 : index
    %c0_99 = arith.constant 0 : index
    %c0_100 = arith.constant 0 : index
    %c0_101 = arith.constant 0 : index
    %71 = vector.load %arg3[%c1_96, %c1_97, %c0_98, %c0_99, %c0_100, %c0_101] : memref<2x2x2x2x6x4xbf16, #tpu.memory_space<vmem>>, vector<1x1x1x1x6x4xbf16>
    %72 = vector.shape_cast %71 : vector<1x1x1x1x6x4xbf16> to vector<6x4xbf16>
    %cst_102 = arith.constant dense<0.000000e+00> : vector<25x4xf32>
    %73 = tpu.matmul %55, %72, %cst_102 {dimension_numbers = #tpu.dot_dimension_numbers<[1], [0], [0], [1], [0, 0, 1, 1], [], []>} : vector<25x6xbf16>, vector<6x4xbf16>, vector<25x4xf32> -> vector<25x4xf32>
    %74 = arith.addf %3, %73 : vector<25x4xf32>
    %c0_103 = arith.constant 0 : index
    %c1_104 = arith.constant 1 : index
    %c2_105 = arith.constant 2 : index
    %c0_106 = arith.constant 0 : index
    %75 = vector.load %arg2[%c0_103, %c1_104, %c2_105, %c0_106] : memref<1x7x7x6xbf16, #tpu.memory_space<vmem>>, vector<1x5x5x6xbf16>
    %76 = vector.shape_cast %75 : vector<1x5x5x6xbf16> to vector<5x5x6xbf16>
    %77 = vector.shape_cast %76 : vector<5x5x6xbf16> to vector<25x6xbf16>
    %c0_107 = arith.constant 0 : index
    %c10 = arith.constant 10 : index
    %78 = vector.load %arg4[%c0_107, %c10] : memref<6x18xbf16, #tpu.memory_space<vmem>>, vector<6x2xbf16>
    %cst_108 = arith.constant dense<0.000000e+00> : vector<25x2xf32>
    %79 = tpu.matmul %77, %78, %cst_108 {dimension_numbers = #tpu.dot_dimension_numbers<[1], [0], [0], [1], [0, 0, 1, 1], [], []>} : vector<25x6xbf16>, vector<6x2xbf16>, vector<25x2xf32> -> vector<25x2xf32>
    %80 = arith.addf %58, %79 : vector<25x2xf32>
    %c0_109 = arith.constant 0 : index
    %c1_110 = arith.constant 1 : index
    %c1_111 = arith.constant 1 : index
    %c1_112 = arith.constant 1 : index
    %c0_113 = arith.constant 0 : index
    %c0_114 = arith.constant 0 : index
    %81 = vector.load %arg3[%c0_109, %c1_110, %c1_111, %c1_112, %c0_113, %c0_114] : memref<2x2x2x2x6x4xbf16, #tpu.memory_space<vmem>>, vector<1x1x1x1x6x4xbf16>
    %82 = vector.shape_cast %81 : vector<1x1x1x1x6x4xbf16> to vector<6x4xbf16>
    %cst_115 = arith.constant dense<0.000000e+00> : vector<25x4xf32>
    %83 = tpu.matmul %77, %82, %cst_115 {dimension_numbers = #tpu.dot_dimension_numbers<[1], [0], [0], [1], [0, 0, 1, 1], [], []>} : vector<25x6xbf16>, vector<6x4xbf16>, vector<25x4xf32> -> vector<25x4xf32>
    %84 = arith.addf %66, %83 : vector<25x4xf32>
    %c1_116 = arith.constant 1 : index
    %c1_117 = arith.constant 1 : index
    %c0_118 = arith.constant 0 : index
    %c1_119 = arith.constant 1 : index
    %c0_120 = arith.constant 0 : index
    %c0_121 = arith.constant 0 : index
    %85 = vector.load %arg3[%c1_116, %c1_117, %c0_118, %c1_119, %c0_120, %c0_121] : memref<2x2x2x2x6x4xbf16, #tpu.memory_space<vmem>>, vector<1x1x1x1x6x4xbf16>
    %86 = vector.shape_cast %85 : vector<1x1x1x1x6x4xbf16> to vector<6x4xbf16>
    %cst_122 = arith.constant dense<0.000000e+00> : vector<25x4xf32>
    %87 = tpu.matmul %77, %86, %cst_122 {dimension_numbers = #tpu.dot_dimension_numbers<[1], [0], [0], [1], [0, 0, 1, 1], [], []>} : vector<25x6xbf16>, vector<6x4xbf16>, vector<25x4xf32> -> vector<25x4xf32>
    %88 = arith.addf %74, %87 : vector<25x4xf32>
    %c0_123 = arith.constant 0 : index
    %c2_124 = arith.constant 2 : index
    %c0_125 = arith.constant 0 : index
    %c0_126 = arith.constant 0 : index
    %89 = vector.load %arg2[%c0_123, %c2_124, %c0_125, %c0_126] : memref<1x7x7x6xbf16, #tpu.memory_space<vmem>>, vector<1x5x5x6xbf16>
    %90 = vector.shape_cast %89 : vector<1x5x5x6xbf16> to vector<5x5x6xbf16>
    %91 = vector.shape_cast %90 : vector<5x5x6xbf16> to vector<25x6xbf16>
    %c0_127 = arith.constant 0 : index
    %c12 = arith.constant 12 : index
    %92 = vector.load %arg4[%c0_127, %c12] : memref<6x18xbf16, #tpu.memory_space<vmem>>, vector<6x2xbf16>
    %cst_128 = arith.constant dense<0.000000e+00> : vector<25x2xf32>
    %93 = tpu.matmul %91, %92, %cst_128 {dimension_numbers = #tpu.dot_dimension_numbers<[1], [0], [0], [1], [0, 0, 1, 1], [], []>} : vector<25x6xbf16>, vector<6x2xbf16>, vector<25x2xf32> -> vector<25x2xf32>
    %94 = arith.addf %80, %93 : vector<25x2xf32>
    %c1_129 = arith.constant 1 : index
    %c0_130 = arith.constant 0 : index
    %c1_131 = arith.constant 1 : index
    %c0_132 = arith.constant 0 : index
    %c0_133 = arith.constant 0 : index
    %c0_134 = arith.constant 0 : index
    %95 = vector.load %arg3[%c1_129, %c0_130, %c1_131, %c0_132, %c0_133, %c0_134] : memref<2x2x2x2x6x4xbf16, #tpu.memory_space<vmem>>, vector<1x1x1x1x6x4xbf16>
    %96 = vector.shape_cast %95 : vector<1x1x1x1x6x4xbf16> to vector<6x4xbf16>
    %cst_135 = arith.constant dense<0.000000e+00> : vector<25x4xf32>
    %97 = tpu.matmul %91, %96, %cst_135 {dimension_numbers = #tpu.dot_dimension_numbers<[1], [0], [0], [1], [0, 0, 1, 1], [], []>} : vector<25x6xbf16>, vector<6x4xbf16>, vector<25x4xf32> -> vector<25x4xf32>
    %98 = arith.addf %70, %97 : vector<25x4xf32>
    %c0_136 = arith.constant 0 : index
    %c2_137 = arith.constant 2 : index
    %c1_138 = arith.constant 1 : index
    %c0_139 = arith.constant 0 : index
    %99 = vector.load %arg2[%c0_136, %c2_137, %c1_138, %c0_139] : memref<1x7x7x6xbf16, #tpu.memory_space<vmem>>, vector<1x5x5x6xbf16>
    %100 = vector.shape_cast %99 : vector<1x5x5x6xbf16> to vector<5x5x6xbf16>
    %101 = vector.shape_cast %100 : vector<5x5x6xbf16> to vector<25x6xbf16>
    %c0_140 = arith.constant 0 : index
    %c14 = arith.constant 14 : index
    %102 = vector.load %arg4[%c0_140, %c14] : memref<6x18xbf16, #tpu.memory_space<vmem>>, vector<6x2xbf16>
    %cst_141 = arith.constant dense<0.000000e+00> : vector<25x2xf32>
    %103 = tpu.matmul %101, %102, %cst_141 {dimension_numbers = #tpu.dot_dimension_numbers<[1], [0], [0], [1], [0, 0, 1, 1], [], []>} : vector<25x6xbf16>, vector<6x2xbf16>, vector<25x2xf32> -> vector<25x2xf32>
    %104 = arith.addf %94, %103 : vector<25x2xf32>
    %c1_142 = arith.constant 1 : index
    %c0_143 = arith.constant 0 : index
    %c1_144 = arith.constant 1 : index
    %c1_145 = arith.constant 1 : index
    %c0_146 = arith.constant 0 : index
    %c0_147 = arith.constant 0 : index
    %105 = vector.load %arg3[%c1_142, %c0_143, %c1_144, %c1_145, %c0_146, %c0_147] : memref<2x2x2x2x6x4xbf16, #tpu.memory_space<vmem>>, vector<1x1x1x1x6x4xbf16>
    %106 = vector.shape_cast %105 : vector<1x1x1x1x6x4xbf16> to vector<6x4xbf16>
    %cst_148 = arith.constant dense<0.000000e+00> : vector<25x4xf32>
    %107 = tpu.matmul %101, %106, %cst_148 {dimension_numbers = #tpu.dot_dimension_numbers<[1], [0], [0], [1], [0, 0, 1, 1], [], []>} : vector<25x6xbf16>, vector<6x4xbf16>, vector<25x4xf32> -> vector<25x4xf32>
    %108 = arith.addf %98, %107 : vector<25x4xf32>
    %c1_149 = arith.constant 1 : index
    %c1_150 = arith.constant 1 : index
    %c1_151 = arith.constant 1 : index
    %c0_152 = arith.constant 0 : index
    %c0_153 = arith.constant 0 : index
    %c0_154 = arith.constant 0 : index
    %109 = vector.load %arg3[%c1_149, %c1_150, %c1_151, %c0_152, %c0_153, %c0_154] : memref<2x2x2x2x6x4xbf16, #tpu.memory_space<vmem>>, vector<1x1x1x1x6x4xbf16>
    %110 = vector.shape_cast %109 : vector<1x1x1x1x6x4xbf16> to vector<6x4xbf16>
    %cst_155 = arith.constant dense<0.000000e+00> : vector<25x4xf32>
    %111 = tpu.matmul %101, %110, %cst_155 {dimension_numbers = #tpu.dot_dimension_numbers<[1], [0], [0], [1], [0, 0, 1, 1], [], []>} : vector<25x6xbf16>, vector<6x4xbf16>, vector<25x4xf32> -> vector<25x4xf32>
    %112 = arith.addf %88, %111 : vector<25x4xf32>
    %c0_156 = arith.constant 0 : index
    %c2_157 = arith.constant 2 : index
    %c2_158 = arith.constant 2 : index
    %c0_159 = arith.constant 0 : index
    %113 = vector.load %arg2[%c0_156, %c2_157, %c2_158, %c0_159] : memref<1x7x7x6xbf16, #tpu.memory_space<vmem>>, vector<1x5x5x6xbf16>
    %114 = vector.shape_cast %113 : vector<1x5x5x6xbf16> to vector<5x5x6xbf16>
    %115 = vector.shape_cast %114 : vector<5x5x6xbf16> to vector<25x6xbf16>
    %c0_160 = arith.constant 0 : index
    %c16 = arith.constant 16 : index
    %116 = vector.load %arg4[%c0_160, %c16] : memref<6x18xbf16, #tpu.memory_space<vmem>>, vector<6x2xbf16>
    %cst_161 = arith.constant dense<0.000000e+00> : vector<25x2xf32>
    %117 = tpu.matmul %115, %116, %cst_161 {dimension_numbers = #tpu.dot_dimension_numbers<[1], [0], [0], [1], [0, 0, 1, 1], [], []>} : vector<25x6xbf16>, vector<6x2xbf16>, vector<25x2xf32> -> vector<25x2xf32>
    %118 = arith.addf %104, %117 : vector<25x2xf32>
    %c1_162 = arith.constant 1 : index
    %c1_163 = arith.constant 1 : index
    %c1_164 = arith.constant 1 : index
    %c1_165 = arith.constant 1 : index
    %c0_166 = arith.constant 0 : index
    %c0_167 = arith.constant 0 : index
    %119 = vector.load %arg3[%c1_162, %c1_163, %c1_164, %c1_165, %c0_166, %c0_167] : memref<2x2x2x2x6x4xbf16, #tpu.memory_space<vmem>>, vector<1x1x1x1x6x4xbf16>
    %120 = vector.shape_cast %119 : vector<1x1x1x1x6x4xbf16> to vector<6x4xbf16>
    %cst_168 = arith.constant dense<0.000000e+00> : vector<25x4xf32>
    %121 = tpu.matmul %115, %120, %cst_168 {dimension_numbers = #tpu.dot_dimension_numbers<[1], [0], [0], [1], [0, 0, 1, 1], [], []>} : vector<25x6xbf16>, vector<6x4xbf16>, vector<25x4xf32> -> vector<25x4xf32>
    %122 = arith.addf %112, %121 : vector<25x4xf32>
    %cst_169 = arith.constant 0.000000e+00 : f32
    %123 = vector.broadcast %cst_169 : f32 to vector<25x4xf32>
    %124 = arith.cmpf oge, %62, %123 : vector<25x4xf32>
    %cst_170 = arith.constant 1.000000e-01 : f32
    %125 = vector.broadcast %cst_170 : f32 to vector<25x4xf32>
    %126 = arith.mulf %125, %62 : vector<25x4xf32>
    %127 = arith.select %124, %62, %126 : vector<25x4xi1>, vector<25x4xf32>
    %128 = vector.shape_cast %127 : vector<25x4xf32> to vector<5x5x4xf32>
    %129 = arith.truncf %128 : vector<5x5x4xf32> to vector<5x5x4xbf16>
    %c0_171 = arith.constant 0 : index
    %c0_172 = arith.constant 0 : index
    %c0_173 = arith.constant 0 : index
    %c0_174 = arith.constant 0 : index
    %c0_175 = arith.constant 0 : index
    %c0_176 = arith.constant 0 : index
    %130 = vector.load %arg6[%c0_171, %c0_172, %c0_173, %c0_174, %c0_175, %c0_176] : memref<1x2x2x5x5x4xbf16, #tpu.memory_space<vmem>>, vector<1x1x1x5x5x4xbf16>
    %131 = vector.shape_cast %130 : vector<1x1x1x5x5x4xbf16> to vector<5x5x4xbf16>
    %132 = vector.shape_cast %129 : vector<5x5x4xbf16> to vector<1x1x1x5x5x4xbf16>
    tpu.vector_store %arg6[%c0_171, %c0_172, %c0_173, %c0_174, %c0_175, %c0_176], %132 {strides = array<i32>} : memref<1x2x2x5x5x4xbf16, #tpu.memory_space<vmem>>, vector<1x1x1x5x5x4xbf16>,
    %cst_177 = arith.constant 0.000000e+00 : f32
    %133 = vector.broadcast %cst_177 : f32 to vector<25x4xf32>
    %134 = arith.cmpf oge, %84, %133 : vector<25x4xf32>
    %cst_178 = arith.constant 1.000000e-01 : f32
    %135 = vector.broadcast %cst_178 : f32 to vector<25x4xf32>
    %136 = arith.mulf %135, %84 : vector<25x4xf32>
    %137 = arith.select %134, %84, %136 : vector<25x4xi1>, vector<25x4xf32>
    %138 = vector.shape_cast %137 : vector<25x4xf32> to vector<5x5x4xf32>
    %139 = arith.truncf %138 : vector<5x5x4xf32> to vector<5x5x4xbf16>
    %c0_179 = arith.constant 0 : index
    %c0_180 = arith.constant 0 : index
    %c1_181 = arith.constant 1 : index
    %c0_182 = arith.constant 0 : index
    %c0_183 = arith.constant 0 : index
    %c0_184 = arith.constant 0 : index
    %140 = vector.load %arg6[%c0_179, %c0_180, %c1_181, %c0_182, %c0_183, %c0_184] : memref<1x2x2x5x5x4xbf16, #tpu.memory_space<vmem>>, vector<1x1x1x5x5x4xbf16>
    %141 = vector.shape_cast %140 : vector<1x1x1x5x5x4xbf16> to vector<5x5x4xbf16>
    %142 = vector.shape_cast %139 : vector<5x5x4xbf16> to vector<1x1x1x5x5x4xbf16>
    tpu.vector_store %arg6[%c0_179, %c0_180, %c1_181, %c0_182, %c0_183, %c0_184], %142 {strides = array<i32>} : memref<1x2x2x5x5x4xbf16, #tpu.memory_space<vmem>>, vector<1x1x1x5x5x4xbf16>,
    %cst_185 = arith.constant 0.000000e+00 : f32
    %143 = vector.broadcast %cst_185 : f32 to vector<25x4xf32>
    %144 = arith.cmpf oge, %108, %143 : vector<25x4xf32>
    %cst_186 = arith.constant 1.000000e-01 : f32
    %145 = vector.broadcast %cst_186 : f32 to vector<25x4xf32>
    %146 = arith.mulf %145, %108 : vector<25x4xf32>
    %147 = arith.select %144, %108, %146 : vector<25x4xi1>, vector<25x4xf32>
    %148 = vector.shape_cast %147 : vector<25x4xf32> to vector<5x5x4xf32>
    %149 = arith.truncf %148 : vector<5x5x4xf32> to vector<5x5x4xbf16>
    %c0_187 = arith.constant 0 : index
    %c1_188 = arith.constant 1 : index
    %c0_189 = arith.constant 0 : index
    %c0_190 = arith.constant 0 : index
    %c0_191 = arith.constant 0 : index
    %c0_192 = arith.constant 0 : index
    %150 = vector.load %arg6[%c0_187, %c1_188, %c0_189, %c0_190, %c0_191, %c0_192] : memref<1x2x2x5x5x4xbf16, #tpu.memory_space<vmem>>, vector<1x1x1x5x5x4xbf16>
    %151 = vector.shape_cast %150 : vector<1x1x1x5x5x4xbf16> to vector<5x5x4xbf16>
    %152 = vector.shape_cast %149 : vector<5x5x4xbf16> to vector<1x1x1x5x5x4xbf16>
    tpu.vector_store %arg6[%c0_187, %c1_188, %c0_189, %c0_190, %c0_191, %c0_192], %152 {strides = array<i32>} : memref<1x2x2x5x5x4xbf16, #tpu.memory_space<vmem>>, vector<1x1x1x5x5x4xbf16>,
    %cst_193 = arith.constant 0.000000e+00 : f32
    %153 = vector.broadcast %cst_193 : f32 to vector<25x4xf32>
    %154 = arith.cmpf oge, %122, %153 : vector<25x4xf32>
    %cst_194 = arith.constant 1.000000e-01 : f32
    %155 = vector.broadcast %cst_194 : f32 to vector<25x4xf32>
    %156 = arith.mulf %155, %122 : vector<25x4xf32>
    %157 = arith.select %154, %122, %156 : vector<25x4xi1>, vector<25x4xf32>
    %158 = vector.shape_cast %157 : vector<25x4xf32> to vector<5x5x4xf32>
    %159 = arith.truncf %158 : vector<5x5x4xf32> to vector<5x5x4xbf16>
    %c0_195 = arith.constant 0 : index
    %c1_196 = arith.constant 1 : index
    %c1_197 = arith.constant 1 : index
    %c0_198 = arith.constant 0 : index
    %c0_199 = arith.constant 0 : index
    %c0_200 = arith.constant 0 : index
    %160 = vector.load %arg6[%c0_195, %c1_196, %c1_197, %c0_198, %c0_199, %c0_200] : memref<1x2x2x5x5x4xbf16, #tpu.memory_space<vmem>>, vector<1x1x1x5x5x4xbf16>
    %161 = vector.shape_cast %160 : vector<1x1x1x5x5x4xbf16> to vector<5x5x4xbf16>
    %162 = vector.shape_cast %159 : vector<5x5x4xbf16> to vector<1x1x1x5x5x4xbf16>
    tpu.vector_store %arg6[%c0_195, %c1_196, %c1_197, %c0_198, %c0_199, %c0_200], %162 {strides = array<i32>} : memref<1x2x2x5x5x4xbf16, #tpu.memory_space<vmem>>, vector<1x1x1x5x5x4xbf16>,
    %cst_201 = arith.constant 0.000000e+00 : bf16
    %163 = vector.broadcast %cst_201 : bf16 to vector<7x7x2xbf16>
    %c0_202 = arith.constant 0 : index
    %c0_203 = arith.constant 0 : index
    %c0_204 = arith.constant 0 : index
    %164 = vector.load %arg8[%c0_202, %c0_203, %c0_204] : memref<7x7x2xbf16, #tpu.memory_space<vmem>>, vector<7x7x2xbf16>
    tpu.vector_store %arg8[%c0_202, %c0_203, %c0_204], %163 {strides = array<i32>} : memref<7x7x2xbf16, #tpu.memory_space<vmem>>, vector<7x7x2xbf16>,
    %165 = vector.shape_cast %118 : vector<25x2xf32> to vector<5x5x2xf32>
    %166 = arith.truncf %165 : vector<5x5x2xf32> to vector<5x5x2xbf16>
    %c1_205 = arith.constant 1 : index
    %c1_206 = arith.constant 1 : index
    %c0_207 = arith.constant 0 : index
    %167 = vector.load %arg8[%c1_205, %c1_206, %c0_207] : memref<7x7x2xbf16, #tpu.memory_space<vmem>>, vector<5x5x2xbf16>
    tpu.vector_store %arg8[%c1_205, %c1_206, %c0_207], %166 {strides = array<i32>} : memref<7x7x2xbf16, #tpu.memory_space<vmem>>, vector<5x5x2xbf16>,
    %cst_208 = arith.constant 0.000000e+00 : f32
    %168 = vector.broadcast %cst_208 : f32 to vector<25x2xf32>
    %c0_209 = arith.constant 0 : index
    %c0_210 = arith.constant 0 : index
    %c0_211 = arith.constant 0 : index
    %169 = vector.load %arg8[%c0_209, %c0_210, %c0_211] : memref<7x7x2xbf16, #tpu.memory_space<vmem>>, vector<5x5x2xbf16>
    %170 = vector.shape_cast %169 : vector<5x5x2xbf16> to vector<25x2xbf16>
    %c0_212 = arith.constant 0 : index
    %c0_213 = arith.constant 0 : index
    %c0_214 = arith.constant 0 : index
    %c0_215 = arith.constant 0 : index
    %c0_216 = arith.constant 0 : index
    %c0_217 = arith.constant 0 : index
    %171 = vector.load %arg5[%c0_212, %c0_213, %c0_214, %c0_215, %c0_216, %c0_217] : memref<2x2x2x2x2x2xbf16, #tpu.memory_space<vmem>>, vector<1x1x1x1x2x2xbf16>
    %172 = vector.shape_cast %171 : vector<1x1x1x1x2x2xbf16> to vector<2x2xbf16>
    %cst_218 = arith.constant dense<0.000000e+00> : vector<25x2xf32>
    %173 = tpu.matmul %170, %172, %cst_218 {dimension_numbers = #tpu.dot_dimension_numbers<[1], [0], [0], [1], [0, 0, 1, 1], [], []>} : vector<25x2xbf16>, vector<2x2xbf16>, vector<25x2xf32> -> vector<25x2xf32>
    %174 = arith.addf %168, %173 : vector<25x2xf32>
    %c0_219 = arith.constant 0 : index
    %c1_220 = arith.constant 1 : index
    %c0_221 = arith.constant 0 : index
    %175 = vector.load %arg8[%c0_219, %c1_220, %c0_221] : memref<7x7x2xbf16, #tpu.memory_space<vmem>>, vector<5x5x2xbf16>
    %176 = vector.shape_cast %175 : vector<5x5x2xbf16> to vector<25x2xbf16>
    %c0_222 = arith.constant 0 : index
    %c0_223 = arith.constant 0 : index
    %c0_224 = arith.constant 0 : index
    %c1_225 = arith.constant 1 : index
    %c0_226 = arith.constant 0 : index
    %c0_227 = arith.constant 0 : index
    %177 = vector.load %arg5[%c0_222, %c0_223, %c0_224, %c1_225, %c0_226, %c0_227] : memref<2x2x2x2x2x2xbf16, #tpu.memory_space<vmem>>, vector<1x1x1x1x2x2xbf16>
    %178 = vector.shape_cast %177 : vector<1x1x1x1x2x2xbf16> to vector<2x2xbf16>
    %cst_228 = arith.constant dense<0.000000e+00> : vector<25x2xf32>
    %179 = tpu.matmul %176, %178, %cst_228 {dimension_numbers = #tpu.dot_dimension_numbers<[1], [0], [0], [1], [0, 0, 1, 1], [], []>} : vector<25x2xbf16>, vector<2x2xbf16>, vector<25x2xf32> -> vector<25x2xf32>
    %180 = arith.addf %174, %179 : vector<25x2xf32>
    %c1_229 = arith.constant 1 : index
    %c0_230 = arith.constant 0 : index
    %c0_231 = arith.constant 0 : index
    %181 = vector.load %arg8[%c1_229, %c0_230, %c0_231] : memref<7x7x2xbf16, #tpu.memory_space<vmem>>, vector<5x5x2xbf16>
    %182 = vector.shape_cast %181 : vector<5x5x2xbf16> to vector<25x2xbf16>
    %c0_232 = arith.constant 0 : index
    %c0_233 = arith.constant 0 : index
    %c1_234 = arith.constant 1 : index
    %c0_235 = arith.constant 0 : index
    %c0_236 = arith.constant 0 : index
    %c0_237 = arith.constant 0 : index
    %183 = vector.load %arg5[%c0_232, %c0_233, %c1_234, %c0_235, %c0_236, %c0_237] : memref<2x2x2x2x2x2xbf16, #tpu.memory_space<vmem>>, vector<1x1x1x1x2x2xbf16>
    %184 = vector.shape_cast %183 : vector<1x1x1x1x2x2xbf16> to vector<2x2xbf16>
    %cst_238 = arith.constant dense<0.000000e+00> : vector<25x2xf32>
    %185 = tpu.matmul %182, %184, %cst_238 {dimension_numbers = #tpu.dot_dimension_numbers<[1], [0], [0], [1], [0, 0, 1, 1], [], []>} : vector<25x2xbf16>, vector<2x2xbf16>, vector<25x2xf32> -> vector<25x2xf32>
    %186 = arith.addf %180, %185 : vector<25x2xf32>
    %c1_239 = arith.constant 1 : index
    %c1_240 = arith.constant 1 : index
    %c0_241 = arith.constant 0 : index
    %187 = vector.load %arg8[%c1_239, %c1_240, %c0_241] : memref<7x7x2xbf16, #tpu.memory_space<vmem>>, vector<5x5x2xbf16>
    %188 = vector.shape_cast %187 : vector<5x5x2xbf16> to vector<25x2xbf16>
    %c0_242 = arith.constant 0 : index
    %c0_243 = arith.constant 0 : index
    %c1_244 = arith.constant 1 : index
    %c1_245 = arith.constant 1 : index
    %c0_246 = arith.constant 0 : index
    %c0_247 = arith.constant 0 : index
    %189 = vector.load %arg5[%c0_242, %c0_243, %c1_244, %c1_245, %c0_246, %c0_247] : memref<2x2x2x2x2x2xbf16, #tpu.memory_space<vmem>>, vector<1x1x1x1x2x2xbf16>
    %190 = vector.shape_cast %189 : vector<1x1x1x1x2x2xbf16> to vector<2x2xbf16>
    %cst_248 = arith.constant dense<0.000000e+00> : vector<25x2xf32>
    %191 = tpu.matmul %188, %190, %cst_248 {dimension_numbers = #tpu.dot_dimension_numbers<[1], [0], [0], [1], [0, 0, 1, 1], [], []>} : vector<25x2xbf16>, vector<2x2xbf16>, vector<25x2xf32> -> vector<25x2xf32>
    %192 = arith.addf %186, %191 : vector<25x2xf32>
    %193 = vector.shape_cast %192 : vector<25x2xf32> to vector<5x5x2xf32>
    %194 = arith.truncf %193 : vector<5x5x2xf32> to vector<5x5x2xbf16>
    %c0_249 = arith.constant 0 : index
    %c0_250 = arith.constant 0 : index
    %c0_251 = arith.constant 0 : index
    %c0_252 = arith.constant 0 : index
    %c0_253 = arith.constant 0 : index
    %c0_254 = arith.constant 0 : index
    %195 = vector.load %arg7[%c0_249, %c0_250, %c0_251, %c0_252, %c0_253, %c0_254] : memref<1x2x2x5x5x2xbf16, #tpu.memory_space<vmem>>, vector<1x1x1x5x5x2xbf16>
    %196 = vector.shape_cast %195 : vector<1x1x1x5x5x2xbf16> to vector<5x5x2xbf16>
    %197 = vector.shape_cast %194 : vector<5x5x2xbf16> to vector<1x1x1x5x5x2xbf16>
    tpu.vector_store %arg7[%c0_249, %c0_250, %c0_251, %c0_252, %c0_253, %c0_254], %197 {strides = array<i32>} : memref<1x2x2x5x5x2xbf16, #tpu.memory_space<vmem>>, vector<1x1x1x5x5x2xbf16>,
    %cst_255 = arith.constant 0.000000e+00 : f32
    %198 = vector.broadcast %cst_255 : f32 to vector<25x2xf32>
    %c0_256 = arith.constant 0 : index
    %c1_257 = arith.constant 1 : index
    %c0_258 = arith.constant 0 : index
    %199 = vector.load %arg8[%c0_256, %c1_257, %c0_258] : memref<7x7x2xbf16, #tpu.memory_space<vmem>>, vector<5x5x2xbf16>
    %200 = vector.shape_cast %199 : vector<5x5x2xbf16> to vector<25x2xbf16>
    %c0_259 = arith.constant 0 : index
    %c1_260 = arith.constant 1 : index
    %c0_261 = arith.constant 0 : index
    %c0_262 = arith.constant 0 : index
    %c0_263 = arith.constant 0 : index
    %c0_264 = arith.constant 0 : index
    %201 = vector.load %arg5[%c0_259, %c1_260, %c0_261, %c0_262, %c0_263, %c0_264] : memref<2x2x2x2x2x2xbf16, #tpu.memory_space<vmem>>, vector<1x1x1x1x2x2xbf16>
    %202 = vector.shape_cast %201 : vector<1x1x1x1x2x2xbf16> to vector<2x2xbf16>
    %cst_265 = arith.constant dense<0.000000e+00> : vector<25x2xf32>
    %203 = tpu.matmul %200, %202, %cst_265 {dimension_numbers = #tpu.dot_dimension_numbers<[1], [0], [0], [1], [0, 0, 1, 1], [], []>} : vector<25x2xbf16>, vector<2x2xbf16>, vector<25x2xf32> -> vector<25x2xf32>
    %204 = arith.addf %198, %203 : vector<25x2xf32>
    %c0_266 = arith.constant 0 : index
    %c2_267 = arith.constant 2 : index
    %c0_268 = arith.constant 0 : index
    %205 = vector.load %arg8[%c0_266, %c2_267, %c0_268] : memref<7x7x2xbf16, #tpu.memory_space<vmem>>, vector<5x5x2xbf16>
    %206 = vector.shape_cast %205 : vector<5x5x2xbf16> to vector<25x2xbf16>
    %c0_269 = arith.constant 0 : index
    %c1_270 = arith.constant 1 : index
    %c0_271 = arith.constant 0 : index
    %c1_272 = arith.constant 1 : index
    %c0_273 = arith.constant 0 : index
    %c0_274 = arith.constant 0 : index
    %207 = vector.load %arg5[%c0_269, %c1_270, %c0_271, %c1_272, %c0_273, %c0_274] : memref<2x2x2x2x2x2xbf16, #tpu.memory_space<vmem>>, vector<1x1x1x1x2x2xbf16>
    %208 = vector.shape_cast %207 : vector<1x1x1x1x2x2xbf16> to vector<2x2xbf16>
    %cst_275 = arith.constant dense<0.000000e+00> : vector<25x2xf32>
    %209 = tpu.matmul %206, %208, %cst_275 {dimension_numbers = #tpu.dot_dimension_numbers<[1], [0], [0], [1], [0, 0, 1, 1], [], []>} : vector<25x2xbf16>, vector<2x2xbf16>, vector<25x2xf32> -> vector<25x2xf32>
    %210 = arith.addf %204, %209 : vector<25x2xf32>
    %c1_276 = arith.constant 1 : index
    %c1_277 = arith.constant 1 : index
    %c0_278 = arith.constant 0 : index
    %211 = vector.load %arg8[%c1_276, %c1_277, %c0_278] : memref<7x7x2xbf16, #tpu.memory_space<vmem>>, vector<5x5x2xbf16>
    %212 = vector.shape_cast %211 : vector<5x5x2xbf16> to vector<25x2xbf16>
    %c0_279 = arith.constant 0 : index
    %c1_280 = arith.constant 1 : index
    %c1_281 = arith.constant 1 : index
    %c0_282 = arith.constant 0 : index
    %c0_283 = arith.constant 0 : index
    %c0_284 = arith.constant 0 : index
    %213 = vector.load %arg5[%c0_279, %c1_280, %c1_281, %c0_282, %c0_283, %c0_284] : memref<2x2x2x2x2x2xbf16, #tpu.memory_space<vmem>>, vector<1x1x1x1x2x2xbf16>
    %214 = vector.shape_cast %213 : vector<1x1x1x1x2x2xbf16> to vector<2x2xbf16>
    %cst_285 = arith.constant dense<0.000000e+00> : vector<25x2xf32>
    %215 = tpu.matmul %212, %214, %cst_285 {dimension_numbers = #tpu.dot_dimension_numbers<[1], [0], [0], [1], [0, 0, 1, 1], [], []>} : vector<25x2xbf16>, vector<2x2xbf16>, vector<25x2xf32> -> vector<25x2xf32>
    %216 = arith.addf %210, %215 : vector<25x2xf32>
    %c1_286 = arith.constant 1 : index
    %c2_287 = arith.constant 2 : index
    %c0_288 = arith.constant 0 : index
    %217 = vector.load %arg8[%c1_286, %c2_287, %c0_288] : memref<7x7x2xbf16, #tpu.memory_space<vmem>>, vector<5x5x2xbf16>
    %218 = vector.shape_cast %217 : vector<5x5x2xbf16> to vector<25x2xbf16>
    %c0_289 = arith.constant 0 : index
    %c1_290 = arith.constant 1 : index
    %c1_291 = arith.constant 1 : index
    %c1_292 = arith.constant 1 : index
    %c0_293 = arith.constant 0 : index
    %c0_294 = arith.constant 0 : index
    %219 = vector.load %arg5[%c0_289, %c1_290, %c1_291, %c1_292, %c0_293, %c0_294] : memref<2x2x2x2x2x2xbf16, #tpu.memory_space<vmem>>, vector<1x1x1x1x2x2xbf16>
    %220 = vector.shape_cast %219 : vector<1x1x1x1x2x2xbf16> to vector<2x2xbf16>
    %cst_295 = arith.constant dense<0.000000e+00> : vector<25x2xf32>
    %221 = tpu.matmul %218, %220, %cst_295 {dimension_numbers = #tpu.dot_dimension_numbers<[1], [0], [0], [1], [0, 0, 1, 1], [], []>} : vector<25x2xbf16>, vector<2x2xbf16>, vector<25x2xf32> -> vector<25x2xf32>
    %222 = arith.addf %216, %221 : vector<25x2xf32>
    %223 = vector.shape_cast %222 : vector<25x2xf32> to vector<5x5x2xf32>
    %224 = arith.truncf %223 : vector<5x5x2xf32> to vector<5x5x2xbf16>
    %c0_296 = arith.constant 0 : index
    %c0_297 = arith.constant 0 : index
    %c1_298 = arith.constant 1 : index
    %c0_299 = arith.constant 0 : index
    %c0_300 = arith.constant 0 : index
    %c0_301 = arith.constant 0 : index
    %225 = vector.load %arg7[%c0_296, %c0_297, %c1_298, %c0_299, %c0_300, %c0_301] : memref<1x2x2x5x5x2xbf16, #tpu.memory_space<vmem>>, vector<1x1x1x5x5x2xbf16>
    %226 = vector.shape_cast %225 : vector<1x1x1x5x5x2xbf16> to vector<5x5x2xbf16>
    %227 = vector.shape_cast %224 : vector<5x5x2xbf16> to vector<1x1x1x5x5x2xbf16>
    tpu.vector_store %arg7[%c0_296, %c0_297, %c1_298, %c0_299, %c0_300, %c0_301], %227 {strides = array<i32>} : memref<1x2x2x5x5x2xbf16, #tpu.memory_space<vmem>>, vector<1x1x1x5x5x2xbf16>,
    %cst_302 = arith.constant 0.000000e+00 : f32
    %228 = vector.broadcast %cst_302 : f32 to vector<25x2xf32>
    %c1_303 = arith.constant 1 : index
    %c0_304 = arith.constant 0 : index
    %c0_305 = arith.constant 0 : index
    %229 = vector.load %arg8[%c1_303, %c0_304, %c0_305] : memref<7x7x2xbf16, #tpu.memory_space<vmem>>, vector<5x5x2xbf16>
    %230 = vector.shape_cast %229 : vector<5x5x2xbf16> to vector<25x2xbf16>
    %c1_306 = arith.constant 1 : index
    %c0_307 = arith.constant 0 : index
    %c0_308 = arith.constant 0 : index
    %c0_309 = arith.constant 0 : index
    %c0_310 = arith.constant 0 : index
    %c0_311 = arith.constant 0 : index
    %231 = vector.load %arg5[%c1_306, %c0_307, %c0_308, %c0_309, %c0_310, %c0_311] : memref<2x2x2x2x2x2xbf16, #tpu.memory_space<vmem>>, vector<1x1x1x1x2x2xbf16>
    %232 = vector.shape_cast %231 : vector<1x1x1x1x2x2xbf16> to vector<2x2xbf16>
    %cst_312 = arith.constant dense<0.000000e+00> : vector<25x2xf32>
    %233 = tpu.matmul %230, %232, %cst_312 {dimension_numbers = #tpu.dot_dimension_numbers<[1], [0], [0], [1], [0, 0, 1, 1], [], []>} : vector<25x2xbf16>, vector<2x2xbf16>, vector<25x2xf32> -> vector<25x2xf32>
    %234 = arith.addf %228, %233 : vector<25x2xf32>
    %c1_313 = arith.constant 1 : index
    %c1_314 = arith.constant 1 : index
    %c0_315 = arith.constant 0 : index
    %235 = vector.load %arg8[%c1_313, %c1_314, %c0_315] : memref<7x7x2xbf16, #tpu.memory_space<vmem>>, vector<5x5x2xbf16>
    %236 = vector.shape_cast %235 : vector<5x5x2xbf16> to vector<25x2xbf16>
    %c1_316 = arith.constant 1 : index
    %c0_317 = arith.constant 0 : index
    %c0_318 = arith.constant 0 : index
    %c1_319 = arith.constant 1 : index
    %c0_320 = arith.constant 0 : index
    %c0_321 = arith.constant 0 : index
    %237 = vector.load %arg5[%c1_316, %c0_317, %c0_318, %c1_319, %c0_320, %c0_321] : memref<2x2x2x2x2x2xbf16, #tpu.memory_space<vmem>>, vector<1x1x1x1x2x2xbf16>
    %238 = vector.shape_cast %237 : vector<1x1x1x1x2x2xbf16> to vector<2x2xbf16>
    %cst_322 = arith.constant dense<0.000000e+00> : vector<25x2xf32>
    %239 = tpu.matmul %236, %238, %cst_322 {dimension_numbers = #tpu.dot_dimension_numbers<[1], [0], [0], [1], [0, 0, 1, 1], [], []>} : vector<25x2xbf16>, vector<2x2xbf16>, vector<25x2xf32> -> vector<25x2xf32>
    %240 = arith.addf %234, %239 : vector<25x2xf32>
    %c2_323 = arith.constant 2 : index
    %c0_324 = arith.constant 0 : index
    %c0_325 = arith.constant 0 : index
    %241 = vector.load %arg8[%c2_323, %c0_324, %c0_325] : memref<7x7x2xbf16, #tpu.memory_space<vmem>>, vector<5x5x2xbf16>
    %242 = vector.shape_cast %241 : vector<5x5x2xbf16> to vector<25x2xbf16>
    %c1_326 = arith.constant 1 : index
    %c0_327 = arith.constant 0 : index
    %c1_328 = arith.constant 1 : index
    %c0_329 = arith.constant 0 : index
    %c0_330 = arith.constant 0 : index
    %c0_331 = arith.constant 0 : index
    %243 = vector.load %arg5[%c1_326, %c0_327, %c1_328, %c0_329, %c0_330, %c0_331] : memref<2x2x2x2x2x2xbf16, #tpu.memory_space<vmem>>, vector<1x1x1x1x2x2xbf16>
    %244 = vector.shape_cast %243 : vector<1x1x1x1x2x2xbf16> to vector<2x2xbf16>
    %cst_332 = arith.constant dense<0.000000e+00> : vector<25x2xf32>
    %245 = tpu.matmul %242, %244, %cst_332 {dimension_numbers = #tpu.dot_dimension_numbers<[1], [0], [0], [1], [0, 0, 1, 1], [], []>} : vector<25x2xbf16>, vector<2x2xbf16>, vector<25x2xf32> -> vector<25x2xf32>
    %246 = arith.addf %240, %245 : vector<25x2xf32>
    %c2_333 = arith.constant 2 : index
    %c1_334 = arith.constant 1 : index
    %c0_335 = arith.constant 0 : index
    %247 = vector.load %arg8[%c2_333, %c1_334, %c0_335] : memref<7x7x2xbf16, #tpu.memory_space<vmem>>, vector<5x5x2xbf16>
    %248 = vector.shape_cast %247 : vector<5x5x2xbf16> to vector<25x2xbf16>
    %c1_336 = arith.constant 1 : index
    %c0_337 = arith.constant 0 : index
    %c1_338 = arith.constant 1 : index
    %c1_339 = arith.constant 1 : index
    %c0_340 = arith.constant 0 : index
    %c0_341 = arith.constant 0 : index
    %249 = vector.load %arg5[%c1_336, %c0_337, %c1_338, %c1_339, %c0_340, %c0_341] : memref<2x2x2x2x2x2xbf16, #tpu.memory_space<vmem>>, vector<1x1x1x1x2x2xbf16>
    %250 = vector.shape_cast %249 : vector<1x1x1x1x2x2xbf16> to vector<2x2xbf16>
    %cst_342 = arith.constant dense<0.000000e+00> : vector<25x2xf32>
    %251 = tpu.matmul %248, %250, %cst_342 {dimension_numbers = #tpu.dot_dimension_numbers<[1], [0], [0], [1], [0, 0, 1, 1], [], []>} : vector<25x2xbf16>, vector<2x2xbf16>, vector<25x2xf32> -> vector<25x2xf32>
    %252 = arith.addf %246, %251 : vector<25x2xf32>
    %253 = vector.shape_cast %252 : vector<25x2xf32> to vector<5x5x2xf32>
    %254 = arith.truncf %253 : vector<5x5x2xf32> to vector<5x5x2xbf16>
    %c0_343 = arith.constant 0 : index
    %c1_344 = arith.constant 1 : index
    %c0_345 = arith.constant 0 : index
    %c0_346 = arith.constant 0 : index
    %c0_347 = arith.constant 0 : index
    %c0_348 = arith.constant 0 : index
    %255 = vector.load %arg7[%c0_343, %c1_344, %c0_345, %c0_346, %c0_347, %c0_348] : memref<1x2x2x5x5x2xbf16, #tpu.memory_space<vmem>>, vector<1x1x1x5x5x2xbf16>
    %256 = vector.shape_cast %255 : vector<1x1x1x5x5x2xbf16> to vector<5x5x2xbf16>
    %257 = vector.shape_cast %254 : vector<5x5x2xbf16> to vector<1x1x1x5x5x2xbf16>
    tpu.vector_store %arg7[%c0_343, %c1_344, %c0_345, %c0_346, %c0_347, %c0_348], %257 {strides = array<i32>} : memref<1x2x2x5x5x2xbf16, #tpu.memory_space<vmem>>, vector<1x1x1x5x5x2xbf16>,
    %cst_349 = arith.constant 0.000000e+00 : f32
    %258 = vector.broadcast %cst_349 : f32 to vector<25x2xf32>
    %c1_350 = arith.constant 1 : index
    %c1_351 = arith.constant 1 : index
    %c0_352 = arith.constant 0 : index
    %259 = vector.load %arg8[%c1_350, %c1_351, %c0_352] : memref<7x7x2xbf16, #tpu.memory_space<vmem>>, vector<5x5x2xbf16>
    %260 = vector.shape_cast %259 : vector<5x5x2xbf16> to vector<25x2xbf16>
    %c1_353 = arith.constant 1 : index
    %c1_354 = arith.constant 1 : index
    %c0_355 = arith.constant 0 : index
    %c0_356 = arith.constant 0 : index
    %c0_357 = arith.constant 0 : index
    %c0_358 = arith.constant 0 : index
    %261 = vector.load %arg5[%c1_353, %c1_354, %c0_355, %c0_356, %c0_357, %c0_358] : memref<2x2x2x2x2x2xbf16, #tpu.memory_space<vmem>>, vector<1x1x1x1x2x2xbf16>
    %262 = vector.shape_cast %261 : vector<1x1x1x1x2x2xbf16> to vector<2x2xbf16>
    %cst_359 = arith.constant dense<0.000000e+00> : vector<25x2xf32>
    %263 = tpu.matmul %260, %262, %cst_359 {dimension_numbers = #tpu.dot_dimension_numbers<[1], [0], [0], [1], [0, 0, 1, 1], [], []>} : vector<25x2xbf16>, vector<2x2xbf16>, vector<25x2xf32> -> vector<25x2xf32>
    %264 = arith.addf %258, %263 : vector<25x2xf32>
    %c1_360 = arith.constant 1 : index
    %c2_361 = arith.constant 2 : index
    %c0_362 = arith.constant 0 : index
    %265 = vector.load %arg8[%c1_360, %c2_361, %c0_362] : memref<7x7x2xbf16, #tpu.memory_space<vmem>>, vector<5x5x2xbf16>
    %266 = vector.shape_cast %265 : vector<5x5x2xbf16> to vector<25x2xbf16>
    %c1_363 = arith.constant 1 : index
    %c1_364 = arith.constant 1 : index
    %c0_365 = arith.constant 0 : index
    %c1_366 = arith.constant 1 : index
    %c0_367 = arith.constant 0 : index
    %c0_368 = arith.constant 0 : index
    %267 = vector.load %arg5[%c1_363, %c1_364, %c0_365, %c1_366, %c0_367, %c0_368] : memref<2x2x2x2x2x2xbf16, #tpu.memory_space<vmem>>, vector<1x1x1x1x2x2xbf16>
    %268 = vector.shape_cast %267 : vector<1x1x1x1x2x2xbf16> to vector<2x2xbf16>
    %cst_369 = arith.constant dense<0.000000e+00> : vector<25x2xf32>
    %269 = tpu.matmul %266, %268, %cst_369 {dimension_numbers = #tpu.dot_dimension_numbers<[1], [0], [0], [1], [0, 0, 1, 1], [], []>} : vector<25x2xbf16>, vector<2x2xbf16>, vector<25x2xf32> -> vector<25x2xf32>
    %270 = arith.addf %264, %269 : vector<25x2xf32>
    %c2_370 = arith.constant 2 : index
    %c1_371 = arith.constant 1 : index
    %c0_372 = arith.constant 0 : index
    %271 = vector.load %arg8[%c2_370, %c1_371, %c0_372] : memref<7x7x2xbf16, #tpu.memory_space<vmem>>, vector<5x5x2xbf16>
    %272 = vector.shape_cast %271 : vector<5x5x2xbf16> to vector<25x2xbf16>
    %c1_373 = arith.constant 1 : index
    %c1_374 = arith.constant 1 : index
    %c1_375 = arith.constant 1 : index
    %c0_376 = arith.constant 0 : index
    %c0_377 = arith.constant 0 : index
    %c0_378 = arith.constant 0 : index
    %273 = vector.load %arg5[%c1_373, %c1_374, %c1_375, %c0_376, %c0_377, %c0_378] : memref<2x2x2x2x2x2xbf16, #tpu.memory_space<vmem>>, vector<1x1x1x1x2x2xbf16>
    %274 = vector.shape_cast %273 : vector<1x1x1x1x2x2xbf16> to vector<2x2xbf16>
    %cst_379 = arith.constant dense<0.000000e+00> : vector<25x2xf32>
    %275 = tpu.matmul %272, %274, %cst_379 {dimension_numbers = #tpu.dot_dimension_numbers<[1], [0], [0], [1], [0, 0, 1, 1], [], []>} : vector<25x2xbf16>, vector<2x2xbf16>, vector<25x2xf32> -> vector<25x2xf32>
    %276 = arith.addf %270, %275 : vector<25x2xf32>
    %c2_380 = arith.constant 2 : index
    %c2_381 = arith.constant 2 : index
    %c0_382 = arith.constant 0 : index
    %277 = vector.load %arg8[%c2_380, %c2_381, %c0_382] : memref<7x7x2xbf16, #tpu.memory_space<vmem>>, vector<5x5x2xbf16>
    %278 = vector.shape_cast %277 : vector<5x5x2xbf16> to vector<25x2xbf16>
    %c1_383 = arith.constant 1 : index
    %c1_384 = arith.constant 1 : index
    %c1_385 = arith.constant 1 : index
    %c1_386 = arith.constant 1 : index
    %c0_387 = arith.constant 0 : index
    %c0_388 = arith.constant 0 : index
    %279 = vector.load %arg5[%c1_383, %c1_384, %c1_385, %c1_386, %c0_387, %c0_388] : memref<2x2x2x2x2x2xbf16, #tpu.memory_space<vmem>>, vector<1x1x1x1x2x2xbf16>
    %280 = vector.shape_cast %279 : vector<1x1x1x1x2x2xbf16> to vector<2x2xbf16>
    %cst_389 = arith.constant dense<0.000000e+00> : vector<25x2xf32>
    %281 = tpu.matmul %278, %280, %cst_389 {dimension_numbers = #tpu.dot_dimension_numbers<[1], [0], [0], [1], [0, 0, 1, 1], [], []>} : vector<25x2xbf16>, vector<2x2xbf16>, vector<25x2xf32> -> vector<25x2xf32>
    %282 = arith.addf %276, %281 : vector<25x2xf32>
    %283 = vector.shape_cast %282 : vector<25x2xf32> to vector<5x5x2xf32>
    %284 = arith.truncf %283 : vector<5x5x2xf32> to vector<5x5x2xbf16>
    %c0_390 = arith.constant 0 : index
    %c1_391 = arith.constant 1 : index
    %c1_392 = arith.constant 1 : index
    %c0_393 = arith.constant 0 : index
    %c0_394 = arith.constant 0 : index
    %c0_395 = arith.constant 0 : index
    %285 = vector.load %arg7[%c0_390, %c1_391, %c1_392, %c0_393, %c0_394, %c0_395] : memref<1x2x2x5x5x2xbf16, #tpu.memory_space<vmem>>, vector<1x1x1x5x5x2xbf16>
    %286 = vector.shape_cast %285 : vector<1x1x1x5x5x2xbf16> to vector<5x5x2xbf16>
    %287 = vector.shape_cast %284 : vector<5x5x2xbf16> to vector<1x1x1x5x5x2xbf16>
    tpu.vector_store %arg7[%c0_390, %c1_391, %c1_392, %c0_393, %c0_394, %c0_395], %287 {strides = array<i32>} : memref<1x2x2x5x5x2xbf16, #tpu.memory_space<vmem>>, vector<1x1x1x5x5x2xbf16>,
    return
  }
  func.func @transform_0(%arg0: i32, %arg1: i32) -> (i32, i32, i32, i32) {
    %c0_i32 = arith.constant 0 : i32
    %c0_i32_0 = arith.constant 0 : i32
    %c0_i32_1 = arith.constant 0 : i32
    %c0_i32_2 = arith.constant 0 : i32
    return %arg0, %c0_i32, %c0_i32_0, %c0_i32_1 : i32, i32, i32, i32
  }
  func.func @transform_1(%arg0: i32, %arg1: i32) -> (i32, i32, i32, i32, i32, i32) {
    %c0_i32 = arith.constant 0 : i32
    %c0_i32_0 = arith.constant 0 : i32
    %c0_i32_1 = arith.constant 0 : i32
    %c0_i32_2 = arith.constant 0 : i32
    %c0_i32_3 = arith.constant 0 : i32
    %c0_i32_4 = arith.constant 0 : i32
    return %c0_i32, %c0_i32_0, %c0_i32_1, %c0_i32_2, %c0_i32_3, %arg1 : i32, i32, i32, i32, i32, i32
  }
  func.func @transform_2(%arg0: i32, %arg1: i32) -> (i32, i32) {
    %c0_i32 = arith.constant 0 : i32
    %c0_i32_0 = arith.constant 0 : i32
    %c0_i32_1 = arith.constant 0 : i32
    return %c0_i32, %c0_i32_0 : i32, i32
  }
  func.func @transform_3(%arg0: i32, %arg1: i32) -> (i32, i32, i32, i32, i32, i32) {
    %c0_i32 = arith.constant 0 : i32
    %c0_i32_0 = arith.constant 0 : i32
    %c0_i32_1 = arith.constant 0 : i32
    %c0_i32_2 = arith.constant 0 : i32
    %c0_i32_3 = arith.constant 0 : i32
    %c0_i32_4 = arith.constant 0 : i32
    %c0_i32_5 = arith.constant 0 : i32
    return %c0_i32, %c0_i32_0, %c0_i32_1, %c0_i32_2, %c0_i32_3, %c0_i32_4 : i32, i32, i32, i32, i32, i32
  }
  func.func @transform_4(%arg0: i32, %arg1: i32) -> (i32, i32, i32, i32, i32, i32) {
    %c0_i32 = arith.constant 0 : i32
    %c0_i32_0 = arith.constant 0 : i32
    %c0_i32_1 = arith.constant 0 : i32
    %c0_i32_2 = arith.constant 0 : i32
    %c0_i32_3 = arith.constant 0 : i32
    return %arg0, %c0_i32, %c0_i32_0, %c0_i32_1, %c0_i32_2, %arg1 : i32, i32, i32, i32, i32, i32
  }
  func.func @transform_5(%arg0: i32, %arg1: i32) -> (i32, i32, i32, i32, i32, i32) {
    %c0_i32 = arith.constant 0 : i32
    %c0_i32_0 = arith.constant 0 : i32
    %c0_i32_1 = arith.constant 0 : i32
    %c0_i32_2 = arith.constant 0 : i32
    %c0_i32_3 = arith.constant 0 : i32
    %c0_i32_4 = arith.constant 0 : i32
    return %arg0, %c0_i32, %c0_i32_0, %c0_i32_1, %c0_i32_2, %c0_i32_3 : i32, i32, i32, i32, i32, i32
  }
}

</mosaic_0001>

<bundles_post_ra>
// kernel: tpu_custom_call.1
= control target key start
LH: loop header
LB: loop body
LE: loop exit
PB: predicated region body
PF: predicated region fallthrough
CT: control target
= control target key end

     0   :  { %vm290_vm0 = vcmask 1042432   ;;  %s12934_s22 = smov 122   ;;  %v12935_v4 = vmov 1966171168   ;;  %s12936_s25 = smov 126   ;;  %v41_v7 = vlaneseq  ;;  %vm283_vm1 = vcmask 48128   ;;  %s15316_s2 = inlined_call_operand.vmem [shape: bf16[6,18], index: 2, kind: input, shape index: {}]   ;;  %s15317_s0 = inlined_call_operand.vmem [shape: bf16[1,7,7,6], index: 0, kind: input, shape index: {}]   ;;  %s15318_s1 = inlined_call_operand.vmem [shape: bf16[2,2,2,2,6,4], index: 1, kind: input, shape index: {}]   ;;  %s15319_s4 = inlined_call_operand.vmem [shape: bf16[1,2,2,5,5,4], index: 4, kind: output, shape index: {0}]   ;;  %s15320_s3 = inlined_call_operand.vmem [shape: bf16[2,2,2,2,2,2], index: 3, kind: input, shape index: {}]   ;;  %s15321_s5 = inlined_call_operand.vmem [shape: bf16[1,2,2,5,5,2], index: 5, kind: output, shape index: {1}]  }
   0x1   :  { %v12926_v0 = vld [vmem:[%s15316_s2] ss:$0 sps:$4 sm:$0x77]   ;;  %v39_v5 = vunpack.c.l.s4 %v12935_v4  ;;  %s12937_s28 = smov 120   ;;  %s12938_s10 = smov 124   ;;  %vm5240_vm2 = vcmask 11264  }
   0x2   :  { %v170_v1 = vld [vmem:[%s15316_s2] sm:$0x7]  ;;  %1296 = vrot.lane.b32.xlu1 %v12926_v0, %s12934_s22  ;;  %v12001_v14 = vld.sshfl [vmem:[%s15317_s0 + $0x4] sm:$0x13 pattern:$0x75316420] }
   0x3   :  { %v12011_v2 = vcombine.low %v170_v1, %v170_v1  ;;  %v12928_v3 = vld [vmem:[%s15316_s2] ss:$0 sps:$4 sm:$0x77]   ;;  %12877 = vmatprep.subr.msk.bf16.mxu1 %vm290_vm0, %v170_v1  ;;  %v40_v10 = vunpack.c.0.s8 %v39_v5  ;;  %v451_v11 = vsel %vm290_vm0, %v170_v1, 0  ;;  %v42_v16 = vshrl.u32 %v41_v7, 7  ;;  %s12939_s19 = smov 116  }
   0x4   :  { %v12929_v6 = vld [vmem:[%s15316_s2] ss:$0 sps:$4 sm:$0x77]   ;;  %12637 = vmatpush3.bf16.msra.mxu1 %v451_v11  ;;  %v60_v18 = vcombine.high %v12001_v14, %v12001_v14  ;;  %s12940_s24 = smov 118   ;;  %s12941_s26 = smov 112   ;;  %vm4028_vm8 = vcmask 26624  }
   0x5   :  { %281 = vrot.lane.b32.xlu0 %v12011_v2, %s12936_s25  ;;  %v12930_v8 = vld [vmem:[%s15316_s2] ss:$0 sps:$4 sm:$0x77]   ;;  %v13011_v21 = vsub.s32 %v40_v10, %v42_v16  ;;  %s12942_s27 = smov 114   ;;  %v13083_v47 = vld [vmem:[%s15318_s1 + $0x14] sm:$0x7] }
   0x6   :  { %1675 = vrot.lane.b32.xlu1 %v12928_v3, %s12937_s28  ;;  %v12931_v9 = vld [vmem:[%s15316_s2] ss:$0 sps:$4 sm:$0x77]   ;;  %v13116_v60 = vsel %vm290_vm0, %v13083_v47, 0  ;;  %vm5241_vm3 = vsmask.f32 3328 }
   0x7   :  { %v12000_v12 = vld.sshfl [vmem:[%s15317_s0] sm:$0x13 pattern:$0x75316420]  ;;  %v13027_v28 = vrot.slane %v12001_v14, %v13011_v21  ;;  %v13030_v29 = vrot.slane %v60_v18, %v13011_v21  ;;  %vm13678_vm4 = vmand %vm5240_vm2, %vm5241_vm3  ;;  %vm4029_vm9 = vsmask.f32 2304 }
   0x8   :  { %v12933_v13 = vld [vmem:[%s15316_s2] ss:$0 sps:$4 sm:$0x77]   ;;  %v37_v15 = vcombine.high %v12000_v12, %v12000_v12  ;;  %v13021_v26 = vrot.slane %v12000_v12, %v13011_v21  ;;  %vm13793_vm13 = vmand %vm4028_vm8, %vm4029_vm9 }
   0x9   :  { %870 = vrot.lane.b32.xlu0 %v12929_v6, %s12938_s10  ;;  %v12002_v17 = vld.sshfl [vmem:[%s15317_s0 + $0x8] sm:$0x13 pattern:$0x75316420]  ;;  %v171_v19 = vld [vmem:[%s15318_s1] sm:$0x7]  ;;  %v13053_v36 = vcombine.high %v13027_v28, %v13027_v28  ;;  %v151_v37 = vunpack.i.h.s16 %v13027_v28  ;;  %v153_v38 = vunpack.i.h.s16 %v13030_v29 }
   0xa   :  { %2707 = vrot.lane.b32.xlu1 %v12931_v9, %s12939_s19  ;;  %v12003_v20 = vld.sshfl [vmem:[%s15317_s0 + $0xc] sm:$0x13 pattern:$0x75316420]  ;;  %v83_v22 = vcombine.high %v12002_v17, %v12002_v17  ;;  %12879 = vmatprep.subr.msk.bf16.mxu1 %vm290_vm0, %v171_v19  ;;  %v13018_v25 = vsel %vm290_vm0, %v171_v19, 0  ;;  %v13024_v27 = vrot.slane %v37_v15, %v13011_v21  ;;  %v13036_v31 = vrot.slane %v12002_v17, %v13011_v21 }
   0xb   :  { %v12932_v23 = vld [vmem:[%s15316_s2] ss:$0 sps:$4 sm:$0x77]   ;;  %v106_v24 = vcombine.high %v12003_v20, %v12003_v20  ;;  %v13042_v33 = vrot.slane %v12003_v20, %v13011_v21  ;;  %v13049_v35 = vcombine.high %v13021_v26, %v13021_v26  ;;  %v13072_v44 = vpack.i.b16 %v13030_v29, %v151_v37 }
   0xc   :  { %v12004_v30 = vld.sshfl [vmem:[%s15317_s0 + $0x10] sm:$0x13 pattern:$0x75316420]  ;;  %v13039_v32 = vrot.slane %v83_v22, %v13011_v21  ;;  %v13059_v39 = vcombine.high %v13036_v31, %v13036_v31  ;;  %v356_v40 = vcombine.low %v13021_v26, %v13024_v27  ;;  %v13075_v45 = vpack.i.b16 %v13053_v36, %v153_v38 }
   0xd   :  { %2223 = vrot.lane.b32.xlu0 %v12930_v8, %s12940_s24  ;;  %v13045_v34 = vrot.slane %v106_v24, %v13011_v21  ;;  %v13065_v41 = vcombine.high %v13042_v33, %v13042_v33  ;;  %v129_v42 = vcombine.high %v12004_v30, %v12004_v30  ;;  %v12014_v43 = vpack.i.b16 %v13027_v28, %v13049_v35  ;;  %v12028_v56 = vld.sshfl [vmem:[%s15317_s0] sm:$0x32 pattern:$0x75316420] }
   0xe   :  { %3524 = vrot.lane.b32.xlu1 %v12933_v13, %s12941_s26  ;;  %v13078_v46 = vrot.slane %v12004_v30, %v13011_v21  ;;  %v13087_v48 = vpack.i.b16 %v13042_v33, %v13059_v39  ;;  %v366_v49 = vrot.slane %v356_v40, %v13011_v21  ;;  %v161_v51 = vunpack.i.h.s16 %v13042_v33  ;;  %v12029_v61 = vld.sshfl [vmem:[%s15317_s0 + $0x4] sm:$0x32 pattern:$0x75316420] }
   0xf   :  { %v13091_v50 = vrot.slane %v129_v42, %v13011_v21  ;;  %v357_v52 = vcombine.low %v12014_v43, %v13072_v44  ;;  %v358_v53 = vcombine.low %v13075_v45, %v13036_v31  ;;  %v163_v55 = vunpack.i.h.s16 %v13045_v34  ;;  %v12030_v9 = vld.sshfl [vmem:[%s15317_s0 + $0x8] sm:$0x32 pattern:$0x75316420] }
  0x10   :  { %v13099_v54 = vcombine.high %v13078_v46, %v13078_v46  ;;  %v359_v57 = vcombine.low %v13039_v32, %v13087_v48  ;;  %v13110_v58 = vpack.i.b16 %v13045_v34, %v161_v51  ;;  %v627_v4 = vcombine.high %v12028_v56, %v12028_v56  ;;  %v12031_v12 = vld.sshfl [vmem:[%s15317_s0 + $0xc] sm:$0x32 pattern:$0x75316420] }
  0x11   :  { %3084 = vrot.lane.b32.xlu0 %v12932_v23, %s12942_s27  ;;  %v406_v59 = vcombine.low %v13078_v46, %v13091_v50  ;;  %v373_v62 = vrot.slane %v357_v52, %v13011_v21  ;;  %v380_v63 = vrot.slane %v358_v53, %v13011_v21  ;;  %v13125_v1 = vpack.i.b16 %v13065_v41, %v163_v55  ;;  %v12032_v55 = vld.sshfl [vmem:[%s15317_s0 + $0x10] sm:$0x32 pattern:$0x75316420] }
  0x12   :  { %v169_v0 = vunpack.i.l.s16 %v13099_v54  ;;  %v387_v2 = vrot.slane %v359_v57, %v13011_v21  ;;  %v634_v5 = vrot.slane %v12028_v56, %v13011_v21  ;;  %v651_v10 = vcombine.high %v12029_v61, %v12029_v61 }
  0x13   :  { %v420_v3 = vrot.slane %v406_v59, %v13011_v21  ;;  %v388_v6 = vcombine.low %v366_v49, %v373_v62  ;;  %v405_v7 = vcombine.low %v13110_v58, %v13125_v1  ;;  %v641_v13 = vrot.slane %v627_v4, %v13011_v21 }
  0x14   :  { %v427_v8 = vrot.slane %v169_v0, %v13011_v21  ;;  %v389_v11 = vcombine.low %v380_v63, %v387_v2  ;;  %v642_v14 = vcombine.high %v634_v5, %v634_v5  ;;  %v658_v15 = vrot.slane %v12029_v61, %v13011_v21 }
  0x15   :  { %v396_v16 = vrot.slane %v388_v6, %v13011_v21  ;;  %v413_v17 = vrot.slane %v405_v7, %v13011_v21  ;;  %v13145_v19 = vrot.slane %v651_v10, %v13011_v21  ;;  %v643_v22 = vcombine.high %v641_v13, %v641_v13 }
  0x16   :  { %v442_v18 = vrot.slane %v427_v8, %v13011_v21  ;;  %v403_v20 = vrot.slane %v389_v11, %v13011_v21  ;;  %v13148_v23 = vcombine.high %v658_v15, %v658_v15  ;;  %v675_v24 = vcombine.high %v12030_v9, %v12030_v9 }
  0x17   :  { %v428_v30 = vcombine.low %v413_v17, %v420_v3  ;;  %v13152_v38 = vcombine.high %v13145_v19, %v13145_v19  ;;  %v682_v40 = vrot.slane %v12030_v9, %v13011_v21  ;;  %v699_v42 = vcombine.high %v12031_v12, %v12031_v12 }
  0x18   :  { %v404_v43 = vcombine.low %v396_v16, %v403_v20  ;;  %v13156_v49 = vrot.slane %v675_v24, %v13011_v21  ;;  %v746_v52 = vunpack.i.h.s16 %v13145_v19  ;;  %v748_v53 = vunpack.i.h.s16 %v13148_v23 }
  0x19   :  { %v435_v56 = vrot.slane %v428_v30, %v13011_v21  ;;  %v13164_v57 = vcombine.high %v682_v40, %v682_v40  ;;  %v13167_v59 = vrot.slane %v699_v42, %v13011_v21  ;;  %v12033_v61 = vpack.i.b16 %v13145_v19, %v643_v22 }
  0x1a   :  { %12638 = vmatprep.mubr.msk.bf16.mxu1 %vm283_vm1, %v404_v43  ;;  %v13173_v62 = vcombine.high %v13156_v49, %v13156_v49  ;;  %v12034_v63 = vpack.i.b16 %v13148_v23, %v746_v52  ;;  %v12035_v0 = vpack.i.b16 %v13152_v38, %v748_v53  ;;  %v779_v2 = vcombine.low %v641_v13, %v642_v14 }
  0x1b   :  { %v443_v3 = vcombine.low %v435_v56, %v442_v18  ;;  %v706_v4 = vrot.slane %v12031_v12, %v13011_v21  ;;  %v13180_v5 = vcombine.high %v13167_v59, %v13167_v59  ;;  %v723_v6 = vcombine.high %v12032_v55, %v12032_v55 }
  0x1c   :  { %v12036_v7 = vpack.i.b16 %v13167_v59, %v13173_v62  ;;  %v780_v8 = vcombine.low %v12033_v61, %v12034_v63  ;;  %v781_v9 = vcombine.low %v12035_v0, %v13156_v49  ;;  %v789_v10 = vrot.slane %v779_v2, %v13011_v21 }
  0x1d   :  { %12639 = vmatmul.mubr.msk.bf16.vlgmr.msra.gmra.mxu1 %vm283_vm1, %v443_v3  ;;  %v13187_v11 = vcombine.high %v706_v4, %v706_v4  ;;  %v730_v13 = vrot.slane %v12032_v55, %v13011_v21  ;;  %v13191_v12 = vrot.slane %v723_v6, %v13011_v21  ;;  %v756_v14 = vunpack.i.h.s16 %v13167_v59 }
  0x1e   :  { %12649 = vmatpush3.bf16.msra.mxu1 %v13018_v25  ;;  %12650 = vmatprep.mubr.msk.bf16.mxu1 %vm283_vm1, %v404_v43  ;;  %v782_v15 = vcombine.low %v13164_v57, %v12036_v7  ;;  %v796_v16 = vrot.slane %v780_v8, %v13011_v21  ;;  %v803_v17 = vrot.slane %v781_v9, %v13011_v21  ;;  %v146_v18 = vunpack.i.h.s16 %v13021_v26 }
  0x1f   :  { %12881 = vmatprep.subr.msk.bf16.mxu1 %vm290_vm0, %v13083_v47  ;;  %v13202_v20 = vcombine.high %v730_v13, %v730_v13  ;;  %v13206_v22 = vcombine.high %v13191_v12, %v13191_v12  ;;  %v758_v25 = vunpack.i.h.s16 %v13187_v11  ;;  %v12037_v24 = vpack.i.b16 %v13187_v11, %v756_v14 }
  0x20   :  { %v810_v30 = vrot.slane %v782_v15, %v13011_v21  ;;  %v811_v40 = vcombine.low %v789_v10, %v796_v16  ;;  %v148_v42 = vunpack.i.h.s16 %v13024_v27  ;;  %v156_v26 = vunpack.i.h.s16 %v13036_v31 }
  0x21   :  { %v764_v43 = vunpack.i.l.s16 %v13206_v22  ;;  %v12038_v47 = vpack.i.b16 %v13180_v5, %v758_v25  ;;  %v829_v52 = vcombine.low %v13191_v12, %v13202_v20  ;;  %v158_v53 = vunpack.i.h.s16 %v13039_v32 }
  0x22   :  { %v812_v55 = vcombine.low %v803_v17, %v810_v30  ;;  %v819_v56 = vrot.slane %v811_v40, %v13011_v21  ;;  %v172_v61 = vunpack.i.h.s16 %v13049_v35  ;;  %v174_v63 = vunpack.i.h.s16 %v13059_v39 }
  0x23   :  { %v828_v0 = vcombine.low %v12037_v24, %v12038_v47  ;;  %v843_v2 = vrot.slane %v829_v52, %v13011_v21  ;;  %v850_v4 = vrot.slane %v764_v43, %v13011_v21  ;;  %v12005_v6 = vpack.i.b16 %v13024_v27, %v146_v18 }
  0x24   :  { %v826_v7 = vrot.slane %v812_v55, %v13011_v21  ;;  %v12006_v8 = vpack.i.b16 %v13049_v35, %v148_v42  ;;  %v179_v9 = vpack.i.b16 %v151_v37, %v172_v61  ;;  %v12007_v10 = vpack.i.b16 %v13039_v32, %v156_v26 }
  0x25   :  { %12651 = vmatmul.mubr.msk.bf16.vlgmr.msra.gmra.mxu1 %vm283_vm1, %v443_v3  ;;  %v836_v13 = vrot.slane %v828_v0, %v13011_v21  ;;  %v865_v14 = vrot.slane %v850_v4, %v13011_v21  ;;  %v12008_v15 = vpack.i.b16 %v13059_v39, %v158_v53  ;;  %v184_v27 = vpack.i.b16 %v161_v51, %v174_v63 }
  0x26   :  { %12661 = vmatpush3.bf16.msra.mxu1 %v13116_v60  ;;  %v13238_v35 = vcombine.low %v819_v56, %v826_v7  ;;  %v190_v37 = vcombine.low %v12005_v6, %v12006_v8  ;;  %v191_v16 = vcombine.low %v179_v9, %v13030_v29  ;;  %v192_v17 = vcombine.low %v13053_v36, %v12007_v10 }
  0x27   :  { %v851_v18 = vcombine.low %v836_v13, %v843_v2  ;;  %v193_v3 = vcombine.low %v12008_v15, %v184_v27  ;;  %v12057_v25 = vpack.i.b16 %v13036_v31, %v13053_v36  ;;  %v12060_v24 = vpack.i.b16 %v13078_v46, %v13065_v41 }
  0x28   :  { %12662 = vmatprep.mubr.msk.bf16.mxu1 %vm283_vm1, %v13238_v35  ;;  %v200_v51 = vrot.slane %v190_v37, %v13011_v21  ;;  %v207_v60 = vrot.slane %v191_v16, %v13011_v21  ;;  %v214_v30 = vrot.slane %v192_v17, %v13011_v21  ;;  %v1205_v40 = vcombine.low %v13027_v28, %v13030_v29  ;;  %v12056_v29 = vld.sshfl [vmem:[%s15317_s0 + $0x14] sm:$0x13 pattern:$0x75316420] }
  0x29   :  { %v858_v42 = vrot.slane %v851_v18, %v13011_v21  ;;  %v221_v43 = vrot.slane %v193_v3, %v13011_v21  ;;  %v1206_v47 = vcombine.low %v12057_v25, %v12007_v10  ;;  %v1207_v52 = vcombine.low %v12008_v15, %v13042_v33 }
  0x2a   :  { %v222_v53 = vcombine.low %v200_v51, %v207_v60  ;;  %v1208_v55 = vcombine.low %v13045_v34, %v12060_v24  ;;  %v1215_v56 = vrot.slane %v1205_v40, %v13011_v21  ;;  %v166_v61 = vunpack.i.h.s16 %v13078_v46 }
  0x2b   :  { %v13259_v63 = vcombine.low %v858_v42, %v865_v14  ;;  %v223_v0 = vcombine.low %v214_v30, %v221_v43  ;;  %v1222_v2 = vrot.slane %v1206_v47, %v13011_v21  ;;  %v1229_v28 = vrot.slane %v1207_v52, %v13011_v21 }
  0x2c   :  { %v230_v33 = vrot.slane %v222_v53, %v13011_v21  ;;  %v1236_v4 = vrot.slane %v1208_v55, %v13011_v21  ;;  %v168_v6 = vunpack.i.h.s16 %v13091_v50  ;;  %v176_v7 = vunpack.i.h.s16 %v13099_v54 }
  0x2d   :  { %12663 = vmatmul.mubr.msk.bf16.vlgmr.msra.gmra.mxu1 %vm283_vm1, %v13259_v63  ;;  %v237_v8 = vrot.slane %v223_v0, %v13011_v21  ;;  %v1237_v9 = vcombine.low %v1215_v56, %v1222_v2  ;;  %v13274_v10 = vpack.i.b16 %v13091_v50, %v166_v61  ;;  %v239_v13 = vcombine.low %v13045_v34, %v13065_v41 }
  0x2e   :  { %v1238_v14 = vcombine.low %v1229_v28, %v1236_v4  ;;  %v13279_v15 = vpack.i.b16 %v13099_v54, %v168_v6  ;;  %v261_v27 = vrot.slane %v176_v7, %v13011_v21  ;;  %v1150_v37 = vcombine.high %v12056_v29, %v12056_v29 }
  0x2f   :  { %v13284_v16 = vcombine.low %v230_v33, %v237_v8  ;;  %v1245_v17 = vrot.slane %v1237_v9, %v13011_v21  ;;  %v13288_v18 = vrot.slane %v12056_v29, %v13011_v21  ;;  %v247_v25 = vrot.slane %v239_v13, %v13011_v21 }
  0x30   :  { %v1252_v3 = vrot.slane %v1238_v14, %v13011_v21  ;;  %v240_v34 = vcombine.low %v13274_v10, %v13279_v15  ;;  %v13295_v24 = vrot.slane %v1150_v37, %v13011_v21  ;;  %v276_v51 = vrot.slane %v261_v27, %v13011_v21 }
  0x31   :  { %12632 = vmatprep.mubr.msk.bf16.mxu0 %vm283_vm1, %v13284_v16  ;;  %v13302_v60 = vcombine.high %v13288_v18, %v13288_v18  ;;  %v1549_v30 = vunpack.i.h.s16 %v13053_v36  ;;  %v1559_v40 = vunpack.i.h.s16 %v13065_v41  ;;  %v1584_v52 = vcombine.low %v13072_v44, %v13075_v45 }
  0x32   :  { %v13306_v42 = vcombine.low %v1245_v17, %v1252_v3  ;;  %v254_v43 = vrot.slane %v240_v34, %v13011_v21  ;;  %v1255_v47 = vcombine.low %v13288_v18, %v13295_v24  ;;  %v1586_v36 = vcombine.low %v13059_v39, %v13110_v58 }
  0x33   :  { %v1190_v53 = vunpack.i.l.s16 %v13302_v60  ;;  %v1573_v55 = vpack.i.b16 %v156_v26, %v1549_v30  ;;  %v1578_v56 = vpack.i.b16 %v166_v61, %v1559_v40  ;;  %v1594_v2 = vrot.slane %v1584_v52, %v13011_v21  ;;  %v12110_v52 = vld.sshfl [vmem:[%s15317_s0 + $0x14] sm:$0x32 pattern:$0x75316420] }
  0x34   :  { %12674 = vmatprep.mubr.msk.bf16.mxu1 %vm283_vm1, %v13306_v42  ;;  %v262_v41 = vcombine.low %v247_v25, %v254_v43  ;;  %v1269_v0 = vrot.slane %v1255_v47, %v13011_v21  ;;  %v1565_v28 = vunpack.i.h.s16 %v13288_v18  ;;  %v1608_v61 = vrot.slane %v1586_v36, %v13011_v21 }
  0x35   :  { %v1276_v44 = vrot.slane %v1190_v53, %v13011_v21  ;;  %v1585_v45 = vcombine.low %v1573_v55, %v13039_v32  ;;  %v1587_v26 = vcombine.low %v13125_v1, %v1578_v56  ;;  %v1567_v33 = vunpack.i.h.s16 %v13295_v24 }
  0x36   :  { %v269_v39 = vrot.slane %v262_v41, %v13011_v21  ;;  %v1277_v29 = vcombine.low %v254_v43, %v1269_v0  ;;  %v1569_v4 = vunpack.i.h.s16 %v13302_v60  ;;  %v12084_v13 = vpack.i.b16 %v13295_v24, %v1565_v28 }
  0x37   :  { %v1291_v6 = vrot.slane %v1276_v44, %v13011_v21  ;;  %v1601_v8 = vrot.slane %v1585_v45, %v13011_v21  ;;  %v1615_v9 = vrot.slane %v1587_v26, %v13011_v21  ;;  %v12085_v37 = vpack.i.b16 %v13302_v60, %v1567_v33 }
  0x38   :  { %v13336_v14 = vcombine.low %v269_v39, %v276_v51  ;;  %v1284_v27 = vrot.slane %v1277_v29, %v13011_v21  ;;  %v1633_v17 = vcombine.low %v13091_v50, %v13099_v54  ;;  %v1655_v25 = vrot.slane %v1569_v4, %v13011_v21 }
  0x39   :  { %v1616_v3 = vcombine.low %v1594_v2, %v1601_v8  ;;  %v1617_v34 = vcombine.low %v1608_v61, %v1615_v9  ;;  %v1634_v40 = vcombine.low %v12084_v13, %v12085_v37  ;;  %v2099_v56 = vunpack.i.h.s16 %v13156_v49 }
  0x3a   :  { %v13343_v30 = vcombine.low %v1284_v27, %v1291_v6  ;;  %v1641_v43 = vrot.slane %v1633_v17, %v13011_v21  ;;  %v1670_v55 = vrot.slane %v1655_v25, %v13011_v21  ;;  %v2101_v41 = vunpack.i.h.s16 %v13164_v57 }
  0x3b   :  { %v1624_v47 = vrot.slane %v1616_v3, %v13011_v21  ;;  %v1631_v51 = vrot.slane %v1617_v34, %v13011_v21  ;;  %v13352_v53 = vrot.slane %v1634_v40, %v13011_v21  ;;  %v12111_v0 = vpack.i.b16 %v13156_v49, %v13152_v38 }
  0x3c   :  { %v12114_v2 = vpack.i.b16 %v13191_v12, %v13180_v5  ;;  %v12112_v45 = vpack.i.b16 %v13164_v57, %v2099_v56  ;;  %v2132_v26 = vcombine.low %v13145_v19, %v13148_v23  ;;  %v2076_v61 = vcombine.high %v12110_v52, %v12110_v52 }
  0x3d   :  { %v13356_v36 = vcombine.low %v1624_v47, %v1631_v51  ;;  %v1656_v44 = vcombine.low %v1641_v43, %v13352_v53  ;;  %v12113_v39 = vpack.i.b16 %v13173_v62, %v2101_v41  ;;  %v2083_v33 = vrot.slane %v12110_v52, %v13011_v21 }
  0x3e   :  { %v2135_v29 = vcombine.low %v13187_v11, %v12114_v2  ;;  %v2109_v4 = vunpack.i.h.s16 %v13191_v12  ;;  %v2133_v49 = vcombine.low %v12111_v0, %v12112_v45  ;;  %v2142_v5 = vrot.slane %v2132_v26, %v13011_v21 }
  0x3f   :  { %v1663_v38 = vrot.slane %v1656_v44, %v13011_v21  ;;  %v13374_v6 = vrot.slane %v2076_v61, %v13011_v21  ;;  %v2134_v57 = vcombine.low %v12113_v39, %v13167_v59  ;;  %v13378_v23 = vcombine.high %v2083_v33, %v2083_v33 }
  0x40   :  { %v2163_v19 = vrot.slane %v2135_v29, %v13011_v21  ;;  %v2111_v62 = vunpack.i.h.s16 %v13202_v20  ;;  %v2149_v8 = vrot.slane %v2133_v49, %v13011_v21  ;;  %v12115_v13 = vpack.i.b16 %v13202_v20, %v2109_v4 }
  0x41   :  { %v13381_v11 = vcombine.low %v1663_v38, %v1670_v55  ;;  %v13386_v9 = vcombine.high %v13374_v6, %v13374_v6  ;;  %v2156_v27 = vrot.slane %v2134_v57, %v13011_v21  ;;  %v2182_v37 = vcombine.low %v13374_v6, %v13378_v23 }
  0x42   :  { %v12116_v59 = vpack.i.b16 %v13206_v22, %v2111_v62  ;;  %v2164_v17 = vcombine.low %v2142_v5, %v2149_v8  ;;  %v12141_v51 = vpack.i.b16 %v13288_v18, %v13099_v54  ;;  %v2616_v52 = vcombine.low %v13036_v31, %v13039_v32 }
  0x43   :  { %v2117_v3 = vunpack.i.l.s16 %v13386_v9  ;;  %v2165_v34 = vcombine.low %v2156_v27, %v2163_v19  ;;  %v2196_v40 = vrot.slane %v2182_v37, %v13011_v21  ;;  %v2617_v41 = vcombine.low %v13087_v48, %v13110_v58  ;;  %v12155_v48 = vld.sshfl [vmem:[%s15317_s0 + $0x8] sm:$0x13 pattern:$0x75316420] }
  0x44   :  { %v2181_v25 = vcombine.low %v12115_v13, %v12116_v59  ;;  %v2172_v43 = vrot.slane %v2164_v17, %v13011_v21  ;;  %v2618_v0 = vcombine.low %v13125_v1, %v13078_v46  ;;  %v2619_v44 = vcombine.low %v13091_v50, %v12141_v51  ;;  %v12156_v50 = vld.sshfl [vmem:[%s15317_s0 + $0xc] sm:$0x13 pattern:$0x75316420] }
  0x45   :  { %v2203_v47 = vrot.slane %v2117_v3, %v13011_v21  ;;  %v2179_v55 = vrot.slane %v2165_v34, %v13011_v21  ;;  %v2626_v45 = vrot.slane %v2616_v52, %v13011_v21  ;;  %v2633_v31 = vrot.slane %v2617_v41, %v13011_v21  ;;  %v12180_v41 = vld.sshfl [vmem:[%s15317_s0 + $0x8] sm:$0x32 pattern:$0x75316420] }
  0x46   :  { %v2189_v56 = vrot.slane %v2181_v25, %v13011_v21  ;;  %v2640_v32 = vrot.slane %v2618_v0, %v13011_v21  ;;  %v2647_v39 = vrot.slane %v2619_v44, %v13011_v21  ;;  %v2846_v4 = vcombine.high %v12155_v48, %v12155_v48 }
  0x47   :  { %v2218_v2 = vrot.slane %v2203_v47, %v13011_v21  ;;  %v13410_v26 = vcombine.low %v2172_v43, %v2179_v55  ;;  %v2648_v58 = vcombine.low %v2626_v45, %v2633_v31  ;;  %v2853_v49 = vrot.slane %v12155_v48, %v13011_v21 }
  0x48   :  { %v2204_v61 = vcombine.low %v2189_v56, %v2196_v40  ;;  %v2649_v1 = vcombine.low %v2640_v32, %v2647_v39  ;;  %v2860_v5 = vrot.slane %v2846_v4, %v13011_v21  ;;  %v2869_v57 = vcombine.high %v12156_v50, %v12156_v50 }
  0x49   :  { %v2656_v33 = vrot.slane %v2648_v58, %v13011_v21  ;;  %v2876_v19 = vrot.slane %v12156_v50, %v13011_v21  ;;  %v2861_v8 = vcombine.high %v2853_v49, %v2853_v49  ;;  %v2954_v13 = vunpack.i.h.s16 %v2853_v49 }
  0x4a   :  { %v2211_v46 = vrot.slane %v2204_v61, %v13011_v21  ;;  %v2663_v38 = vrot.slane %v2649_v1, %v13011_v21  ;;  %v2956_v59 = vunpack.i.h.s16 %v2860_v5  ;;  %v2883_v37 = vrot.slane %v2869_v57, %v13011_v21 }
  0x4b   :  { %v2884_v27 = vcombine.high %v2876_v19, %v2876_v19  ;;  %v2958_v17 = vunpack.i.h.s16 %v2861_v8  ;;  %v2959_v3 = vunpack.i.h.s16 %v2876_v19  ;;  %v12160_v34 = vpack.i.b16 %v2860_v5, %v2954_v13 }
  0x4c   :  { %v13422_v29 = vcombine.low %v2211_v46, %v2218_v2  ;;  %v13429_v62 = vcombine.low %v2656_v33, %v2663_v38  ;;  %v12161_v25 = vpack.i.b16 %v2861_v8, %v2956_v59  ;;  %v2987_v47 = vpack.i.b16 %v1565_v28, %v176_v7 }
  0x4d   :  { %v2995_v40 = vcombine.low %v2884_v27, %v13274_v10  ;;  %v2982_v43 = vpack.i.b16 %v2959_v3, %v2958_v17  ;;  %v12181_v10 = vld.sshfl [vmem:[%s15317_s0 + $0xc] sm:$0x32 pattern:$0x75316420]  ;;  %v3281_v18 = vcombine.high %v12180_v41, %v12180_v41  ;;  %v3288_v28 = vrot.slane %v12180_v41, %v13011_v21 }
  0x4e   :  { %v2993_v51 = vcombine.low %v12160_v34, %v12161_v25  ;;  %v2996_v55 = vcombine.low %v13279_v15, %v2987_v47  ;;  %v3305_v44 = vcombine.high %v12181_v10, %v12181_v10  ;;  %v3312_v31 = vrot.slane %v12181_v10, %v13011_v21  ;;  %v12092_v10 = vld [vmem:[%s15318_s1 + $0x18] sm:$0x7] }
  0x4f   :  { %v2994_v52 = vcombine.low %v2982_v43, %v2883_v37  ;;  %v3017_v56 = vrot.slane %v2995_v40, %v13011_v21  ;;  %v3295_v45 = vrot.slane %v3281_v18, %v13011_v21  ;;  %v3296_v61 = vcombine.high %v3288_v28, %v3288_v28  ;;  %v12027_v28 = vld [vmem:[%s15318_s1 + $0x10] sm:$0x7] }
  0x50   :  { %v3003_v0 = vrot.slane %v2993_v51, %v13011_v21  ;;  %v3024_v7 = vrot.slane %v2996_v55, %v13011_v21  ;;  %v12188_v32 = vpack.i.b16 %v13374_v6, %v13206_v22  ;;  %v3319_v46 = vrot.slane %v3305_v44, %v13011_v21  ;;  %v12022_v51 = vld [vmem:[%s15318_s1 + $0x4] sm:$0x7] }
  0x51   :  { %v3010_v54 = vrot.slane %v2994_v52, %v13011_v21  ;;  %v3297_v58 = vcombine.high %v3295_v45, %v3295_v45  ;;  %v3320_v1 = vcombine.high %v3312_v31, %v3312_v31  ;;  %v3433_v49 = vcombine.low %v3295_v45, %v3296_v61  ;;  %v12137_v45 = vld.sshfl [vmem:[%s15317_s0 + $0x18] sm:$0x13 pattern:$0x75316420] }
  0x52   :  { %v3026_v2 = vcombine.low %v3017_v56, %v3024_v7  ;;  %v3436_v50 = vcombine.low %v13202_v20, %v12188_v32  ;;  %v3321_v4 = vcombine.high %v3319_v46, %v3319_v46  ;;  %v3400_v38 = vunpack.i.h.s16 %v3319_v46  ;;  %v12069_v7 = vld [vmem:[%s15318_s1 + $0x20] sm:$0x7] }
  0x53   :  { %v3025_v15 = vcombine.low %v3003_v0, %v3010_v54  ;;  %v3402_v5 = vunpack.i.h.s16 %v3320_v1  ;;  %v12185_v57 = vpack.i.b16 %v3319_v46, %v3297_v58  ;;  %v3443_v13 = vrot.slane %v3433_v49, %v13011_v21  ;;  %v12147_v49 = vld [vmem:[%s15318_s1 + $0x28] sm:$0x7] }
  0x54   :  { %v3040_v48 = vrot.slane %v3026_v2, %v13011_v21  ;;  %v12186_v19 = vpack.i.b16 %v3320_v1, %v3400_v38  ;;  %v3464_v59 = vrot.slane %v3436_v50, %v13011_v21  ;;  %v505_v56 = vsel %vm290_vm0, %v12022_v51, 0  ;;  %v12120_v2 = vld [vmem:[%s15318_s1 + $0x1c] sm:$0x7] }
  0x55   :  { %v3033_v39 = vrot.slane %v3025_v15, %v13011_v21  ;;  %v12187_v8 = vpack.i.b16 %v3321_v4, %v3402_v5  ;;  %v1800_v54 = vsel %vm290_vm0, %v12092_v10, 0  ;;  %v1910_v15 = vsel %vm290_vm0, %v12069_v7, 0 }
  0x56   :  { %v3434_v22 = vcombine.low %v12185_v57, %v12186_v19  ;;  %v989_v44 = vsel %vm290_vm0, %v12027_v28, 0  ;;  %v2561_v61 = vcombine.high %v12137_v45, %v12137_v45  ;;  %v2290_v31 = vsel %vm290_vm0, %v12120_v2, 0  ;;  %v12095_v19 = vld [vmem:[%s15318_s1 + $0x24] sm:$0x7] }
  0x57   :  { %v13457_v33 = vcombine.low %v3033_v39, %v3040_v48  ;;  %v3435_v27 = vcombine.low %v12187_v8, %v13191_v12  ;;  %v2568_v32 = vrot.slane %v12137_v45, %v13011_v21  ;;  %v12100_v39 = vld [vmem:[%s15318_s1 + $0x30] sm:$0x7]  ;;  %v12184_v8 = vld.sshfl [vmem:[%s15317_s0 + $0x18] sm:$0x32 pattern:$0x75316420] }
  0x58   :  { %v3450_v37 = vrot.slane %v3434_v22, %v13011_v21  ;;  %v2575_v48 = vrot.slane %v2561_v61, %v13011_v21  ;;  %v2400_v4 = vsel %vm290_vm0, %v12100_v39, 0 }
  0x59   :  { %v3457_v20 = vrot.slane %v3435_v27, %v13011_v21  ;;  %v2576_v46 = vcombine.high %v2568_v32, %v2568_v32  ;;  %v2974_v1 = vunpack.i.h.s16 %v2568_v32  ;;  %v3042_v27 = vcombine.low %v13295_v24, %v13302_v60  ;;  %v12169_v24 = vld [vmem:[%s15318_s1 + $0x2c] sm:$0x7] }
  0x5a   :  { %v3465_v17 = vcombine.low %v3443_v13, %v3450_v37  ;;  %v2666_v58 = vcombine.low %v2568_v32, %v2575_v48  ;;  %v2976_v50 = vunpack.i.h.s16 %v2575_v48  ;;  %v3377_v37 = vcombine.high %v12184_v8, %v12184_v8 }
  0x5b   :  { %v3466_v3 = vcombine.low %v3457_v20, %v3464_v59  ;;  %v2601_v38 = vunpack.i.l.s16 %v2576_v46  ;;  %v12164_v5 = vpack.i.b16 %v2575_v48, %v2974_v1  ;;  %v3384_v20 = vrot.slane %v12184_v8, %v13011_v21 }
  0x5c   :  { %v3473_v34 = vrot.slane %v3465_v17, %v13011_v21  ;;  %v12165_v57 = vpack.i.b16 %v2576_v46, %v2976_v50  ;;  %v3412_v17 = vunpack.i.h.s16 %v13378_v23  ;;  %v2978_v60 = vunpack.i.h.s16 %v2576_v46 }
  0x5d   :  { %v3480_v25 = vrot.slane %v3466_v3, %v13011_v21  ;;  %v2687_v22 = vrot.slane %v2601_v38, %v13011_v21  ;;  %v1858_v3 = vsel %vm290_vm0, %v12095_v19, 0 }
  0x5e   :  { %v3043_v59 = vcombine.low %v12164_v5, %v12165_v57 }
  0x5f   :  { %v13466_v40 = vcombine.low %v3473_v34, %v3480_v25  ;;  %v2774_v34 = vsel %vm290_vm0, %v12147_v49, 0  ;;  %v2702_v25 = vrot.slane %v2687_v22, %v13011_v21 }
  0x74   :  { %v1297_v43 = vpop.permute.xlu1 %1296 }
  0x75   :  { %v1305_v47 = vsel %vm290_vm0, %v1297_v43, 0  ;;  %12883 = vmatprep.subr.msk.bf16.mxu1 %vm290_vm0, %v1297_v43  ;;  %v3050_v43 = vrot.slane %v3042_v27, %v13011_v21 }
  0x76   :  { %12673 = vmatpush3.bf16.msra.mxu1 %v1305_v47  ;;  %v3057_v47 = vrot.slane %v3043_v59, %v13011_v21 }
  0x77   :  { %v282_v12 = vpop.permute.xlu0 %281 }
  0x78   :  { %12876 = vmatprep.subr.msk.bf16.mxu0 %vm290_vm0, %v282_v12  ;;  %v292_v52 = vsel %vm290_vm0, %v282_v12, 0  ;;  %v1676_v55 = vpop.permute.xlu1 %1675  ;;  %v3392_v12 = vcombine.high %v3384_v20, %v3384_v20 }
  0x79   :  { %12631 = vmatpush3.bf16.msra.mxu0 %v292_v52  ;;  %12675 = vmatmul.mubr.msk.bf16.vlgmr.msra.gmra.mxu1 %vm283_vm1, %v13343_v30  ;;  %v1684_v41 = vsel %vm290_vm0, %v1676_v55, 0  ;;  %v12190_v52 = vpack.i.b16 %v13386_v9, %v3412_v17 }
  0x7a   :  { %12878 = vmatprep.subr.msk.bf16.mxu0 %vm290_vm0, %v12022_v51  ;;  %12885 = vmatprep.subr.msk.bf16.mxu1 %vm290_vm0, %v1676_v55 }
  0x7b   :  { %v871_v0 = vpop.permute.xlu0 %870  ;;  %12686 = vmatprep.mubr.msk.bf16.mxu1 %vm283_vm1, %v13356_v36  ;;  %12685 = vmatpush3.bf16.msra.mxu1 %v1684_v41  ;;  %v3064_v41 = vrot.slane %v2978_v60, %v13011_v21 }
  0x7c   :  { %12633 = vmatmul.mubr.msk.bf16.vlgmr.msra.gmra.mxu0 %vm283_vm1, %v13336_v14  ;;  %12887 = vmatprep.subr.msk.bf16.mxu1 %vm290_vm0, %v12092_v10  ;;  %v879_v18 = vsel %vm290_vm0, %v871_v0, 0 }
  0x7d   :  { %12643 = vmatpush3.bf16.msra.mxu0 %v505_v56  ;;  %12644 = vmatprep.mubr.msk.bf16.mxu0 %vm283_vm1, %v13284_v16  ;;  %v2708_v56 = vpop.permute.xlu1 %2707 }
  0x7e   :  { %12880 = vmatprep.subr.msk.bf16.mxu0 %vm290_vm0, %v871_v0  ;;  %v2716_v46 = vsel %vm290_vm0, %v2708_v56, 0 }
  0x7f   :  { %v2224_v55 = vpop.permute.xlu0 %2223 }
  0x81   :  { %12687 = vmatmul.mubr.msk.bf16.vlgmr.msra.gmra.mxu1 %vm283_vm1, %v13381_v11 }
  0x82   :  { %12697 = vmatpush3.bf16.msra.mxu1 %v1800_v54  ;;  %12698 = vmatprep.mubr.msk.bf16.mxu1 %vm283_vm1, %v13356_v36 }
  0x83   :  { %12889 = vmatprep.subr.msk.bf16.mxu1 %vm290_vm0, %v12069_v7  ;;  %v3151_v7 = vsel %vm290_vm0, %v12169_v24, 0 }
  0x84   :  { %12645 = vmatmul.mubr.msk.bf16.vlgmr.msra.gmra.mxu0 %vm283_vm1, %v13336_v14 }
  0x85   :  { %12655 = vmatpush3.bf16.msra.mxu0 %v879_v18  ;;  %12656 = vmatprep.mubr.msk.bf16.mxu0 %vm283_vm1, %v13238_v35  ;;  %v12066_v35 = vld [vmem:[%s15318_s1 + $0x8] sm:$0x7] }
  0x86   :  { %12882 = vmatprep.subr.msk.bf16.mxu0 %vm290_vm0, %v12027_v28  ;;  %v3079_v28 = vrot.slane %v3064_v41, %v13011_v21  ;;  %v5258_v41 = vld [vmem:[#allocation2 + $0x14] sm:$0xf] }
  0x89   :  { %12699 = vmatmul.mubr.msk.bf16.vlgmr.msra.gmra.mxu1 %vm283_vm1, %v13381_v11 }
  0x8a   :  { %12709 = vmatpush3.bf16.msra.mxu1 %v1910_v15  ;;  %12710 = vmatprep.mubr.msk.bf16.mxu1 %vm283_vm1, %v13306_v42  ;;  %v3525_v15 = vpop.permute.xlu1 %3524 }
  0x8b   :  { %12891 = vmatprep.subr.msk.bf16.mxu1 %vm290_vm0, %v12120_v2  ;;  %v2232_v2 = vsel %vm290_vm0, %v2224_v55, 0 }
  0x8c   :  { %12657 = vmatmul.mubr.msk.bf16.vlgmr.msra.gmra.mxu0 %vm283_vm1, %v13259_v63  ;;  %v1363_v63 = vsel %vm290_vm0, %v12066_v35, 0 }
  0x8d   :  { %12667 = vmatpush3.bf16.msra.mxu0 %v989_v44  ;;  %12668 = vmatprep.mubr.msk.bf16.mxu0 %vm283_vm1, %v13284_v16  ;;  %v12089_v16 = vld [vmem:[%s15318_s1 + $0xc] sm:$0x7] }
  0x8e   :  { %12884 = vmatprep.subr.msk.bf16.mxu0 %vm290_vm0, %v12066_v35  ;;  %v12123_v35 = vld [vmem:[%s15318_s1 + $0x34] sm:$0x7] }
  0x8f   :  { %v2348_v48 = vsel %vm290_vm0, %v12123_v35, 0 }
  0x91   :  { %12711 = vmatmul.mubr.msk.bf16.vlgmr.msra.gmra.mxu1 %vm283_vm1, %v13343_v30 }
  0x92   :  { %12721 = vmatpush3.bf16.msra.mxu1 %v2290_v31  ;;  %12722 = vmatprep.mubr.msk.bf16.mxu1 %vm283_vm1, %v13410_v26 }
  0x93   :  { %12893 = vmatprep.subr.msk.bf16.mxu1 %vm290_vm0, %v12100_v39  ;;  %v3533_v39 = vsel %vm290_vm0, %v3525_v15, 0 }
  0x94   :  { %12669 = vmatmul.mubr.msk.bf16.vlgmr.msra.gmra.mxu0 %vm283_vm1, %v13336_v14  ;;  %v2680_v14 = vrot.slane %v2666_v58, %v13011_v21  ;;  %v3085_v58 = vpop.permute.xlu0 %3084 }
  0x95   :  { %12679 = vmatpush3.bf16.msra.mxu0 %v1363_v63  ;;  %12680 = vmatprep.mubr.msk.bf16.mxu0 %vm283_vm1, %v13306_v42  ;;  %v1742_v42 = vsel %vm290_vm0, %v12089_v16, 0  ;;  %v3093_v1 = vsel %vm290_vm0, %v3085_v58, 0 }
  0x96   :  { %12886 = vmatprep.subr.msk.bf16.mxu0 %vm290_vm0, %v12089_v16  ;;  %v2688_v13 = vcombine.low %v13352_v53, %v2680_v14 }
  0x98   :  { %v2695_v53 = vrot.slane %v2688_v13, %v13011_v21 }
  0x99   :  { %12723 = vmatmul.mubr.msk.bf16.vlgmr.msra.gmra.mxu1 %vm283_vm1, %v13422_v29 }
  0x9a   :  { %12733 = vmatpush3.bf16.msra.mxu1 %v2400_v4  ;;  %12734 = vmatprep.mubr.msk.bf16.mxu1 %vm283_vm1, %v13356_v36  ;;  %v2703_v9 = vcombine.low %v2695_v53, %v2702_v25 }
  0x9b   :  { %12895 = vmatprep.subr.msk.bf16.mxu1 %vm290_vm0, %v12147_v49 }
  0x9c   :  { %12681 = vmatmul.mubr.msk.bf16.vlgmr.msra.gmra.mxu0 %vm283_vm1, %v13343_v30  ;;  %v3410_v30 = vunpack.i.h.s16 %v13374_v6  ;;  %v3391_v6 = vrot.slane %v3377_v37, %v13011_v21 }
  0x9d   :  { %12691 = vmatpush3.bf16.msra.mxu0 %v1742_v42  ;;  %12692 = vmatprep.mubr.msk.bf16.mxu0 %vm283_vm1, %v13356_v36 }
  0x9e   :  { %12888 = vmatprep.subr.msk.bf16.mxu0 %vm290_vm0, %v12095_v19  ;;  %v12189_v51 = vpack.i.b16 %v13378_v23, %v3410_v30  ;;  %v3065_v23 = vcombine.low %v3050_v43, %v3057_v47  ;;  %v3393_v0 = vcombine.high %v3391_v6, %v3391_v6  ;;  %v3483_v54 = vcombine.low %v3391_v6, %v3392_v12  ;;  %v5246_v30 = vld [vmem:[#allocation2 + $0x4] sm:$0xf] }
  0x9f   :  { %v5247_v25 = vsel %vm13678_vm4, 0, %v5246_v30 }
  0xa0   :  { %v3482_v10 = vcombine.low %v12189_v51, %v12190_v52  ;;  %v3072_v18 = vrot.slane %v3065_v23, %v13011_v21  ;;  %v3497_v45 = vrot.slane %v3483_v54, %v13011_v21  ;;  %5248 = vst [vmem:[#allocation2 + $0x4] sm:$0xf] %v5247_v25 }
  0xa1   :  { %12735 = vmatmul.mubr.msk.bf16.vlgmr.msra.gmra.mxu1 %vm283_vm1, %v13381_v11 }
  0xa2   :  { %12745 = vmatpush3.bf16.msra.mxu1 %v2774_v34  ;;  %12746 = vmatprep.mubr.msk.bf16.mxu1 %vm283_vm1, %v13429_v62  ;;  %v3490_v44 = vrot.slane %v3482_v10, %v13011_v21  ;;  %v3080_v61 = vcombine.low %v3072_v18, %v3079_v28 }
  0xa3   :  { %12897 = vmatprep.subr.msk.bf16.mxu1 %vm290_vm0, %v12169_v24 }
  0xa4   :  { %12693 = vmatmul.mubr.msk.bf16.vlgmr.msra.gmra.mxu0 %vm283_vm1, %v13381_v11  ;;  %v3505_v32 = vcombine.low %v3490_v44, %v3497_v45 }
  0xa5   :  { %12703 = vmatpush3.bf16.msra.mxu0 %v1858_v3  ;;  %12704 = vmatprep.mubr.msk.bf16.mxu0 %vm283_vm1, %v13356_v36  ;;  %v3418_v36 = vunpack.i.l.s16 %v3393_v0  ;;  %v5259_v0 = vsel %vm13678_vm4, 0, %v5258_v41 }
  0xa6   :  { %12890 = vmatprep.subr.msk.bf16.mxu0 %vm290_vm0, %v2224_v55  ;;  %5260 = vst [vmem:[#allocation2 + $0x14] sm:$0xf] %v5259_v0 }
  0xa7   :  { %v3504_v31 = vrot.slane %v3418_v36, %v13011_v21  ;;  %v5249_v36 = vld [vmem:[#allocation2 + $0x8] sm:$0xf] }
  0xa9   :  { %12747 = vmatmul.mubr.msk.bf16.vlgmr.msra.gmra.mxu1 %vm283_vm1, %v2703_v9  ;;  %v3519_v63 = vrot.slane %v3504_v31, %v13011_v21 }
  0xaa   :  { %12757 = vmatpush3.bf16.msra.mxu1 %v3151_v7  ;;  %12758 = vmatprep.mubr.msk.bf16.mxu1 %vm283_vm1, %v13457_v33 }
  0xab   :  { %12899 = vmatprep.subr.msk.bf16.mxu1 %vm290_vm0, %v3525_v15 }
  0xac   :  { %12705 = vmatmul.mubr.msk.bf16.vlgmr.msra.gmra.mxu0 %vm283_vm1, %v13381_v11  ;;  %v3512_v11 = vrot.slane %v3505_v32, %v13011_v21 }
  0xad   :  { %12715 = vmatpush3.bf16.msra.mxu0 %v2232_v2  ;;  %12716 = vmatprep.mubr.msk.bf16.mxu0 %vm283_vm1, %v13410_v26 }
  0xae   :  { %12892 = vmatprep.subr.msk.bf16.mxu0 %vm290_vm0, %v12123_v35  ;;  %v3520_v16 = vcombine.low %v3512_v11, %v3519_v63  ;;  %v5250_v35 = vsel %vm13678_vm4, 0, %v5249_v36 }
  0xaf   :  { %5251 = vst [vmem:[#allocation2 + $0x8] sm:$0xf] %v5250_v35 }
  0xb1   :  { %12759 = vmatmul.mubr.msk.bf16.vlgmr.msra.gmra.mxu1 %vm283_vm1, %v3080_v61 }
  0xb2   :  { %12769 = vmatpush3.bf16.msra.mxu1 %v3533_v39  ;;  %12770 = vmatprep.mubr.msk.bf16.mxu1 %vm283_vm1, %v13466_v40 }
  0xb4   :  { %12717 = vmatmul.mubr.msk.bf16.vlgmr.msra.gmra.mxu0 %vm283_vm1, %v13422_v29 }
  0xb5   :  { %12727 = vmatpush3.bf16.msra.mxu0 %v2348_v48  ;;  %12728 = vmatprep.mubr.msk.bf16.mxu0 %vm283_vm1, %v13410_v26  ;;  %v12172_v26 = vld [vmem:[%s15318_s1 + $0x38] sm:$0x7]  ;;  %v5252_v48 = vld [vmem:[#allocation2 + $0xc] sm:$0xf] }
  0xb6   :  { %12894 = vmatprep.subr.msk.bf16.mxu0 %vm290_vm0, %v2708_v56 }
  0xb9   :  { %12771 = vmatmul.mubr.msk.bf16.vlgmr.msra.gmra.mxu1 %vm283_vm1, %v3520_v16 }
  0xbc   :  { %12729 = vmatmul.mubr.msk.bf16.vlgmr.msra.gmra.mxu0 %vm283_vm1, %v13422_v29  ;;  %v3209_v29 = vsel %vm290_vm0, %v12172_v26, 0 }
  0xbd   :  { %12739 = vmatpush3.bf16.msra.mxu0 %v2716_v46  ;;  %12740 = vmatprep.mubr.msk.bf16.mxu0 %vm283_vm1, %v13429_v62  ;;  %v12194_v62 = vld [vmem:[%s15318_s1 + $0x3c] sm:$0x7]  ;;  %v5255_v46 = vld [vmem:[#allocation2 + $0x10] sm:$0xf] }
  0xbe   :  { %12896 = vmatprep.subr.msk.bf16.mxu0 %vm290_vm0, %v3085_v58  ;;  %v3591_v50 = vsel %vm290_vm0, %v12194_v62, 0 }
  0xc4   :  { %12741 = vmatmul.mubr.msk.bf16.vlgmr.msra.gmra.mxu0 %vm283_vm1, %v2703_v9 }
  0xc5   :  { %12751 = vmatpush3.bf16.msra.mxu0 %v3093_v1  ;;  %12752 = vmatprep.mubr.msk.bf16.mxu0 %vm283_vm1, %v13457_v33 }
  0xc6   :  { %12898 = vmatprep.subr.msk.bf16.mxu0 %vm290_vm0, %v12172_v26 }
  0xcc   :  { %12753 = vmatmul.mubr.msk.bf16.vlgmr.msra.gmra.mxu0 %vm283_vm1, %v3080_v61 }
  0xcd   :  { %12763 = vmatpush3.bf16.msra.mxu0 %v3209_v29  ;;  %12764 = vmatprep.mubr.msk.bf16.mxu0 %vm283_vm1, %v13457_v33  ;;  %v5256_v29 = vsel %vm13678_vm4, 0, %v5255_v46 }
  0xce   :  { %12900 = vmatprep.subr.msk.bf16.mxu0 %vm290_vm0, %v12194_v62  ;;  %5257 = vst [vmem:[#allocation2 + $0x10] sm:$0xf] %v5256_v29 }
  0xd4   :  { %12765 = vmatmul.mubr.msk.bf16.vlgmr.msra.gmra.mxu0 %vm283_vm1, %v3080_v61 }
  0xd5   :  { %12775 = vmatpush3.bf16.msra.mxu0 %v3591_v50  ;;  %12776 = vmatprep.mubr.msk.bf16.mxu0 %vm283_vm1, %v13466_v40 }
  0xdc   :  { %12777 = vmatmul.mubr.msk.bf16.vlgmr.msra.gmra.mxu0 %vm283_vm1, %v3520_v16  ;;  %v5253_v16 = vsel %vm13678_vm4, 0, %v5252_v48 }
  0xdd   :  { %v12640_v4 = vpop.f32.mrf.mxu1  ;;  %5254 = vst [vmem:[#allocation2 + $0xc] sm:$0xf] %v5253_v16 }
  0xdf   :  { %v487_v38 = vpop.f32.mrf.mxu1 }
  0xe1   :  { %v12641_v49 = vpop.f32.mrf.mxu1 }
  0xe3   :  { %v490_v14 = vpop.f32.mrf.mxu1 }
  0xe5   :  { %v13662_v5 = vpop.f32.mrf.mxu1 }
  0xe7   :  { %v13664_v57 = vpop.f32.mrf.mxu1 }
  0xe9   :  { %v13666_v33 = vpop.f32.mrf.mxu1 }
  0xeb   :  { %v13668_v42 = vpop.f32.mrf.mxu1 }
  0xed   :  { %v13670_v19 = vpop.f32.mrf.mxu1 }
  0xef   :  { %v13672_v8 = vpop.f32.mrf.mxu1 }
  0xf1   :  { %v13674_v22 = vpop.f32.mrf.mxu1 }
  0xf3   :  { %v13676_v40 = vpop.f32.mrf.mxu1 }
 0x139   :  { %v12676_v13 = vpop.f32.mrf.mxu1 }
 0x13b   :  { %v1341_v59 = vpop.f32.mrf.mxu1 }
 0x13c   :  { %v12634_v27 = vpop.f32.mrf.mxu0 }
 0x13d   :  { %v12677_v20 = vpop.f32.mrf.mxu1  ;;  %v496_v56 = vadd.f32 %v12640_v4, %v12634_v27 }
 0x13e   :  { %v328_v37 = vpop.f32.mrf.mxu0 }
 0x13f   :  { %v1344_v34 = vpop.f32.mrf.mxu1  ;;  %v488_v10 = vadd.f32 %v487_v38, %v328_v37 }
 0x140   :  { %v12635_v3 = vpop.f32.mrf.mxu0 }
 0x141   :  { %v12688_v24 = vpop.f32.mrf.mxu1  ;;  %v499_v28 = vadd.f32 %v12641_v49, %v12635_v3 }
 0x142   :  { %v331_v53 = vpop.f32.mrf.mxu0 }
 0x143   :  { %v1720_v43 = vpop.f32.mrf.mxu1  ;;  %v491_v61 = vadd.f32 %v490_v14, %v331_v53 }
 0x144   :  { %v13684_v60 = vpop.f32.mrf.mxu0 }
 0x145   :  { %v12689_v6 = vpop.f32.mrf.mxu1 }
 0x146   :  { %v13686_v47 = vpop.f32.mrf.mxu0 }
 0x147   :  { %v1723_v51 = vpop.f32.mrf.mxu1 }
 0x148   :  { %v12647_v12 = vpop.f32.mrf.mxu0 }
 0x149   :  { %v12700_v55 = vpop.f32.mrf.mxu1 }
 0x14a   :  { %v13688_v52 = vpop.f32.mrf.mxu0 }
 0x14b   :  { %v1836_v9 = vpop.f32.mrf.mxu1 }
 0x14c   :  { %v12658_v23 = vpop.f32.mrf.mxu0 }
 0x14d   :  { %v932_v54 = vadd.f32 %v12658_v23, %v496_v56  ;;  %v12701_v18 = vpop.f32.mrf.mxu1 }
 0x14e   :  { %v915_v7 = vpop.f32.mrf.mxu0 }
 0x14f   :  { %v1358_v15 = vadd.f32 %v12676_v13, %v932_v54  ;;  %v930_v2 = vadd.f32 %v915_v7, %v488_v10  ;;  %v1839_v45 = vpop.f32.mrf.mxu1 }
 0x150   :  { %v12659_v44 = vpop.f32.mrf.mxu0 }
 0x151   :  { %v1356_v31 = vadd.f32 %v1341_v59, %v930_v2  ;;  %v933_v32 = vadd.f32 %v12659_v44, %v499_v28  ;;  %v13694_v39 = vadd.f32 %v12688_v24, %v1358_v15  ;;  %v13696_v63 = vpop.f32.mrf.mxu1 }
 0x152   :  { %v918_v11 = vpop.f32.mrf.mxu0 }
 0x153   :  { %v1359_v58 = vadd.f32 %v12677_v20, %v933_v32  ;;  %v931_v1 = vadd.f32 %v918_v11, %v491_v61  ;;  %v13700_v26 = vadd.f32 %v1720_v43, %v1356_v31  ;;  %v13704_v50 = vpop.f32.mrf.mxu1 }
 0x154   :  { %v12670_v62 = vpop.f32.mrf.mxu0 }
 0x155   :  { %v1357_v4 = vadd.f32 %v1344_v34, %v931_v1  ;;  %v1034_v38 = vadd.f32 %v12670_v62, %v13670_v19  ;;  %v13707_v49 = vadd.f32 %v12689_v6, %v1359_v58  ;;  %v13709_v13 = vpop.f32.mrf.mxu1 }
 0x156   :  { %v1025_v14 = vpop.f32.mrf.mxu0 }
 0x157   :  { %v1026_v27 = vadd.f32 %v1025_v14, %v13672_v8  ;;  %v13712_v59 = vadd.f32 %v1723_v51, %v1357_v4  ;;  %v13714_v20 = vpop.f32.mrf.mxu1  ;;  %v1853_v30 = vadd.f32 %v12700_v55, %v1034_v38  ;;  %v602_v8 = vadd.f32 %v13662_v5, %v13684_v60 }
 0x158   :  { %v12671_v37 = vpop.f32.mrf.mxu0  ;;  %v594_v51 = vadd.f32 %v13664_v57, %v13686_v47  ;;  %v605_v55 = vadd.f32 %v13666_v33, %v12647_v12 }
 0x159   :  { %v1037_v3 = vadd.f32 %v12671_v37, %v13674_v22  ;;  %v12724_v53 = vpop.f32.mrf.mxu1  ;;  %v1851_v24 = vadd.f32 %v1836_v9, %v1026_v27  ;;  %v597_v9 = vadd.f32 %v13668_v42, %v13688_v52 }
 0x15a   :  { %v1028_v25 = vpop.f32.mrf.mxu0  ;;  %v2343_v34 = vadd.f32 %v12724_v53, %v1853_v30 }
 0x15b   :  { %v2326_v43 = vpop.f32.mrf.mxu1  ;;  %v1029_v6 = vadd.f32 %v1028_v25, %v13676_v40  ;;  %v1854_v23 = vadd.f32 %v12701_v18, %v1037_v3 }
 0x15c   :  { %v12682_v19 = vpop.f32.mrf.mxu0  ;;  %vm4048_vm5 = vcmp.ge.f32.partialorder %v2343_v34, 0.0  ;;  %v4052_v56 = vmul.f32 0.1, %v2343_v34  ;;  %v2341_v41 = vadd.f32 %v2326_v43, %v1851_v24 }
 0x15d   :  { %v12725_v0 = vpop.f32.mrf.mxu1  ;;  %v13725_v54 = vadd.f32 %v12682_v19, %v602_v8  ;;  %v1852_v12 = vadd.f32 %v1839_v45, %v1029_v6 }
 0x15e   :  { %v1399_v22 = vpop.f32.mrf.mxu0  ;;  %v4056_v10 = vsel %vm4048_vm5, %v2343_v34, %v4052_v56  ;;  %vm4046_vm6 = vcmp.ge.f32.partialorder %v2341_v41, 0.0  ;;  %v4050_v40 = vmul.f32 0.1, %v2341_v41  ;;  %v2344_v60 = vadd.f32 %v12725_v0, %v1854_v23 }
 0x15f   :  { %v4160_v7 = vcombine.high %v4056_v10, %v4056_v10  ;;  %v4167_v28 = vrot.slane %v4056_v10, %v13011_v21  ;;  %v2329_v15 = vpop.f32.mrf.mxu1  ;;  %v13728_v57 = vadd.f32 %v1399_v22, %v594_v51  ;;  %vm5690_vm5 = vcmask 10240  }
 0x160   :  { %v12683_v5 = vpop.f32.mrf.mxu0  ;;  %v4054_v33 = vsel %vm4046_vm6, %v2341_v41, %v4050_v40  ;;  %vm4049_vm7 = vcmp.ge.f32.partialorder %v2344_v60, 0.0  ;;  %v4053_v35 = vmul.f32 0.1, %v2344_v60  ;;  %v2342_v61 = vadd.f32 %v2329_v15, %v1852_v12 }
 0x161   :  { %v13730_v47 = vadd.f32 %v12683_v5, %v605_v55  ;;  %v4174_v18 = vrot.slane %v4160_v7, %v13011_v21  ;;  %v4175_v42 = vcombine.high %v4167_v28, %v4167_v28  ;;  %v13734_v52 = vrot.slane %v4167_v28, %v13011_v21 }
 0x162   :  { %v4062_v2 = vcombine.high %v4054_v33, %v4054_v33  ;;  %v1402_v36 = vpop.f32.mrf.mxu0  ;;  %v4069_v44 = vrot.slane %v4054_v33, %v13011_v21  ;;  %v4057_v1 = vsel %vm4049_vm7, %v2344_v60, %v4053_v35  ;;  %vm4047_vm10 = vcmp.ge.f32.partialorder %v2342_v61, 0.0  ;;  %v13770_v60 = vpop.f32.mrf.mxu1 }
 0x163   :  { %v4176_v31 = vcombine.high %v4174_v18, %v4174_v18  ;;  %v4197_v32 = vrot.slane %v4175_v42, %v13011_v21  ;;  %v4205_v48 = vcombine.high %v13734_v52, %v13734_v52  ;;  %v13740_v45 = vadd.f32 %v1402_v36, %v597_v9 }
 0x164   :  { %v12694_v11 = vpop.f32.mrf.mxu0  ;;  %v4190_v16 = vrot.slane %v4174_v18, %v13011_v21  ;;  %v4076_v46 = vrot.slane %v4062_v2, %v13011_v21  ;;  %v4077_v58 = vcombine.high %v4069_v44, %v4069_v44  ;;  %v4085_v38 = vrot.slane %v4069_v44, %v13011_v21 }
 0x165   :  { %v4204_v29 = vrot.slane %v4176_v31, %v13011_v21  ;;  %v4207_v62 = vcombine.high %v4197_v32, %v4197_v32  ;;  %v13745_v4 = vcombine.low %v4197_v32, %v4205_v48  ;;  %v4215_v3 = vrot.slane %v4057_v1, %v13011_v21 }
 0x166   :  { %v1778_v14 = vpop.f32.mrf.mxu0  ;;  %v4078_v27 = vcombine.high %v4076_v46, %v4076_v46  ;;  %v4092_v37 = vrot.slane %v4076_v46, %v13011_v21  ;;  %v4099_v30 = vrot.slane %v4077_v58, %v13011_v21  ;;  %v4051_v5 = vmul.f32 0.1, %v2342_v61  ;;  %v13786_v58 = vpop.f32.mrf.mxu1 }
 0x167   :  { %v13752_v25 = vrot.slane %v4207_v62, %v13011_v21  ;;  %v4379_v53 = vcombine.low %v4190_v16, %v4204_v29  ;;  %v12202_v34 = vcombine.high %v4190_v16, %v4204_v29  ;;  %v4355_v41 = vrot.slane %v13745_v4, %v13011_v21 }
 0x168   :  { %v12695_v24 = vpop.f32.mrf.mxu0  ;;  %v4106_v19 = vrot.slane %v4078_v27, %v13011_v21  ;;  %v4108_v43 = vcombine.high %v4092_v37, %v4092_v37  ;;  %v4223_v6 = vcombine.low %v4085_v38, %v4099_v30  ;;  %v12200_v56 = vcombine.high %v4085_v38, %v4099_v30  ;;  %v12211_v27 = vld [vmem:[%s15319_s4 + $0x24] sm:$0x7] }
 0x169   :  { %v4387_v8 = vrot.slane %v4379_v53, %v13011_v21  ;;  %v4394_v51 = vrot.slane %v12202_v34, %v13011_v21  ;;  %v4245_v55 = vrot.slane %v4092_v37, %v13011_v21  ;;  %v4222_v10 = vrot.slane %v4215_v3, %v13011_v21 }
 0x16a   :  { %v13760_v22 = vpop.f32.mrf.mxu0  ;;  %v4231_v23 = vrot.slane %v4223_v6, %v13011_v21  ;;  %v4238_v0 = vrot.slane %v12200_v56, %v13011_v21  ;;  %v13764_v9 = vcombine.low %v4106_v19, %v4108_v43  ;;  %v4377_v40 = vrot.slane %v13752_v25, %v13011_v21 }
 0x16b   :  { %v4402_v7 = vcombine.low %v4387_v8, %v4394_v51  ;;  %v4260_v28 = vrot.slane %v4245_v55, %v13011_v21  ;;  %v4401_v12 = vrot.slane %v4222_v10, %v13011_v21  ;;  %v4110_v18 = vcombine.high %v4106_v19, %v4106_v19 }
 0x16c   :  { %v13772_v15 = vpop.f32.mrf.mxu0  ;;  %v4246_v33 = vcombine.low %v4231_v23, %v4238_v0  ;;  %v1795_v42 = vadd.f32 %v12694_v11, %v13725_v54  ;;  %v4055_v36 = vsel %vm4047_vm10, %v2342_v61, %v4051_v5  ;;  %v4270_v44 = vrot.slane %v13764_v9, %v13011_v21  ;;  %v13814_v0 = vpop.f32.mrf.mxu1 }
 0x16d   :  { %v4409_v2 = vrot.slane %v4402_v7, %v13011_v21  ;;  %v1793_v35 = vadd.f32 %v1778_v14, %v13728_v57  ;;  %v4416_v48 = vrot.slane %v4401_v12, %v13011_v21  ;;  %v4111_v16 = vcombine.high %v4055_v36, %v4055_v36  ;;  %v12203_v14 = vld [vmem:[%s15319_s4 + $0x14] sm:$0x7] }
 0x16e   :  { %v13781_v31 = vpop.f32.mrf.mxu0  ;;  %v4253_v32 = vrot.slane %v4246_v33, %v13011_v21  ;;  %v4118_v46 = vrot.slane %v4055_v36, %v13011_v21  ;;  %vm3648_vm11 = vcmp.ge.f32.partialorder %v1795_v42, 0.0  ;;  %v3652_v54 = vmul.f32 0.1, %v1795_v42 }
 0x16f   :  { %vm3646_vm12 = vcmp.ge.f32.partialorder %v1793_v35, 0.0  ;;  %v3650_v11 = vmul.f32 0.1, %v1793_v35  ;;  %v4417_v29 = vcombine.low %v4409_v2, %v4416_v48  ;;  %v4125_v57 = vrot.slane %v4111_v16, %v13011_v21 }
 0x170   :  { %v13788_v61 = vpop.f32.mrf.mxu0  ;;  %v4261_v1 = vcombine.low %v4253_v32, %v4260_v28  ;;  %v4126_v62 = vcombine.high %v4118_v46, %v4118_v46  ;;  %v4134_v37 = vrot.slane %v4118_v46, %v13011_v21  ;;  %v3656_v30 = vsel %vm3648_vm11, %v1795_v42, %v3652_v54  ;;  %v13837_v54 = vpop.f32.mrf.mxu1 }
 0x171   :  { %v13804_v3 = vsel %vm3646_vm12, %v1793_v35, %v3650_v11  ;;  %v13807_v53 = vadd.f32 %v12695_v24, %v13730_v47  ;;  %v4427_v43 = vpack.c.bf16 %v4417_v29, %v4417_v29  ;;  %v4127_v6 = vcombine.high %v4125_v57, %v4125_v57 }
 0x172   :  { %v13809_v34 = vpop.f32.mrf.mxu0  ;;  %v4423_v19 = vpack.c.bf16 %v4261_v1, %v4261_v1  ;;  %v4141_v56 = vrot.slane %v4125_v57, %v13011_v21  ;;  %v4148_v8 = vrot.slane %v4126_v62, %v13011_v21  ;;  %v4263_v51 = vcombine.low %v4110_v18, %v4134_v37 }
 0x173   :  { %v3760_v55 = vcombine.high %v3656_v30, %v3656_v30  ;;  %v3767_v23 = vrot.slane %v3656_v30, %v13011_v21  ;;  %v4442_v24 = vsel %vm13793_vm13, %v4427_v43, %v12211_v27  ;;  %v4155_v10 = vrot.slane %v4127_v6, %v13011_v21 }
 0x174   :  { %v13816_v9 = vpop.f32.mrf.mxu0  ;;  %v4430_v47 = vsel %vm13793_vm13, %v4423_v19, %v12203_v14  ;;  %v4157_v7 = vcombine.high %v4141_v56, %v4141_v56  ;;  %12212 = vst [vmem:[%s15319_s4 + $0x24] sm:$0x7] %v4442_v24  ;;  %v4277_v28 = vrot.slane %v4263_v51, %v13011_v21  ;;  %v4284_v5 = vrot.slane %v4148_v8, %v13011_v21 }
 0x175   :  { %12204 = vst [vmem:[%s15319_s4 + $0x14] sm:$0x7] %v4430_v47  ;;  %v12201_v33 = vcombine.high %v4134_v37, %v4148_v8  ;;  %v3774_v12 = vrot.slane %v3760_v55, %v13011_v21  ;;  %v4159_v42 = vcombine.high %v4155_v10, %v4155_v10  ;;  %v4302_v2 = vcombine.low %v4141_v56, %v4155_v10 }
 0x176   :  { %v13832_v18 = vpop.f32.mrf.mxu0  ;;  %v4323_v36 = vrot.slane %v4157_v7, %v13011_v21  ;;  %v3775_v35 = vcombine.high %v3767_v23, %v3767_v23  ;;  %v4285_v32 = vcombine.low %v4270_v44, %v4277_v28  ;;  %v4299_v48 = vrot.slane %v4284_v5, %v13011_v21  ;;  %v12205_v7 = vld [vmem:[%s15319_s4 + $0x18] sm:$0x7] }
 0x177   :  { %v4309_v16 = vrot.slane %v12201_v33, %v13011_v21  ;;  %v3776_v46 = vcombine.high %v3774_v12, %v3774_v12  ;;  %v4316_v1 = vrot.slane %v4302_v2, %v13011_v21  ;;  %v4340_v57 = vcombine.low %v4159_v42, %v13734_v52 }
 0x178   :  { %v13839_v11 = vpop.f32.mrf.mxu0  ;;  %v4338_v29 = vrot.slane %v4323_v36, %v13011_v21  ;;  %v13845_v62 = vrot.slane %v3767_v23, %v13011_v21  ;;  %v4292_v44 = vrot.slane %v4285_v32, %v13011_v21  ;;  %v3790_v14 = vrot.slane %v3774_v12, %v13011_v21  ;;  %v13858_v23 = vpop.f32.mrf.mxu1  ;;  %v12207_v32 = vld [vmem:[%s15319_s4 + $0x1c] sm:$0x7] }
 0x179   :  { %v3797_v27 = vrot.slane %v3775_v35, %v13011_v21  ;;  %v3804_v37 = vrot.slane %v3776_v46, %v13011_v21  ;;  %v4324_v19 = vcombine.low %v4309_v16, %v4316_v1  ;;  %v4348_v43 = vrot.slane %v4340_v57, %v13011_v21 }
 0x17a   :  { %v13851_v30 = vpop.f32.mrf.mxu0  ;;  %v3805_v6 = vcombine.high %v13845_v62, %v13845_v62  ;;  %v3662_v52 = vcombine.high %v13804_v3, %v13804_v3  ;;  %v4300_v56 = vcombine.low %v4292_v44, %v4299_v48  ;;  %v3669_v5 = vrot.slane %v13804_v3, %v13011_v21  ;;  %v2810_v1 = vpop.f32.mrf.mxu1 }
 0x17b   :  { %v3807_v8 = vcombine.high %v3797_v27, %v3797_v27  ;;  %v3979_v51 = vcombine.low %v3790_v14, %v3804_v37  ;;  %v12199_v55 = vcombine.high %v3790_v14, %v3804_v37  ;;  %v4331_v24 = vrot.slane %v4324_v19, %v13011_v21 }
 0x17c   :  { %v13860_v47 = vpop.f32.mrf.mxu0  ;;  %v4363_v10 = vcombine.low %v4348_v43, %v4355_v41  ;;  %v13869_v28 = vcombine.low %v3797_v27, %v3805_v6  ;;  %v4424_v33 = vpack.c.bf16 %v4300_v56, %v4300_v56  ;;  %v3676_v41 = vrot.slane %v3662_v52, %v13011_v21  ;;  %v12209_v27 = vld [vmem:[%s15319_s4 + $0x20] sm:$0x7] }
 0x17d   :  { %v13874_v12 = vrot.slane %v3807_v8, %v13011_v21  ;;  %v3987_v42 = vrot.slane %v3979_v51, %v13011_v21  ;;  %v3994_v2 = vrot.slane %v12199_v55, %v13011_v21  ;;  %v4339_v36 = vcombine.low %v4331_v24, %v4338_v29 }
 0x17e   :  { %v4370_v4 = vrot.slane %v4363_v10, %v13011_v21  ;;  %vm3649_vm14 = vcmp.ge.f32.partialorder %v13807_v53, 0.0  ;;  %v13881_v35 = vpop.f32.mrf.mxu0  ;;  %v4433_v3 = vsel %vm13793_vm13, %v4424_v33, %v12205_v7  ;;  %v3955_v48 = vrot.slane %v13869_v28, %v13011_v21  ;;  %v12749_v7 = vpop.f32.mrf.mxu1 }
 0x17f   :  { %v3977_v16 = vrot.slane %v13874_v12, %v13011_v21  ;;  %v3677_v46 = vcombine.high %v3669_v5, %v3669_v5  ;;  %v4425_v57 = vpack.c.bf16 %v4339_v36, %v4339_v36  ;;  %12206 = vst [vmem:[%s15319_s4 + $0x18] sm:$0x7] %v4433_v3  ;;  %v4002_v44 = vcombine.low %v3987_v42, %v3994_v2 }
 0x180   :  { %v4378_v29 = vcombine.low %v4370_v4, %v4377_v40  ;;  %v3678_v14 = vcombine.high %v3676_v41, %v3676_v41  ;;  %v3685_v37 = vrot.slane %v3669_v5, %v13011_v21  ;;  %v3692_v19 = vrot.slane %v3676_v41, %v13011_v21  ;;  %v13910_v8 = vpop.f32.mrf.mxu0 }
 0x181   :  { %v3699_v43 = vrot.slane %v3677_v46, %v13011_v21  ;;  %v3653_v25 = vmul.f32 0.1, %v13807_v53  ;;  %v4436_v6 = vsel %vm13793_vm13, %v4425_v57, %v12207_v32  ;;  %v1794_v56 = vadd.f32 %v13760_v22, %v13740_v45 }
 0x182   :  { %v4426_v40 = vpack.c.bf16 %v4378_v29, %v4378_v29  ;;  %v3706_v52 = vrot.slane %v3678_v14, %v13011_v21  ;;  %12208 = vst [vmem:[%s15319_s4 + $0x1c] sm:$0x7] %v4436_v6  ;;  %v3708_v51 = vcombine.high %v3692_v19, %v3692_v19  ;;  %v3845_v10 = vrot.slane %v3692_v19, %v13011_v21  ;;  %v13931_v32 = vpop.f32.mrf.mxu0 }
 0x183   :  { %v3823_v55 = vcombine.low %v3685_v37, %v3699_v43  ;;  %v12197_v24 = vcombine.high %v3685_v37, %v3699_v43  ;;  %v3657_v33 = vsel %vm3649_vm14, %v13807_v53, %v3653_v25  ;;  %vm3647_vm15 = vcmp.ge.f32.partialorder %v1794_v56, 0.0 }
 0x184   :  { %v4439_v5 = vsel %vm13793_vm13, %v4426_v40, %v12209_v27  ;;  %v3651_v45 = vmul.f32 0.1, %v1794_v56  ;;  %v3862_v2 = vcombine.low %v3706_v52, %v3708_v51  ;;  %v4009_v36 = vrot.slane %v4002_v44, %v13011_v21  ;;  %v2813_v27 = vpop.f32.mrf.mxu1 }
 0x185   :  { %12210 = vst [vmem:[%s15319_s4 + $0x20] sm:$0x7] %v4439_v5  ;;  %v3831_v22 = vrot.slane %v3823_v55, %v13011_v21  ;;  %v3838_v42 = vrot.slane %v12197_v24, %v13011_v21  ;;  %v3860_v4 = vrot.slane %v3845_v10, %v13011_v21  ;;  %v3815_v41 = vrot.slane %v3657_v33, %v13011_v21  ;;  %v13947_v55 = vpop.f32.mrf.mxu0 }
 0x186   :  { %v3655_v3 = vsel %vm3647_vm15, %v1794_v56, %v3651_v45  ;;  %v1955_v53 = vadd.f32 %v13696_v63, %v13772_v15  ;;  %v3710_v29 = vcombine.high %v3706_v52, %v3706_v52  ;;  %v3870_v44 = vrot.slane %v3862_v2, %v13011_v21  ;;  %v12760_v24 = vpop.f32.mrf.mxu1 }
 0x187   :  { %v3846_v46 = vcombine.low %v3831_v22, %v3838_v42  ;;  %v3711_v57 = vcombine.high %v3655_v3, %v3655_v3  ;;  %v3718_v14 = vrot.slane %v3655_v3, %v13011_v21  ;;  %v3822_v37 = vrot.slane %v3815_v41, %v13011_v21  ;;  %v13960_v3 = vpop.f32.mrf.mxu0 }
 0x188   :  { %v1947_v19 = vadd.f32 %v13704_v50, %v13781_v31  ;;  %v1958_v43 = vadd.f32 %v13709_v13, %v13788_v61  ;;  %v2827_v40 = vadd.f32 %v13858_v23, %v1955_v53  ;;  %v1950_v51 = vadd.f32 %v13714_v20, %v13809_v34  ;;  %v4031_v23 = vld [vmem:[%s15319_s4] sm:$0x7] }
 0x189   :  { %v3853_v63 = vrot.slane %v3846_v46, %v13011_v21  ;;  %v3725_v15 = vrot.slane %v3711_v57, %v13011_v21  ;;  %v3726_v25 = vcombine.high %v3718_v14, %v3718_v14  ;;  %v4001_v6 = vrot.slane %v3822_v37, %v13011_v21 }
 0x18a   :  { %v3734_v52 = vrot.slane %v3718_v14, %v13011_v21  ;;  %v2825_v56 = vadd.f32 %v2810_v1, %v1947_v19  ;;  %v2828_v1 = vadd.f32 %v12749_v7, %v1958_v43  ;;  %v13955_v33 = vadd.f32 %v2813_v27, %v1950_v51  ;;  %v4043_v7 = vld [vmem:[%s15319_s4 + $0x10] sm:$0x7]  ;;  %v3187_v19 = vpop.f32.mrf.mxu1 }
 0x18b   :  { %v3861_v50 = vcombine.low %v3853_v63, %v3860_v4  ;;  %v3727_v31 = vcombine.high %v3725_v15, %v3725_v15  ;;  %v3741_v13 = vrot.slane %v3725_v15, %v13011_v21  ;;  %v3748_v61 = vrot.slane %v3726_v25, %v13011_v21 }
 0x18c   :  { %v4016_v10 = vrot.slane %v4001_v6, %v13011_v21  ;;  %v3863_v5 = vcombine.low %v3710_v29, %v3734_v52  ;;  %v3204_v41 = vadd.f32 %v12760_v24, %v2827_v40  ;;  %v13969_v57 = vadd.f32 %v13816_v9, %v13694_v39  ;;  %v13983_v40 = vpop.f32.mrf.mxu0 }
 0x18d   :  { %v4023_v20 = vpack.c.bf16 %v3861_v50, %v3861_v50  ;;  %v3755_v34 = vrot.slane %v3727_v31, %v13011_v21  ;;  %v3757_v45 = vcombine.high %v3741_v13, %v3741_v13  ;;  %v3884_v22 = vrot.slane %v3748_v61, %v13011_v21 }
 0x18e   :  { %v4017_v42 = vcombine.low %v4009_v36, %v4016_v10  ;;  %v3877_v2 = vrot.slane %v3863_v5, %v13011_v21  ;;  %v12198_v4 = vcombine.high %v3734_v52, %v3748_v61  ;;  %vm4446_vm0 = vcmp.ge.f32.partialorder %v3204_v41, 0.0  ;;  %v4034_v10 = vld [vmem:[%s15319_s4 + $0x4] sm:$0x7]  ;;  %v12761_v5 = vpop.f32.mrf.mxu1 }
 0x18f   :  { %v4032_v53 = vsel %vm13793_vm13, %v4023_v20, %v4031_v23  ;;  %v3759_v46 = vcombine.high %v3755_v34, %v3755_v34  ;;  %v3902_v29 = vcombine.low %v3741_v13, %v3755_v34  ;;  %v3923_v37 = vrot.slane %v3757_v45, %v13011_v21 }
 0x190   :  { %4033 = vst [vmem:[%s15319_s4] sm:$0x7] %v4032_v53  ;;  %v4027_v36 = vpack.c.bf16 %v4017_v42, %v4017_v42  ;;  %v3885_v14 = vcombine.low %v3870_v44, %v3877_v2  ;;  %v3909_v27 = vrot.slane %v12198_v4, %v13011_v21  ;;  %v4450_v15 = vmul.f32 0.1, %v3204_v41  ;;  %v4037_v4 = vld [vmem:[%s15319_s4 + $0x8] sm:$0x7] }
 0x191   :  { %v3916_v43 = vrot.slane %v3902_v29, %v13011_v21  ;;  %v3940_v63 = vcombine.low %v3759_v46, %v13845_v62  ;;  %v3899_v25 = vrot.slane %v3884_v22, %v13011_v21  ;;  %v3938_v44 = vrot.slane %v3923_v37, %v13011_v21 }
 0x192   :  { %v4044_v39 = vsel %vm13793_vm13, %v4027_v36, %v4043_v7  ;;  %v3892_v9 = vrot.slane %v3885_v14, %v13011_v21  ;;  %v4454_v52 = vsel %vm4446_vm0, %v3204_v41, %v4450_v15  ;;  %v3202_v51 = vadd.f32 %v3187_v19, %v2825_v56  ;;  %v4040_v36 = vld [vmem:[%s15319_s4 + $0xc] sm:$0x7] }
 0x193   :  { %4045 = vst [vmem:[%s15319_s4 + $0x10] sm:$0x7] %v4044_v39  ;;  %v3924_v6 = vcombine.low %v3909_v27, %v3916_v43  ;;  %v3948_v62 = vrot.slane %v3940_v63, %v13011_v21  ;;  %v4558_v31 = vcombine.high %v4454_v52, %v4454_v52  ;;  %v4565_v13 = vrot.slane %v4454_v52, %v13011_v21  ;;  %v3190_v52 = vpop.f32.mrf.mxu1 }
 0x194   :  { %v3900_v50 = vcombine.low %v3892_v9, %v3899_v25  ;;  %v13992_v61 = vadd.f32 %v13832_v18, %v13700_v26  ;;  %vm4444_vm1 = vcmp.ge.f32.partialorder %v3202_v51, 0.0  ;;  %v4448_v56 = vmul.f32 0.1, %v3202_v51  ;;  %v14005_v18 = vpop.f32.mrf.mxu0 }
 0x195   :  { %v3931_v24 = vrot.slane %v3924_v6, %v13011_v21  ;;  %v3963_v23 = vcombine.low %v3948_v62, %v3955_v48  ;;  %v4572_v34 = vrot.slane %v4558_v31, %v13011_v21  ;;  %v4573_v45 = vcombine.high %v4565_v13, %v4565_v13 }
 0x196   :  { %v4024_v20 = vpack.c.bf16 %v3900_v50, %v3900_v50  ;;  %v14003_v26 = vrot.slane %v4565_v13, %v13011_v21  ;;  %v4452_v48 = vsel %vm4444_vm1, %v3202_v51, %v4448_v56  ;;  %v14010_v42 = vadd.f32 %v13839_v11, %v13707_v49 }
 0x197   :  { %v3939_v22 = vcombine.low %v3931_v24, %v3938_v44  ;;  %v3970_v28 = vrot.slane %v3963_v23, %v13011_v21  ;;  %v4574_v41 = vcombine.high %v4572_v34, %v4572_v34  ;;  %v4595_v53 = vrot.slane %v4573_v45, %v13011_v21 }
 0x198   :  { %v4035_v2 = vsel %vm13793_vm13, %v4024_v20, %v4034_v10  ;;  %v3205_v7 = vadd.f32 %v12761_v5, %v2828_v1  ;;  %v4603_v49 = vcombine.high %v14003_v26, %v14003_v26  ;;  %v4460_v11 = vcombine.high %v4452_v48, %v4452_v48 }
 0x199   :  { %v3978_v46 = vcombine.low %v3970_v28, %v3977_v16  ;;  %v4025_v29 = vpack.c.bf16 %v3939_v22, %v3939_v22  ;;  %4036 = vst [vmem:[%s15319_s4 + $0x4] sm:$0x7] %v4035_v2  ;;  %v4588_v14 = vrot.slane %v4572_v34, %v13011_v21  ;;  %v4602_v1 = vrot.slane %v4574_v41, %v13011_v21  ;;  %v14032_v16 = vpop.f32.mrf.mxu0 }
 0x19a   :  { %v4605_v27 = vcombine.high %v4595_v53, %v4595_v53  ;;  %v4467_v12 = vrot.slane %v4452_v48, %v13011_v21  ;;  %v14036_v43 = vcombine.low %v4595_v53, %v4603_v49  ;;  %v4474_v63 = vrot.slane %v4460_v11, %v13011_v21 }
 0x19b   :  { %v4026_v37 = vpack.c.bf16 %v3978_v46, %v3978_v46  ;;  %v4038_v19 = vsel %vm13793_vm13, %v4025_v29, %v4037_v4  ;;  %v4777_v39 = vcombine.low %v4588_v14, %v4602_v1  ;;  %v12215_v9 = vcombine.high %v4588_v14, %v4602_v1  ;;  %v3129_v24 = vpop.f32.mrf.mxu0 }
 0x19c   :  { %4039 = vst [vmem:[%s15319_s4 + $0x8] sm:$0x7] %v4038_v19  ;;  %v14043_v15 = vrot.slane %v4605_v27, %v13011_v21  ;;  %v4475_v25 = vcombine.high %v4467_v12, %v4467_v12  ;;  %v4753_v6 = vrot.slane %v14036_v43, %v13011_v21  ;;  %v4476_v62 = vcombine.high %v4474_v63, %v4474_v63 }
 0x19d   :  { %v4041_v44 = vsel %vm13793_vm13, %v4026_v37, %v4040_v36  ;;  %vm4447_vm2 = vcmp.ge.f32.partialorder %v3205_v7, 0.0  ;;  %v4785_v51 = vrot.slane %v4777_v39, %v13011_v21  ;;  %v4792_v50 = vrot.slane %v12215_v9, %v13011_v21  ;;  %v14067_v49 = vpop.f32.mrf.mxu0 }
 0x19e   :  { %4042 = vst [vmem:[%s15319_s4 + $0xc] sm:$0x7] %v4041_v44  ;;  %v4483_v31 = vrot.slane %v4467_v12, %v13011_v21  ;;  %v4490_v13 = vrot.slane %v4474_v63, %v13011_v21  ;;  %v4775_v23 = vrot.slane %v14043_v15, %v13011_v21  ;;  %v4497_v10 = vrot.slane %v4475_v25, %v13011_v21 }
 0x19f   :  { %v4504_v56 = vrot.slane %v4476_v62, %v13011_v21  ;;  %v4451_v5 = vmul.f32 0.1, %v3205_v7  ;;  %v4800_v20 = vcombine.low %v4785_v51, %v4792_v50  ;;  %v3203_v22 = vadd.f32 %v3190_v52, %v13955_v33 }
 0x1a0   :  { %v4506_v34 = vcombine.high %v4490_v13, %v4490_v13  ;;  %v4643_v45 = vrot.slane %v4490_v13, %v13011_v21  ;;  %v4621_v28 = vcombine.low %v4483_v31, %v4497_v10  ;;  %v12213_v48 = vcombine.high %v4483_v31, %v4497_v10  ;;  %v12224_v13 = vld [vmem:[%s15319_s4 + $0x38] sm:$0x7] }
 0x1a1   :  { %v4455_v2 = vsel %vm4447_vm2, %v3205_v7, %v4451_v5  ;;  %v2284_v4 = vadd.f32 %v13851_v30, %v13712_v59  ;;  %v4508_v29 = vcombine.high %v4504_v56, %v4504_v56  ;;  %vm4445_vm3 = vcmp.ge.f32.partialorder %v3203_v22, 0.0 }
 0x1a2   :  { %v4658_v41 = vrot.slane %v4643_v45, %v13011_v21  ;;  %v4660_v53 = vcombine.low %v4504_v56, %v4506_v34  ;;  %v4613_v46 = vrot.slane %v4455_v2, %v13011_v21  ;;  %v4629_v11 = vrot.slane %v4621_v28, %v13011_v21 }
 0x1a3   :  { %v4636_v36 = vrot.slane %v12213_v48, %v13011_v21  ;;  %v4449_v33 = vmul.f32 0.1, %v3203_v22  ;;  %v4807_v7 = vrot.slane %v4800_v20, %v13011_v21  ;;  %v14076_v30 = vadd.f32 %v13770_v60, %v13860_v47  ;;  %v12772_v60 = vpop.f32.mrf.mxu1  ;;  %v14092_v47 = vpop.f32.mrf.mxu0 }
 0x1a4   :  { %v4620_v14 = vrot.slane %v4613_v46, %v13011_v21  ;;  %v4668_v59 = vrot.slane %v4660_v53, %v13011_v21  ;;  %v14080_v12 = vadd.f32 %v13786_v58, %v13881_v35  ;;  %v14084_v37 = vadd.f32 %v13814_v0, %v13910_v8 }
 0x1a5   :  { %v4644_v1 = vcombine.low %v4629_v11, %v4636_v36  ;;  %v4453_v27 = vsel %vm4445_vm3, %v3203_v22, %v4449_v33  ;;  %v14090_v9 = vadd.f32 %v13837_v54, %v13931_v32  ;;  %v2769_v58 = vadd.f32 %v13947_v55, %v13969_v57  ;;  %v3569_v50 = vpop.f32.mrf.mxu1  ;;  %v14115_v31 = vpop.f32.mrf.mxu0 }
 0x1a6   :  { %v4799_v19 = vrot.slane %v4620_v14, %v13011_v21  ;;  %v4509_v63 = vcombine.high %v4453_v27, %v4453_v27  ;;  %v4516_v39 = vrot.slane %v4453_v27, %v13011_v21  ;;  %v2767_v0 = vadd.f32 %v13960_v3, %v13992_v61  ;;  %v12216_v3 = vld [vmem:[%s15319_s4 + $0x28] sm:$0x7] }
 0x1a7   :  { %v4651_v25 = vrot.slane %v4644_v1, %v13011_v21  ;;  %v14101_v35 = vadd.f32 %v13983_v40, %v14010_v42  ;;  %v14106_v44 = vadd.f32 %v14005_v18, %v2284_v4  ;;  %v3146_v55 = vadd.f32 %v14032_v16, %v2769_v58  ;;  %v14131_v46 = vpop.f32.mrf.mxu0 }
 0x1a8   :  { %v4814_v8 = vrot.slane %v4799_v19, %v13011_v21  ;;  %v4523_v54 = vrot.slane %v4509_v63, %v13011_v21  ;;  %v4524_v32 = vcombine.high %v4516_v39, %v4516_v39  ;;  %v4532_v52 = vrot.slane %v4516_v39, %v13011_v21 }
 0x1a9   :  { %v4659_v62 = vcombine.low %v4651_v25, %v4658_v41  ;;  %v3144_v57 = vadd.f32 %v3129_v24, %v2767_v0  ;;  %v3586_v24 = vadd.f32 %v12772_v60, %v3146_v55  ;;  %vm5691_vm6 = vsmask.f32 7938 }
 0x1aa   :  { %v4815_v40 = vcombine.low %v4807_v7, %v4814_v8  ;;  %v4525_v61 = vcombine.high %v4523_v54, %v4523_v54  ;;  %v4539_v42 = vrot.slane %v4523_v54, %v13011_v21  ;;  %v4546_v51 = vrot.slane %v4524_v32, %v13011_v21  ;;  %v14149_v8 = vpop.f32.mrf.mxu0  ;;  %vm14243_vm10 = vmand %vm5690_vm5, %vm5691_vm6 }
 0x1ab   :  { %v4821_v18 = vpack.c.bf16 %v4659_v62, %v4659_v62  ;;  %v4661_v16 = vcombine.low %v4508_v29, %v4532_v52  ;;  %v3584_v10 = vadd.f32 %v3569_v50, %v3144_v57  ;;  %v5366_v48 = vcombine.high %v3586_v24, %v3586_v24  ;;  %v12218_v57 = vld [vmem:[%s15319_s4 + $0x2c] sm:$0x7] }
 0x1ac   :  { %v4825_v56 = vpack.c.bf16 %v4815_v40, %v4815_v40  ;;  %v4553_v5 = vrot.slane %v4525_v61, %v13011_v21  ;;  %v4555_v20 = vcombine.high %v4539_v42, %v4539_v42  ;;  %v4682_v34 = vrot.slane %v4546_v51, %v13011_v21  ;;  %v3248_v43 = vpop.f32.mrf.mxu0 }
 0x1ad   :  { %v4828_v45 = vsel %vm13793_vm13, %v4821_v18, %v12216_v3  ;;  %v4675_v22 = vrot.slane %v4661_v16, %v13011_v21  ;;  %v12214_v28 = vcombine.high %v4532_v52, %v4546_v51  ;;  %v5373_v33 = vrot.slane %v3586_v24, %v13011_v21 }
 0x1ae   :  { %12217 = vst [vmem:[%s15319_s4 + $0x28] sm:$0x7] %v4828_v45  ;;  %v4840_v2 = vsel %vm13793_vm13, %v4825_v56, %v12224_v13  ;;  %v4557_v4 = vcombine.high %v4553_v5, %v4553_v5  ;;  %v4697_v41 = vrot.slane %v4682_v34, %v13011_v21  ;;  %v4700_v53 = vcombine.low %v4539_v42, %v4553_v5 }
 0x1af   :  { %12225 = vst [vmem:[%s15319_s4 + $0x38] sm:$0x7] %v4840_v2  ;;  %v4683_v29 = vcombine.low %v4668_v59, %v4675_v22  ;;  %v4707_v11 = vrot.slane %v12214_v28, %v13011_v21  ;;  %v4721_v36 = vrot.slane %v4555_v20, %v13011_v21  ;;  %v5380_v1 = vrot.slane %v5366_v48, %v13011_v21  ;;  %v12222_v48 = vld [vmem:[%s15319_s4 + $0x34] sm:$0x7] }
 0x1b0   :  { %v4714_v14 = vrot.slane %v4700_v53, %v13011_v21  ;;  %v4738_v7 = vcombine.low %v4557_v4, %v14003_v26  ;;  %v5268_v27 = vcombine.high %v3584_v10, %v3584_v10  ;;  %v5381_v39 = vcombine.high %v5373_v33, %v5373_v33 }
 0x1b1   :  { %v4690_v19 = vrot.slane %v4683_v29, %v13011_v21  ;;  %v4736_v63 = vrot.slane %v4721_v36, %v13011_v21  ;;  %v14145_v59 = vrot.slane %v5373_v33, %v13011_v21  ;;  %v5382_v58 = vcombine.high %v5380_v1, %v5380_v1 }
 0x1b2   :  { %v4722_v60 = vcombine.low %v4707_v11, %v4714_v14  ;;  %v4746_v25 = vrot.slane %v4738_v7, %v13011_v21  ;;  %v5396_v0 = vrot.slane %v5380_v1, %v13011_v21  ;;  %v5403_v54 = vrot.slane %v5381_v39, %v13011_v21  ;;  %v12778_v11 = vpop.f32.mrf.mxu0 }
 0x1b3   :  { %v4698_v26 = vcombine.low %v4690_v19, %v4697_v41  ;;  %v5411_v32 = vcombine.high %v14145_v59, %v14145_v59  ;;  %v5275_v62 = vrot.slane %v3584_v10, %v13011_v21  ;;  %v5410_v3 = vrot.slane %v5382_v58, %v13011_v21  ;;  %v12220_v10 = vld [vmem:[%s15319_s4 + $0x30] sm:$0x7] }
 0x1b4   :  { %v4729_v52 = vrot.slane %v4722_v60, %v13011_v21  ;;  %v4761_v55 = vcombine.low %v4746_v25, %v4753_v6  ;;  %v5282_v40 = vrot.slane %v5268_v27, %v13011_v21  ;;  %v5413_v42 = vcombine.high %v5403_v54, %v5403_v54 }
 0x1b5   :  { %v4822_v61 = vpack.c.bf16 %v4698_v26, %v4698_v26  ;;  %v14164_v51 = vcombine.low %v5403_v54, %v5411_v32  ;;  %v5283_v50 = vcombine.high %v5275_v62, %v5275_v62  ;;  %v5585_v16 = vcombine.low %v5396_v0, %v5410_v3 }
 0x1b6   :  { %v4737_v18 = vcombine.low %v4729_v52, %v4736_v63  ;;  %v4768_v13 = vrot.slane %v4761_v55, %v13011_v21  ;;  %v12241_v24 = vcombine.high %v5396_v0, %v5410_v3  ;;  %v14173_v56 = vrot.slane %v5413_v42, %v13011_v21  ;;  %v3627_v52 = vpop.f32.mrf.mxu0 }
 0x1b7   :  { %v4831_v6 = vsel %vm13793_vm13, %v4822_v61, %v12218_v57  ;;  %v5284_v5 = vcombine.high %v5282_v40, %v5282_v40  ;;  %v3147_v20 = vadd.f32 %v14067_v49, %v14101_v35  ;;  %v5593_v22 = vrot.slane %v5585_v16, %v13011_v21  ;;  %v12773_v35 = vpop.f32.mrf.mxu1 }
 0x1b8   :  { %v4776_v34 = vcombine.low %v4768_v13, %v4775_v23  ;;  %v4823_v45 = vpack.c.bf16 %v4737_v18, %v4737_v18  ;;  %12219 = vst [vmem:[%s15319_s4 + $0x2c] sm:$0x7] %v4831_v6  ;;  %v5600_v28 = vrot.slane %v12241_v24, %v13011_v21  ;;  %v5561_v49 = vrot.slane %v14164_v51, %v13011_v21 }
 0x1b9   :  { %v5291_v15 = vrot.slane %v5275_v62, %v13011_v21  ;;  %v5298_v23 = vrot.slane %v5282_v40, %v13011_v21  ;;  %v5305_v2 = vrot.slane %v5283_v50, %v13011_v21  ;;  %v5312_v29 = vrot.slane %v5284_v5, %v13011_v21  ;;  %v3572_v58 = vpop.f32.mrf.mxu1 }
 0x1ba   :  { %v4824_v4 = vpack.c.bf16 %v4776_v34, %v4776_v34  ;;  %v4834_v41 = vsel %vm13793_vm13, %v4823_v45, %v12220_v10  ;;  %v5608_v53 = vcombine.low %v5593_v22, %v5600_v28  ;;  %v5583_v27 = vrot.slane %v14173_v56, %v13011_v21 }
 0x1bb   :  { %12221 = vst [vmem:[%s15319_s4 + $0x30] sm:$0x7] %v4834_v41  ;;  %v5314_v36 = vcombine.high %v5298_v23, %v5298_v23  ;;  %v5429_v33 = vcombine.low %v5291_v15, %v5305_v2  ;;  %v12239_v14 = vcombine.high %v5291_v15, %v5305_v2  ;;  %v5451_v7 = vrot.slane %v5298_v23, %v13011_v21 }
 0x1bc   :  { %v4837_v1 = vsel %vm13793_vm13, %v4824_v4, %v12222_v48  ;;  %v3587_v19 = vadd.f32 %v12773_v35, %v3147_v20  ;;  %v3145_v63 = vadd.f32 %v14092_v47, %v14106_v44  ;;  %v5615_v0 = vrot.slane %v5608_v53, %v13011_v21 }
 0x1bd   :  { %12223 = vst [vmem:[%s15319_s4 + $0x34] sm:$0x7] %v4837_v1  ;;  %v5437_v39 = vrot.slane %v5429_v33, %v13011_v21  ;;  %v5444_v60 = vrot.slane %v12239_v14, %v13011_v21  ;;  %v5468_v25 = vcombine.low %v5312_v29, %v5314_v36  ;;  %v5466_v26 = vrot.slane %v5451_v7, %v13011_v21  ;;  %v5693_v1 = vld [vmem:[#allocation2 + $0x4] sm:$0x7] }
 0x1be   :  { %v5421_v54 = vrot.slane %v3587_v19, %v13011_v21  ;;  %v3585_v32 = vadd.f32 %v3572_v58, %v3145_v63  ;;  %v5316_v62 = vcombine.high %v5312_v29, %v5312_v29  ;;  %v3262_v55 = vadd.f32 %v14115_v31, %v14076_v30 }
 0x1bf   :  { %v5452_v47 = vcombine.low %v5437_v39, %v5444_v60  ;;  %v5476_v44 = vrot.slane %v5468_v25, %v13011_v21  ;;  %v3260_v57 = vadd.f32 %v14131_v46, %v14080_v12  ;;  %v14223_v42 = vadd.f32 %v14149_v8, %v14084_v37 }
 0x1c0   :  { %v5428_v3 = vrot.slane %v5421_v54, %v13011_v21  ;;  %v5317_v40 = vcombine.high %v3585_v32, %v3585_v32  ;;  %v5324_v61 = vrot.slane %v3585_v32, %v13011_v21  ;;  %v14227_v18 = vadd.f32 %v3248_v43, %v14090_v9 }
 0x1c1   :  { %v5459_v50 = vrot.slane %v5452_v47, %v13011_v21  ;;  %v3644_v13 = vadd.f32 %v12778_v11, %v3262_v55  ;;  %v3642_v16 = vadd.f32 %v3627_v52, %v3260_v57  ;;  %vm5974_vm12 = vcmask 1040384  }
 0x1c2   :  { %v5607_v30 = vrot.slane %v5428_v3, %v13011_v21  ;;  %v5331_v12 = vrot.slane %v5317_v40, %v13011_v21  ;;  %v5332_v31 = vcombine.high %v5324_v61, %v5324_v61  ;;  %v5340_v46 = vrot.slane %v5324_v61, %v13011_v21 }
 0x1c3   :  { %v5467_v24 = vcombine.low %v5459_v50, %v5466_v26  ;;  %vm4844_vm7 = vcmp.ge.f32.partialorder %v3644_v13, 0.0  ;;  %v4848_v6 = vmul.f32 0.1, %v3644_v13  ;;  %vm4842_vm8 = vcmp.ge.f32.partialorder %v3642_v16, 0.0 }
 0x1c4   :  { %v5622_v37 = vrot.slane %v5607_v30, %v13011_v21  ;;  %v5333_v8 = vcombine.high %v5331_v12, %v5331_v12  ;;  %v5347_v10 = vrot.slane %v5331_v12, %v13011_v21  ;;  %v5354_v9 = vrot.slane %v5332_v31, %v13011_v21 }
 0x1c5   :  { %v12502_v43 = vpack.c.bf16 %v5467_v24, %v5467_v24  ;;  %v5469_v5 = vcombine.low %v5316_v62, %v5340_v46  ;;  %v4852_v20 = vsel %vm4844_vm7, %v3644_v13, %v4848_v6  ;;  %v4846_v34 = vmul.f32 0.1, %v3642_v16 }
 0x1c6   :  { %v5623_v45 = vcombine.low %v5615_v0, %v5622_v37  ;;  %v5361_v22 = vrot.slane %v5333_v8, %v13011_v21  ;;  %v5363_v28 = vcombine.high %v5347_v10, %v5347_v10  ;;  %v5490_v48 = vrot.slane %v5354_v9, %v13011_v21 }
 0x1c7   :  { %v5650_v35 = vshrl.u32 %v12502_v43, 16  ;;  %v5653_v15 = vshll.u32 %v12502_v43, 16  ;;  %v5483_v23 = vrot.slane %v5469_v5, %v13011_v21  ;;  %v12240_v2 = vcombine.high %v5340_v46, %v5354_v9 }
 0x1c8   :  { %v12506_v4 = vpack.c.bf16 %v5623_v45, %v5623_v45  ;;  %v5365_v41 = vcombine.high %v5361_v22, %v5361_v22  ;;  %v5505_v53 = vrot.slane %v5490_v48, %v13011_v21  ;;  %v5508_v29 = vcombine.low %v5347_v10, %v5361_v22  ;;  %v12779_v10 = vpop.f32.mrf.mxu0 }
 0x1c9   :  { %v5652_v11 = vrot.slane %v5650_v35, 7  ;;  %v5491_v36 = vcombine.low %v5476_v44, %v5483_v23  ;;  %v5515_v33 = vrot.slane %v12240_v2, %v13011_v21  ;;  %v5529_v14 = vrot.slane %v5363_v28, %v13011_v21  ;;  %v5705_v44 = vld [vmem:[#allocation2 + $0x14] sm:$0x7] }
 0x1ca   :  { %v5678_v19 = vshrl.u32 %v12506_v4, 16  ;;  %v5681_v63 = vshll.u32 %v12506_v4, 16  ;;  %v5522_v39 = vrot.slane %v5508_v29, %v13011_v21  ;;  %v5546_v60 = vcombine.low %v5365_v41, %v14145_v59 }
 0x1cb   :  { %v5655_v25 = vor.u32 %v5653_v15, %v5652_v11  ;;  %v5498_v58 = vrot.slane %v5491_v36, %v13011_v21  ;;  %v5544_v0 = vrot.slane %v5529_v14, %v13011_v21  ;;  %v4956_v26 = vcombine.high %v4852_v20, %v4852_v20  ;;  %v5696_v15 = vld [vmem:[#allocation2 + $0x8] sm:$0x7]  ;;  %v5699_v14 = vld [vmem:[#allocation2 + $0xc] sm:$0x7] }
 0x1cc   :  { %v5680_v54 = vrot.slane %v5678_v19, 7  ;;  %v5530_v32 = vcombine.low %v5515_v33, %v5522_v39  ;;  %v5554_v62 = vrot.slane %v5546_v60, %v13011_v21  ;;  %v4963_v52 = vrot.slane %v4852_v20, %v13011_v21 }
 0x1cd   :  { %v5694_v47 = vsel %vm14243_vm10, %v5655_v25, %v5693_v1  ;;  %v5506_v55 = vcombine.low %v5498_v58, %v5505_v53  ;;  %v4970_v57 = vrot.slane %v4956_v26, %v13011_v21  ;;  %v4850_v59 = vsel %vm4842_vm8, %v3642_v16, %v4846_v34  ;;  %v5702_v25 = vld [vmem:[#allocation2 + $0x10] sm:$0x7] }
 0x1ce   :  { %5695 = vst [vmem:[#allocation2 + $0x4] sm:$0x7] %v5694_v47  ;;  %v5683_v3 = vor.u32 %v5681_v63, %v5680_v54  ;;  %v5537_v40 = vrot.slane %v5530_v32, %v13011_v21  ;;  %v5569_v61 = vcombine.low %v5554_v62, %v5561_v49  ;;  %v4971_v50 = vcombine.high %v4963_v52, %v4963_v52  ;;  %v3630_v32 = vpop.f32.mrf.mxu0 }
 0x1cf   :  { %v12503_v13 = vpack.c.bf16 %v5506_v55, %v5506_v55  ;;  %v4972_v30 = vcombine.high %v4970_v57, %v4970_v57  ;;  %v14262_v12 = vrot.slane %v4963_v52, %v13011_v21  ;;  %v4986_v31 = vrot.slane %v4970_v57, %v13011_v21  ;;  %v12252_v55 = vld [vmem:[%s15320_s3 + $0x1] sm:$0x1] }
 0x1d0   :  { %v5706_v46 = vsel %vm14243_vm10, %v5683_v3, %v5705_v44  ;;  %v5545_v16 = vcombine.low %v5537_v40, %v5544_v0  ;;  %v5576_v24 = vrot.slane %v5569_v61, %v13011_v21  ;;  %v4993_v6 = vrot.slane %v4971_v50, %v13011_v21  ;;  %v14304_v61 = vld [vmem:[%s15320_s3] sm:$0x1]  ;;  %12901 = vmatprep.subr.msk.bf16.mxu1 %vm5974_vm12, %v12252_v55 }
 0x1d1   :  { %5707 = vst [vmem:[#allocation2 + $0x14] sm:$0x7] %v5706_v46  ;;  %v5657_v37 = vshrl.u32 %v12503_v13, 16  ;;  %v5660_v51 = vshll.u32 %v12503_v13, 16  ;;  %v5000_v49 = vrot.slane %v4972_v30, %v13011_v21  ;;  %v5001_v8 = vcombine.high %v14262_v12, %v14262_v12  ;;  %12902 = vmatprep.subr.msk.bf16.mxu0 %vm5974_vm12, %v14304_v61 }
 0x1d2   :  { %v5584_v9 = vcombine.low %v5576_v24, %v5583_v27  ;;  %v12504_v43 = vpack.c.bf16 %v5545_v16, %v5545_v16  ;;  %v5003_v5 = vcombine.high %v4993_v6, %v4993_v6  ;;  %v4858_v20 = vcombine.high %v4850_v59, %v4850_v59 }
 0x1d3   :  { %v5659_v34 = vrot.slane %v5657_v37, 7  ;;  %v14275_v45 = vcombine.low %v4993_v6, %v5001_v8  ;;  %v5175_v22 = vcombine.low %v4986_v31, %v5000_v49  ;;  %v12228_v28 = vcombine.high %v4986_v31, %v5000_v49  ;;  %v5243_v6 = vld [vmem:[#allocation2] sm:$0xf] }
 0x1d4   :  { %v12505_v48 = vpack.c.bf16 %v5584_v9, %v5584_v9  ;;  %v5664_v35 = vshrl.u32 %v12504_v43, 16  ;;  %v14278_v23 = vrot.slane %v5003_v5, %v13011_v21  ;;  %v3645_v2 = vadd.f32 %v12779_v10, %v14223_v42 }
 0x1d5   :  { %v5662_v4 = vor.u32 %v5660_v51, %v5659_v34  ;;  %v5667_v41 = vshll.u32 %v12504_v43, 16  ;;  %v5183_v56 = vrot.slane %v5175_v22, %v13011_v21  ;;  %v5190_v27 = vrot.slane %v12228_v28, %v13011_v21  ;;  %v12248_v37 = vld.sshfl [vmem:[#allocation2 + $0x4] sm:$0x13 pattern:$0x75316420] }
 0x1d6   :  { %v5666_v53 = vrot.slane %v5664_v35, 7  ;;  %v5671_v29 = vshrl.u32 %v12505_v48, 16  ;;  %v5674_v11 = vshll.u32 %v12505_v48, 16  ;;  %v5151_v36 = vrot.slane %v14275_v45, %v13011_v21 }
 0x1d7   :  { %v5697_v33 = vsel %vm14243_vm10, %v5662_v4, %v5696_v15  ;;  %v5173_v1 = vrot.slane %v14278_v23, %v13011_v21  ;;  %v4865_v42 = vrot.slane %v4850_v59, %v13011_v21  ;;  %v4872_v19 = vrot.slane %v4858_v20, %v13011_v21 }
 0x1d8   :  { %v5669_v63 = vor.u32 %v5667_v41, %v5666_v53  ;;  %v5673_v39 = vrot.slane %v5671_v29, 7  ;;  %5698 = vst [vmem:[#allocation2 + $0x8] sm:$0x7] %v5697_v33  ;;  %vm4845_vm11 = vcmp.ge.f32.partialorder %v3645_v2, 0.0  ;;  %v4849_v60 = vmul.f32 0.1, %v3645_v2 }
 0x1d9   :  { %v5198_v58 = vcombine.low %v5183_v56, %v5190_v27  ;;  %v4873_v0 = vcombine.high %v4865_v42, %v4865_v42  ;;  %v4874_v26 = vcombine.high %v4872_v19, %v4872_v19  ;;  %v4888_v54 = vrot.slane %v4872_v19, %v13011_v21 }
 0x1da   :  { %v5676_v62 = vor.u32 %v5674_v11, %v5673_v39  ;;  %v5700_v52 = vsel %vm14243_vm10, %v5669_v63, %v5699_v14  ;;  %v4881_v47 = vrot.slane %v4865_v42, %v13011_v21  ;;  %v4853_v44 = vsel %vm4845_vm11, %v3645_v2, %v4849_v60 }
 0x1db   :  { %5701 = vst [vmem:[#allocation2 + $0xc] sm:$0x7] %v5700_v52  ;;  %v4895_v57 = vrot.slane %v4873_v0, %v13011_v21  ;;  %v4902_v59 = vrot.slane %v4874_v26, %v13011_v21  ;;  %v4904_v3 = vcombine.high %v4888_v54, %v4888_v54  ;;  %v5041_v40 = vrot.slane %v4888_v54, %v13011_v21  ;;  %v12229_v54 = vld [vmem:[%s15319_s4 + $0x3c] sm:$0x7] }
 0x1dc   :  { %v5703_v50 = vsel %vm14243_vm10, %v5676_v62, %v5702_v25  ;;  %v5011_v13 = vrot.slane %v4853_v44, %v13011_v21  ;;  %v3643_v30 = vadd.f32 %v3630_v32, %v14227_v18  ;;  %v5205_v24 = vrot.slane %v5198_v58, %v13011_v21  ;;  %v14319_v18 = vld [vmem:[%s15320_s3 + $0x2] sm:$0x1]  ;;  %v12237_v25 = vld [vmem:[%s15319_s4 + $0x4c] sm:$0x7] }
 0x1dd   :  { %5704 = vst [vmem:[#allocation2 + $0x10] sm:$0x7] %v5703_v50  ;;  %v5019_v31 = vcombine.low %v4881_v47, %v4895_v57  ;;  %v12226_v46 = vcombine.high %v4881_v47, %v4895_v57  ;;  %v5056_v16 = vrot.slane %v5041_v40, %v13011_v21  ;;  %v5058_v51 = vcombine.low %v4902_v59, %v4904_v3 }
 0x1de   :  { %v5018_v7 = vrot.slane %v5011_v13, %v13011_v21  ;;  %vm4843_vm14 = vcmp.ge.f32.partialorder %v3643_v30, 0.0  ;;  %v4847_v49 = vmul.f32 0.1, %v3643_v30  ;;  %v4906_v9 = vcombine.high %v4902_v59, %v4902_v59 }
 0x1df   :  { %v5027_v8 = vrot.slane %v5019_v31, %v13011_v21  ;;  %v5034_v10 = vrot.slane %v12226_v46, %v13011_v21  ;;  %v5976_v43 = vsel %vm5974_vm12, %v12252_v55, 0  ;;  %v12249_v5 = vld.sshfl [vmem:[#allocation2 + $0x8] sm:$0x13 pattern:$0x75316420]  ;;  %v5244_v22 = vsel %vm13678_vm4, 0, %v5243_v6 }
 0x1e0   :  { %v5197_v20 = vrot.slane %v5018_v7, %v13011_v21  ;;  %v4851_v34 = vsel %vm4843_vm14, %v3643_v30, %v4847_v49  ;;  %12781 = vmatpush3.bf16.msra.mxu1 %v5976_v43  ;;  %v5748_v28 = vcombine.high %v12248_v37, %v12248_v37  ;;  %5245 = vst [vmem:[#allocation2] sm:$0xf] %v5244_v22  ;;  %vm5967_vm15 = vcmask 15360  }
 0x1e1   :  { %v5042_v48 = vcombine.low %v5027_v8, %v5034_v10  ;;  %v4907_v35 = vcombine.high %v4851_v34, %v4851_v34  ;;  %v4914_v15 = vrot.slane %v4851_v34, %v13011_v21  ;;  %v14329_v2 = vrot.slane %v12248_v37, %v13011_v21  ;;  %12903 = vmatprep.subr.msk.bf16.mxu1 %vm5974_vm12, %v14319_v18 }
 0x1e2   :  { %v5212_v4 = vrot.slane %v5197_v20, %v13011_v21  ;;  %v5066_v41 = vrot.slane %v5058_v51, %v13011_v21  ;;  %v5771_v56 = vcombine.high %v12249_v5, %v12249_v5  ;;  %v14336_v27 = vrot.slane %v12249_v5, %v13011_v21  ;;  %v14340_v33 = vld.sshfl [vmem:[#allocation2 + $0xc] sm:$0x13 pattern:$0x75316420] }
 0x1e3   :  { %v5049_v53 = vrot.slane %v5042_v48, %v13011_v21  ;;  %v4921_v29 = vrot.slane %v4907_v35, %v13011_v21  ;;  %v4922_v11 = vcombine.high %v4914_v15, %v4914_v15  ;;  %v14343_v14 = vrot.slane %v5748_v28, %v13011_v21 }
 0x1e4   :  { %v5213_v42 = vcombine.low %v5205_v24, %v5212_v4  ;;  %v4930_v19 = vrot.slane %v4914_v15, %v13011_v21  ;;  %v14348_v63 = vcombine.high %v14329_v2, %v14329_v2  ;;  %v14351_v39 = vrot.slane %v5771_v56, %v13011_v21  ;;  %v14409_v56 = vld [vmem:[%s15320_s3 + $0x3] sm:$0x1] }
 0x1e5   :  { %v5057_v60 = vcombine.low %v5049_v53, %v5056_v16  ;;  %v4923_v58 = vcombine.high %v4921_v29, %v4921_v29  ;;  %v4937_v0 = vrot.slane %v4921_v29, %v13011_v21  ;;  %v4944_v26 = vrot.slane %v4922_v11, %v13011_v21  ;;  %v12231_v11 = vld [vmem:[%s15319_s4 + $0x40] sm:$0x7] }
 0x1e6   :  { %v5223_v32 = vpack.c.bf16 %v5213_v42, %v5213_v42  ;;  %v5059_v62 = vcombine.low %v4906_v9, %v4930_v19  ;;  %v14363_v52 = vcombine.high %v14336_v27, %v14336_v27  ;;  %v5794_v47 = vcombine.high %v14340_v33, %v14340_v33 }
 0x1e7   :  { %v5219_v44 = vpack.c.bf16 %v5057_v60, %v5057_v60  ;;  %v4951_v55 = vrot.slane %v4923_v58, %v13011_v21  ;;  %v4953_v57 = vcombine.high %v4937_v0, %v4937_v0  ;;  %v14370_v59 = vrot.slane %v14340_v33, %v13011_v21  ;;  %v12247_v30 = vld.sshfl [vmem:[#allocation2] sm:$0x13 pattern:$0x75316420] }
 0x1e8   :  { %v5238_v3 = vsel %vm13793_vm13, %v5223_v32, %v12237_v25  ;;  %v5073_v40 = vrot.slane %v5059_v62, %v13011_v21  ;;  %v5080_v50 = vrot.slane %v4944_v26, %v13011_v21  ;;  %v12227_v13 = vcombine.high %v4930_v19, %v4944_v26 }
 0x1e9   :  { %v5226_v31 = vsel %vm13793_vm13, %v5219_v44, %v12229_v54  ;;  %12238 = vst [vmem:[%s15319_s4 + $0x4c] sm:$0x7] %v5238_v3  ;;  %v4955_v46 = vcombine.high %v4951_v55, %v4951_v55  ;;  %v5098_v16 = vcombine.low %v4937_v0, %v4951_v55  ;;  %v5839_v24 = vunpack.i.h.s16 %v14329_v2  ;;  %v12233_v54 = vld [vmem:[%s15319_s4 + $0x44] sm:$0x7] }
 0x1ea   :  { %12230 = vst [vmem:[%s15319_s4 + $0x3c] sm:$0x7] %v5226_v31  ;;  %v5081_v6 = vcombine.low %v5066_v41, %v5073_v40  ;;  %v5105_v37 = vrot.slane %v12227_v13, %v13011_v21  ;;  %v5119_v51 = vrot.slane %v4953_v57, %v13011_v21  ;;  %v5725_v7 = vcombine.high %v12247_v30, %v12247_v30  ;;  %v12235_v40 = vld [vmem:[%s15319_s4 + $0x48] sm:$0x7] }
 0x1eb   :  { %v5112_v49 = vrot.slane %v5098_v16, %v13011_v21  ;;  %v5136_v8 = vcombine.low %v4955_v46, %v14262_v12  ;;  %v5732_v10 = vrot.slane %v12247_v30, %v13011_v21  ;;  %v5841_v9 = vunpack.i.h.s16 %v14343_v14 }
 0x1ec   :  { %v5088_v43 = vrot.slane %v5081_v6, %v13011_v21  ;;  %v5095_v5 = vrot.slane %v5080_v50, %v13011_v21  ;;  %v5134_v20 = vrot.slane %v5119_v51, %v13011_v21  ;;  %v5739_v34 = vrot.slane %v5725_v7, %v13011_v21 }
 0x1ed   :  { %v5120_v22 = vcombine.low %v5105_v37, %v5112_v49  ;;  %v5144_v28 = vrot.slane %v5136_v8, %v13011_v21  ;;  %v5740_v48 = vcombine.high %v5732_v10, %v5732_v10  ;;  %v14399_v12 = vpack.i.b16 %v14343_v14, %v5839_v24 }
 0x1ee   :  { %v5096_v35 = vcombine.low %v5088_v43, %v5095_v5  ;;  %v14402_v15 = vpack.i.b16 %v14348_v63, %v5841_v9  ;;  %v12264_v4 = vpack.i.b16 %v14370_v59, %v14363_v52  ;;  %v6040_v41 = vcombine.low %v5732_v10, %v5739_v34  ;;  %v12251_v43 = vld.sshfl [vmem:[#allocation2 + $0x10] sm:$0x13 pattern:$0x75316420] }
 0x1ef   :  { %v5127_v53 = vrot.slane %v5120_v22, %v13011_v21  ;;  %v5159_v29 = vcombine.low %v5144_v28, %v5151_v36  ;;  %v12261_v33 = vpack.i.b16 %v14329_v2, %v5740_v48  ;;  %v6135_v42 = vsel %vm5974_vm12, %v14304_v61, 0 }
 0x1f0   :  { %v5220_v19 = vpack.c.bf16 %v5096_v35, %v5096_v35  ;;  %v6042_v60 = vcombine.low %v14402_v15, %v14336_v27  ;;  %v6043_v25 = vcombine.low %v14351_v39, %v12264_v4  ;;  %v6050_v58 = vrot.slane %v6040_v41, %v13011_v21  ;;  %12787 = vmatpush3.bf16.msra.mxu0 %v6135_v42 }
 0x1f1   :  { %v5135_v45 = vcombine.low %v5127_v53, %v5134_v20  ;;  %v5166_v36 = vrot.slane %v5159_v29, %v13011_v21  ;;  %v6041_v0 = vcombine.low %v12261_v33, %v14399_v12  ;;  %v14428_v26 = vrot.slane %v5794_v47, %v13011_v21  ;;  %12904 = vmatprep.subr.msk.bf16.mxu0 %vm5974_vm12, %v14409_v56 }
 0x1f2   :  { %v5229_v61 = vsel %vm13793_vm13, %v5220_v19, %v12231_v11  ;;  %v6064_v32 = vrot.slane %v6042_v60, %v13011_v21  ;;  %v6071_v62 = vrot.slane %v6043_v25, %v13011_v21  ;;  %v5834_v44 = vunpack.i.h.s16 %v5732_v10 }
 0x1f3   :  { %v5174_v47 = vcombine.low %v5166_v36, %v5173_v1  ;;  %v5221_v55 = vpack.c.bf16 %v5135_v45, %v5135_v45  ;;  %12232 = vst [vmem:[%s15319_s4 + $0x40] sm:$0x7] %v5229_v61  ;;  %v6057_v57 = vrot.slane %v6041_v0, %v13011_v21  ;;  %v5836_v3 = vunpack.i.h.s16 %v5739_v34 }
 0x1f4   :  { %v6073_v50 = vcombine.low %v6064_v32, %v6071_v62  ;;  %v5844_v13 = vunpack.i.h.s16 %v14336_v27  ;;  %v5846_v30 = vunpack.i.h.s16 %v14351_v39  ;;  %v5849_v23 = vunpack.i.h.s16 %v14370_v59 }
 0x1f5   :  { %v5222_v1 = vpack.c.bf16 %v5174_v47, %v5174_v47  ;;  %v5232_v31 = vsel %vm13793_vm13, %v5221_v55, %v12233_v54  ;;  %v6072_v46 = vcombine.low %v6050_v58, %v6057_v57  ;;  %v5859_v16 = vunpack.i.h.s16 %v5740_v48 }
 0x1f6   :  { %12234 = vst [vmem:[%s15319_s4 + $0x44] sm:$0x7] %v5232_v31  ;;  %v6087_v6 = vrot.slane %v6073_v50, %v13011_v21  ;;  %v5861_v37 = vunpack.i.h.s16 %v14363_v52  ;;  %v12253_v51 = vpack.i.b16 %v5739_v34, %v5834_v44  ;;  %v12254_v7 = vpack.i.b16 %v5740_v48, %v5836_v3 }
 0x1f7   :  { %v5235_v49 = vsel %vm13793_vm13, %v5222_v1, %v12235_v40  ;;  %v6080_v8 = vrot.slane %v6072_v46, %v13011_v21  ;;  %v5868_v10 = vpack.i.b16 %v5839_v24, %v5859_v16  ;;  %v14465_v9 = vpack.i.b16 %v14351_v39, %v5844_v13 }
 0x1f8   :  { %12236 = vst [vmem:[%s15319_s4 + $0x48] sm:$0x7] %v5235_v49  ;;  %v14471_v5 = vpack.i.b16 %v14363_v52, %v5846_v30  ;;  %v5873_v20 = vpack.i.b16 %v5849_v23, %v5861_v37  ;;  %v5879_v34 = vcombine.low %v12253_v51, %v12254_v7  ;;  %v12265_v38 = vpack.i.b16 %v14428_v26, %v5849_v23 }
 0x1f9   :  { %v6088_v22 = vcombine.low %v6080_v8, %v6087_v6  ;;  %v5880_v28 = vcombine.low %v5868_v10, %v14343_v14  ;;  %v5881_v24 = vcombine.low %v14348_v63, %v14465_v9  ;;  %v14479_v48 = vcombine.high %v14370_v59, %v14370_v59 }
 0x1fa   :  { %v5882_v35 = vcombine.low %v14471_v5, %v5873_v20  ;;  %v5889_v4 = vrot.slane %v5879_v34, %v13011_v21  ;;  %v5817_v41 = vcombine.high %v12251_v43, %v12251_v43  ;;  %v5824_v53 = vrot.slane %v12251_v43, %v13011_v21 }
 0x1fb   :  { %12788 = vmatprep.mubr.msk.bf16.mxu0 %vm5967_vm15, %v6088_v22  ;;  %v5896_v29 = vrot.slane %v5880_v28, %v13011_v21  ;;  %v5903_v11 = vrot.slane %v5881_v24, %v13011_v21  ;;  %v5851_v33 = vunpack.i.h.s16 %v14428_v26  ;;  %v6630_v42 = vunpack.i.h.s16 %v14348_v63 }
 0x1fc   :  { %v5910_v19 = vrot.slane %v5882_v35, %v13011_v21  ;;  %v14491_v60 = vrot.slane %v5817_v41, %v13011_v21  ;;  %v14493_v25 = vcombine.high %v5824_v53, %v5824_v53  ;;  %v6640_v58 = vunpack.i.h.s16 %v14479_v48 }
 0x1fd   :  { %v5911_v45 = vcombine.low %v5889_v4, %v5896_v29  ;;  %v12266_v36 = vpack.i.b16 %v14479_v48, %v5851_v33  ;;  %v6641_v0 = vunpack.i.h.s16 %v5824_v53  ;;  %v6655_v61 = vpack.i.b16 %v5844_v13, %v6630_v42  ;;  %v12287_v29 = vld.sshfl [vmem:[#allocation2 + $0x14] sm:$0x13 pattern:$0x75316420] }
 0x1fe   :  { %v5912_v54 = vcombine.low %v5903_v11, %v5910_v19  ;;  %v5857_v32 = vunpack.i.l.s16 %v14493_v25  ;;  %v6090_v62 = vcombine.low %v5824_v53, %v14491_v60  ;;  %v6666_v44 = vcombine.low %v14399_v12, %v14402_v15 }
 0x1ff   :  { %v5919_v47 = vrot.slane %v5911_v45, %v13011_v21  ;;  %v6089_v55 = vcombine.low %v12265_v38, %v12266_v36  ;;  %v6660_v57 = vpack.i.b16 %v6641_v0, %v6640_v58  ;;  %v6667_v3 = vcombine.low %v6655_v61, %v14351_v39 }
 0x200   :  { %v5926_v40 = vrot.slane %v5912_v54, %v13011_v21  ;;  %v6104_v50 = vrot.slane %v6090_v62, %v13011_v21  ;;  %v6111_v13 = vrot.slane %v5857_v32, %v13011_v21  ;;  %v6668_v30 = vcombine.low %v14363_v52, %v12265_v38 }
 0x201   :  { %v6097_v23 = vrot.slane %v6089_v55, %v13011_v21  ;;  %v6669_v1 = vcombine.low %v12266_v36, %v6660_v57  ;;  %v6676_v31 = vrot.slane %v6666_v44, %v13011_v21  ;;  %v6683_v12 = vrot.slane %v6667_v3, %v13011_v21 }
 0x202   :  { %v14510_v15 = vcombine.low %v5919_v47, %v5926_v40  ;;  %v6126_v46 = vrot.slane %v6111_v13, %v13011_v21  ;;  %v6690_v39 = vrot.slane %v6668_v30, %v13011_v21  ;;  %v5856_v51 = vunpack.i.h.s16 %v14491_v60 }
 0x203   :  { %v6112_v16 = vcombine.low %v6097_v23, %v6104_v50  ;;  %v6697_v6 = vrot.slane %v6669_v1, %v13011_v21  ;;  %v6698_v37 = vcombine.low %v6676_v31, %v6683_v12  ;;  %v5863_v52 = vunpack.i.h.s16 %v14493_v25  ;;  %v12307_v50 = vld.sshfl [vmem:[#allocation2 + $0x4] sm:$0x32 pattern:$0x75316420] }
 0x204   :  { %12782 = vmatprep.mubr.msk.bf16.mxu1 %vm5967_vm15, %v14510_v15  ;;  %v12257_v7 = vpack.i.b16 %v14491_v60, %v6641_v0  ;;  %v5928_v49 = vcombine.low %v14428_v26, %v14479_v48  ;;  %v14524_v8 = vsel %vm5974_vm12, %v14319_v18, 0  ;;  %v12258_v34 = vpack.i.b16 %v14493_v25, %v5856_v51 }
 0x205   :  { %v6119_v10 = vrot.slane %v6112_v16, %v13011_v21  ;;  %v6699_v43 = vcombine.low %v6690_v39, %v6697_v6  ;;  %v6706_v20 = vrot.slane %v6698_v37, %v13011_v21  ;;  %v5950_v22 = vrot.slane %v5863_v52, %v13011_v21  ;;  %v12308_v37 = vld.sshfl [vmem:[#allocation2 + $0x8] sm:$0x32 pattern:$0x75316420] }
 0x206   :  { %v5936_v38 = vrot.slane %v5928_v49, %v13011_v21  ;;  %v12275_v28 = vpack.i.b16 %v14336_v27, %v14348_v63  ;;  %v12278_v24 = vpack.i.b16 %v5824_v53, %v14479_v48  ;;  %v5929_v4 = vcombine.low %v12257_v7, %v12258_v34  ;;  %v12311_v27 = vld [vmem:[%s15320_s3 + $0x5] sm:$0x1]  ;;  %v12305_v63 = vld [vmem:[%s15320_s3 + $0x4] sm:$0x1] }
 0x207   :  { %v6127_v35 = vcombine.low %v6119_v10, %v6126_v46  ;;  %v6713_v18 = vrot.slane %v6699_v43, %v13011_v21  ;;  %v6351_v41 = vcombine.low %v14329_v2, %v14343_v14  ;;  %v5965_v11 = vrot.slane %v5950_v22, %v13011_v21  ;;  %v12309_v10 = vld.sshfl [vmem:[#allocation2 + $0xc] sm:$0x32 pattern:$0x75316420] }
 0x208   :  { %v6352_v33 = vcombine.low %v12275_v28, %v14465_v9  ;;  %v6353_v42 = vcombine.low %v14471_v5, %v14370_v59  ;;  %v6354_v19 = vcombine.low %v14428_v26, %v12278_v24  ;;  %v5943_v14 = vrot.slane %v5929_v4, %v13011_v21  ;;  %v12306_v26 = vld.sshfl [vmem:[#allocation2] sm:$0x32 pattern:$0x75316420] }
 0x209   :  { %12789 = vmatmul.mubr.msk.bf16.vlgmr.msra.gmra.mxu0 %vm5967_vm15, %v6127_v35  ;;  %v14549_v2 = vcombine.low %v6706_v20, %v6713_v18  ;;  %v6361_v9 = vrot.slane %v6351_v41, %v13011_v21  ;;  %v6761_v59 = vsel %vm5974_vm12, %v14409_v56, 0  ;;  %v6610_v58 = vcombine.high %v12287_v29, %v12287_v29 }
 0x20a   :  { %v6368_v5 = vrot.slane %v6352_v33, %v13011_v21  ;;  %v6375_v48 = vrot.slane %v6353_v42, %v13011_v21  ;;  %v6382_v53 = vrot.slane %v6354_v19, %v13011_v21  ;;  %12799 = vmatpush3.bf16.msra.mxu0 %v6761_v59  ;;  %v5951_v45 = vcombine.low %v5936_v38, %v5943_v14 }
 0x20b   :  { %12800 = vmatprep.mubr.msk.bf16.mxu0 %vm5967_vm15, %v14549_v2  ;;  %v14561_v36 = vrot.slane %v12287_v29, %v13011_v21  ;;  %v6715_v0 = vcombine.low %v14491_v60, %v14493_v25  ;;  %v14566_v56 = vsel %vm5974_vm12, %v12311_v27, 0  ;;  %12906 = vmatprep.subr.msk.bf16.mxu0 %vm5974_vm12, %v12305_v63  ;;  %v14570_v32 = vrot.slane %v6610_v58, %v13011_v21 }
 0x20c   :  { %v6383_v61 = vcombine.low %v6361_v9, %v6368_v5  ;;  %v6384_v54 = vcombine.low %v6375_v48, %v6382_v53  ;;  %v7371_v62 = vcombine.high %v12306_v26, %v12306_v26  ;;  %v5958_v44 = vrot.slane %v5951_v45, %v13011_v21  ;;  %v12333_v45 = vld [vmem:[%s15320_s3 + $0x6] sm:$0x1] }
 0x20d   :  { %v14575_v47 = vcombine.high %v14561_v36, %v14561_v36  ;;  %v6646_v55 = vunpack.i.h.s16 %v14561_v36  ;;  %v6723_v60 = vrot.slane %v6715_v0, %v13011_v21  ;;  %v6648_v3 = vunpack.i.h.s16 %v14570_v32 }
 0x20e   :  { %v6391_v25 = vrot.slane %v6383_v61, %v13011_v21  ;;  %v6398_v57 = vrot.slane %v6384_v54, %v13011_v21  ;;  %v6401_v40 = vcombine.low %v14561_v36, %v14570_v32  ;;  %v14584_v13 = vcombine.low %v5958_v44, %v5965_v11 }
 0x20f   :  { %v6650_v30 = vunpack.i.h.s16 %v14575_v47  ;;  %v12293_v23 = vpack.i.b16 %v14570_v32, %v6646_v55  ;;  %v6335_v1 = vunpack.i.l.s16 %v14575_v47  ;;  %v12294_v12 = vpack.i.b16 %v14575_v47, %v6648_v3 }
 0x210   :  { %v14591_v31 = vcombine.low %v6391_v25, %v6398_v57  ;;  %v6415_v46 = vrot.slane %v6401_v40, %v13011_v21  ;;  %v7378_v39 = vrot.slane %v12306_v26, %v13011_v21  ;;  %12783 = vmatmul.mubr.msk.bf16.vlgmr.msra.gmra.mxu1 %vm5967_vm15, %v14584_v13  ;;  %v7385_v51 = vrot.slane %v7371_v62, %v13011_v21  ;;  %v12345_v26 = vld.sshfl [vmem:[#allocation2 + $0x10] sm:$0x32 pattern:$0x75316420] }
 0x211   :  { %v6737_v16 = vrot.slane %v6650_v30, %v13011_v21  ;;  %v6422_v6 = vrot.slane %v6335_v1, %v13011_v21  ;;  %v7395_v52 = vcombine.high %v12307_v50, %v12307_v50  ;;  %12793 = vmatpush3.bf16.msra.mxu1 %v14524_v8  ;;  %v6716_v7 = vcombine.low %v12293_v23, %v12294_v12  ;;  %v12347_v23 = vld [vmem:[%s15320_s3 + $0x7] sm:$0x1] }
 0x212   :  { %12794 = vmatprep.mubr.msk.bf16.mxu1 %vm5967_vm15, %v14591_v31  ;;  %v6423_v49 = vcombine.low %v5943_v14, %v6415_v46  ;;  %v7386_v43 = vcombine.high %v7378_v39, %v7378_v39  ;;  %v7778_v20 = vsel %vm5974_vm12, %v12305_v63, 0  ;;  %12905 = vmatprep.subr.msk.bf16.mxu1 %vm5974_vm12, %v12311_v27  ;;  %v7387_v22 = vcombine.high %v7385_v51, %v7385_v51 }
 0x213   :  { %v6752_v34 = vrot.slane %v6737_v16, %v13011_v21  ;;  %v6437_v38 = vrot.slane %v6422_v6, %v13011_v21  ;;  %v7402_v28 = vrot.slane %v12307_v50, %v13011_v21  ;;  %v14610_v8 = vrot.slane %v6716_v7, %v13011_v21 }
 0x214   :  { %v6430_v24 = vrot.slane %v6423_v49, %v13011_v21  ;;  %v7409_v35 = vrot.slane %v7395_v52, %v13011_v21  ;;  %v7419_v18 = vcombine.high %v12308_v37, %v12308_v37  ;;  %v7426_v41 = vrot.slane %v12308_v37, %v13011_v21 }
 0x215   :  { %v7410_v4 = vcombine.high %v7402_v28, %v7402_v28  ;;  %v7443_v29 = vcombine.high %v12309_v10, %v12309_v10  ;;  %v7524_v11 = vcombine.low %v7385_v51, %v7386_v43  ;;  %v6738_v33 = vcombine.low %v6723_v60, %v14610_v8 }
 0x216   :  { %v14616_v42 = vcombine.low %v6430_v24, %v6437_v38  ;;  %v7411_v19 = vcombine.high %v7409_v35, %v7409_v35  ;;  %v7433_v27 = vrot.slane %v7419_v18, %v13011_v21  ;;  %v7434_v63 = vcombine.high %v7426_v41, %v7426_v41 }
 0x217   :  { %v7457_v14 = vrot.slane %v7443_v29, %v13011_v21  ;;  %v7490_v9 = vunpack.i.h.s16 %v7409_v35  ;;  %v7492_v59 = vunpack.i.h.s16 %v7410_v4  ;;  %v6745_v5 = vrot.slane %v6738_v33, %v13011_v21 }
 0x218   :  { %v7435_v48 = vcombine.high %v7433_v27, %v7433_v27  ;;  %v12312_v53 = vpack.i.b16 %v7409_v35, %v7387_v22  ;;  %v7534_v58 = vrot.slane %v7524_v11, %v13011_v21  ;;  %12795 = vmatmul.mubr.msk.bf16.vlgmr.msra.gmra.mxu1 %vm5967_vm15, %v14616_v42  ;;  %v8216_v54 = vrot.slane %v12309_v10, %v13011_v21 }
 0x219   :  { %v12313_v0 = vpack.i.b16 %v7410_v4, %v7490_v9  ;;  %v12314_v61 = vpack.i.b16 %v7411_v19, %v7492_v59  ;;  %v8225_v62 = vcombine.high %v7457_v14, %v7457_v14  ;;  %v14628_v44 = vcombine.low %v6745_v5, %v6752_v34  ;;  %12805 = vmatpush3.bf16.msra.mxu1 %v14566_v56 }
 0x21a   :  { %v12315_v60 = vpack.i.b16 %v7457_v14, %v7435_v48  ;;  %v8233_v25 = vcombine.high %v12345_v26, %v12345_v26  ;;  %v8280_v57 = vunpack.i.h.s16 %v7433_v27  ;;  %v8224_v50 = vcombine.high %v8216_v54, %v8216_v54  ;;  %12907 = vmatprep.subr.msk.bf16.mxu1 %vm5974_vm12, %v12333_v45 }
 0x21b   :  { %v7525_v3 = vcombine.low %v12312_v53, %v12313_v0  ;;  %v7526_v40 = vcombine.low %v12314_v61, %v7433_v27  ;;  %v8282_v30 = vunpack.i.h.s16 %v7434_v63  ;;  %12801 = vmatmul.mubr.msk.bf16.vlgmr.msra.gmra.mxu0 %vm5967_vm15, %v14628_v44  ;;  %v12348_v56 = vpack.i.b16 %v7433_v27, %v7411_v19  ;;  %v12346_v0 = vld.sshfl [vmem:[#allocation2 + $0x14] sm:$0x32 pattern:$0x75316420] }
 0x21c   :  { %v7527_v1 = vcombine.low %v7434_v63, %v12315_v60  ;;  %v14638_v12 = vrot.slane %v8233_v25, %v13011_v21  ;;  %v12349_v46 = vpack.i.b16 %v7434_v63, %v8280_v57  ;;  %12812 = vmatprep.mubr.msk.bf16.mxu0 %vm5967_vm15, %v14510_v15  ;;  %12811 = vmatpush3.bf16.msra.mxu0 %v7778_v20  ;;  %v7500_v37 = vunpack.i.h.s16 %v7457_v14 }
 0x21d   :  { %v7541_v39 = vrot.slane %v7525_v3, %v13011_v21  ;;  %v7548_v16 = vrot.slane %v7526_v40, %v13011_v21  ;;  %v12350_v6 = vpack.i.b16 %v7435_v48, %v8282_v30  ;;  %v8314_v7 = vcombine.low %v7409_v35, %v7410_v4  ;;  %12908 = vmatprep.subr.msk.bf16.mxu0 %vm5974_vm12, %v12347_v23 }
 0x21e   :  { %v7555_v51 = vrot.slane %v7527_v1, %v13011_v21  ;;  %v12351_v52 = vpack.i.b16 %v14638_v12, %v8225_v62  ;;  %v8315_v49 = vcombine.low %v12348_v56, %v12349_v46  ;;  %v7474_v34 = vrot.slane %v12345_v26, %v13011_v21 }
 0x21f   :  { %v7556_v10 = vcombine.low %v7534_v58, %v7541_v39  ;;  %v8316_v43 = vcombine.low %v12350_v6, %v7457_v14  ;;  %v8324_v22 = vrot.slane %v8314_v7, %v13011_v21  ;;  %v7483_v35 = vcombine.high %v14638_v12, %v14638_v12 }
 0x220   :  { %v7557_v15 = vcombine.low %v7548_v16, %v7555_v51  ;;  %v8317_v38 = vcombine.low %v8224_v50, %v12351_v52  ;;  %v8331_v20 = vrot.slane %v8315_v49, %v13011_v21  ;;  %v7482_v18 = vcombine.high %v7474_v34, %v7474_v34  ;;  %v12375_v51 = vld [vmem:[%s15320_s3 + $0x9] sm:$0x1] }
 0x221   :  { %v7564_v28 = vrot.slane %v7556_v10, %v13011_v21  ;;  %v8338_v24 = vrot.slane %v8316_v43, %v13011_v21  ;;  %v7502_v11 = vunpack.i.h.s16 %v8224_v50  ;;  %v7508_v33 = vunpack.i.l.s16 %v7483_v35 }
 0x222   :  { %v7571_v4 = vrot.slane %v7557_v15, %v13011_v21  ;;  %v8345_v41 = vrot.slane %v8317_v38, %v13011_v21  ;;  %v8346_v29 = vcombine.low %v8324_v22, %v8331_v20  ;;  %v12316_v19 = vpack.i.b16 %v8224_v50, %v7500_v37  ;;  %v12411_v22 = vld [vmem:[%s15320_s3 + $0xb] sm:$0x1] }
 0x223   :  { %v7574_v27 = vcombine.low %v14638_v12, %v7482_v18  ;;  %v8089_v63 = vsel %vm5974_vm12, %v12333_v45, 0  ;;  %12813 = vmatmul.mubr.msk.bf16.vlgmr.msra.gmra.mxu0 %vm5967_vm15, %v14584_v13  ;;  %v12317_v26 = vpack.i.b16 %v8225_v62, %v7502_v11  ;;  %v7595_v48 = vrot.slane %v7508_v33, %v13011_v21  ;;  %v12374_v45 = vld [vmem:[%s15320_s3 + $0x8] sm:$0x1] }
 0x224   :  { %v7572_v14 = vcombine.low %v7564_v28, %v7571_v4  ;;  %v8347_v9 = vcombine.low %v8338_v24, %v8345_v41  ;;  %v8354_v59 = vrot.slane %v8346_v29, %v13011_v21  ;;  %v8409_v61 = vsel %vm5974_vm12, %v12347_v23, 0  ;;  %v12406_v28 = vld.sshfl [vmem:[#allocation2 + $0x8] sm:$0x13 pattern:$0x75316420] }
 0x225   :  { %v7588_v5 = vrot.slane %v7574_v27, %v13011_v21  ;;  %v7573_v58 = vcombine.low %v12316_v19, %v12317_v26  ;;  %v7610_v13 = vrot.slane %v7595_v48, %v13011_v21  ;;  %12823 = vmatpush3.bf16.msra.mxu0 %v8409_v61  ;;  %v8257_v60 = vcombine.high %v12346_v0, %v12346_v0  ;;  %v12407_v24 = vld.sshfl [vmem:[#allocation2 + $0xc] sm:$0x13 pattern:$0x75316420] }
 0x226   :  { %12806 = vmatprep.mubr.msk.bf16.mxu1 %vm5967_vm15, %v7572_v14  ;;  %v8361_v53 = vrot.slane %v8347_v9, %v13011_v21  ;;  %12910 = vmatprep.subr.msk.bf16.mxu0 %vm5974_vm12, %v12374_v45  ;;  %v8264_v57 = vrot.slane %v12346_v0, %v13011_v21  ;;  %v8290_v3 = vunpack.i.h.s16 %v14638_v12  ;;  %v8292_v40 = vunpack.i.h.s16 %v7482_v18  ;;  %v12408_v4 = vld.sshfl [vmem:[#allocation2 + $0x10] sm:$0x13 pattern:$0x75316420] }
 0x227   :  { %v7581_v62 = vrot.slane %v7573_v58, %v13011_v21  ;;  %v14676_v50 = vrot.slane %v8257_v60, %v13011_v21  ;;  %v9117_v34 = vsel %vm5974_vm12, %v12375_v51, 0  ;;  %v9276_v20 = vsel %vm5974_vm12, %v12374_v45, 0 }
 0x228   :  { %v8362_v54 = vcombine.low %v8354_v59, %v8361_v53  ;;  %v14679_v23 = vcombine.high %v8264_v57, %v8264_v57  ;;  %v12352_v1 = vpack.i.b16 %v7482_v18, %v8290_v3  ;;  %v12353_v56 = vpack.i.b16 %v7483_v35, %v8292_v40  ;;  %v12397_v18 = vld [vmem:[%s15320_s3 + $0xa] sm:$0x1] }
 0x229   :  { %v7596_v25 = vcombine.low %v7581_v62, %v7588_v5  ;;  %v14683_v46 = vcombine.high %v14676_v50, %v14676_v50  ;;  %v9660_v35 = vcombine.high %v12406_v28, %v12406_v28  ;;  %v14718_v41 = vrot.slane %v12406_v28, %v13011_v21  ;;  %v12433_v28 = vld.sshfl [vmem:[#allocation2 + $0x4] sm:$0x13 pattern:$0x75316420] }
 0x22a   :  { %12824 = vmatprep.mubr.msk.bf16.mxu0 %vm5967_vm15, %v8362_v54  ;;  %v8363_v16 = vcombine.low %v12352_v1, %v12353_v56  ;;  %v8364_v6 = vcombine.low %v14676_v50, %v14679_v23  ;;  %v9683_v29 = vcombine.high %v12407_v24, %v12407_v24  ;;  %v14733_v14 = vrot.slane %v12408_v4, %v13011_v21 }
 0x22b   :  { %v7603_v30 = vrot.slane %v7596_v25, %v13011_v21  ;;  %v8298_v37 = vunpack.i.l.s16 %v14683_v46  ;;  %v14721_v11 = vrot.slane %v9660_v35, %v13011_v21  ;;  %v14727_v33 = vcombine.high %v14718_v41, %v14718_v41 }
 0x22c   :  { %v8371_v52 = vrot.slane %v8363_v16, %v13011_v21  ;;  %v8378_v7 = vrot.slane %v8364_v6, %v13011_v21  ;;  %v9697_v19 = vrot.slane %v9683_v29, %v13011_v21  ;;  %v9768_v9 = vunpack.i.h.s16 %v14718_v41  ;;  %v12444_v29 = vld [vmem:[%s15320_s3 + $0xd] sm:$0x1] }
 0x22d   :  { %v7611_v39 = vcombine.low %v7603_v30, %v7610_v13  ;;  %v8385_v49 = vrot.slane %v8298_v37, %v13011_v21  ;;  %v9770_v59 = vunpack.i.h.s16 %v14721_v11  ;;  %v9772_v26 = vunpack.i.h.s16 %v14727_v33 }
 0x22e   :  { %v8386_v10 = vcombine.low %v8371_v52, %v8378_v7  ;;  %v14743_v48 = vcombine.high %v14733_v14, %v14733_v14  ;;  %v9778_v58 = vunpack.i.h.s16 %v14733_v14  ;;  %v12412_v0 = vpack.i.b16 %v14721_v11, %v9768_v9 }
 0x22f   :  { %12807 = vmatmul.mubr.msk.bf16.vlgmr.msra.gmra.mxu1 %vm5967_vm15, %v7611_v39  ;;  %v8400_v43 = vrot.slane %v8385_v49, %v13011_v21  ;;  %v12413_v45 = vpack.i.b16 %v14727_v33, %v9770_v59  ;;  %v9461_v40 = vunpack.i.h.s16 %v9697_v19  ;;  %v10361_v59 = vcombine.high %v12433_v28, %v12433_v28 }
 0x230   :  { %12817 = vmatpush3.bf16.msra.mxu1 %v8089_v63  ;;  %12818 = vmatprep.mubr.msk.bf16.mxu1 %vm5967_vm15, %v14549_v2  ;;  %v8393_v15 = vrot.slane %v8386_v10, %v13011_v21  ;;  %v9706_v63 = vcombine.high %v12408_v4, %v12408_v4  ;;  %v9782_v61 = vunpack.i.h.s16 %v14743_v48 }
 0x231   :  { %12909 = vmatprep.subr.msk.bf16.mxu1 %vm5974_vm12, %v12375_v51  ;;  %v9808_v60 = vcombine.low %v12412_v0, %v12413_v45  ;;  %v9493_v51 = vcombine.low %v14718_v41, %v14721_v11 }
 0x232   :  { %v14701_v38 = vcombine.low %v8393_v15, %v8400_v43  ;;  %v14739_v5 = vrot.slane %v9706_v63, %v13011_v21  ;;  %v9802_v57 = vpack.i.b16 %v6646_v55, %v9782_v61  ;;  %v12401_v55 = vpack.i.b16 %v14561_v36, %v14743_v48  ;;  %v5261_v43 = vld [vmem:[#allocation2 + $0x18] sm:$0xf] }
 0x233   :  { %v9818_v1 = vrot.slane %v9808_v60, %v13011_v21  ;;  %v9903_v36 = vsel %vm5974_vm12, %v12411_v22, 0 }
 0x234   :  { %12825 = vmatmul.mubr.msk.bf16.vlgmr.msra.gmra.mxu0 %vm5967_vm15, %v14701_v38  ;;  %v9780_v13 = vunpack.i.h.s16 %v14739_v5  ;;  %v12414_v62 = vpack.i.b16 %v14739_v5, %v9778_v58  ;;  %v9496_v15 = vcombine.low %v14739_v5, %v12401_v55 }
 0x235   :  { %12835 = vmatpush3.bf16.msra.mxu0 %v9276_v20  ;;  %12836 = vmatprep.mubr.msk.bf16.mxu0 %vm5967_vm15, %v14591_v31  ;;  %v9690_v31 = vrot.slane %v12407_v24, %v13011_v21  ;;  %v9503_v20 = vrot.slane %v9493_v51, %v13011_v21  ;;  %v14828_v51 = vsel %vm5974_vm12, %v12444_v29, 0 }
 0x236   :  { %12912 = vmatprep.subr.msk.bf16.mxu0 %vm5974_vm12, %v12411_v22  ;;  %v14761_v25 = vpack.i.b16 %v14743_v48, %v9780_v13  ;;  %v9524_v22 = vrot.slane %v9496_v15, %v13011_v21  ;;  %v10375_v13 = vrot.slane %v10361_v59, %v13011_v21 }
 0x237   :  { %12819 = vmatmul.mubr.msk.bf16.vlgmr.msra.gmra.mxu1 %vm5967_vm15, %v14628_v44  ;;  %v14730_v27 = vcombine.high %v9690_v31, %v9690_v31  ;;  %v9773_v53 = vunpack.i.h.s16 %v9690_v31  ;;  %v12398_v56 = vpack.i.b16 %v9690_v31, %v14727_v33  ;;  %v5262_v31 = vsel %vm13678_vm4, 0, %v5261_v43  ;;  %vm14996_vm4 = vmand %vm5690_vm5, %vm4029_vm9 }
 0x238   :  { %12829 = vmatpush3.bf16.msra.mxu1 %v9117_v34  ;;  %12830 = vmatprep.mubr.msk.bf16.mxu1 %vm5967_vm15, %v14549_v2  ;;  %v9588_v2 = vsel %vm5974_vm12, %v12397_v18, 0  ;;  %v9811_v39 = vcombine.low %v14761_v25, %v9802_v57  ;;  %v14785_v34 = vld [vmem:[%s15320_s3 + $0xc] sm:$0x1]  ;;  %5263 = vst [vmem:[#allocation2 + $0x18] sm:$0xf] %v5262_v31 }
 0x239   :  { %12911 = vmatprep.subr.msk.bf16.mxu1 %vm5974_vm12, %v12397_v18  ;;  %v9797_v54 = vpack.i.b16 %v9773_v53, %v9772_v26  ;;  %v9810_v30 = vcombine.low %v14730_v27, %v12414_v62  ;;  %v12399_v16 = vpack.i.b16 %v9697_v19, %v9773_v53  ;;  %v12400_v6 = vpack.i.b16 %v14730_v27, %v9461_v40 }
 0x23a   :  { %v9839_v52 = vrot.slane %v9811_v39, %v13011_v21  ;;  %v10368_v26 = vrot.slane %v12433_v28, %v13011_v21  ;;  %v10483_v0 = vunpack.i.h.s16 %v14730_v27  ;;  %v12439_v39 = vld.sshfl [vmem:[#allocation2 + $0x4] sm:$0x32 pattern:$0x75316420] }
 0x23b   :  { %v9809_v3 = vcombine.low %v9797_v54, %v9697_v19  ;;  %v14774_v37 = vrot.slane %v9810_v30, %v13011_v21  ;;  %v9494_v49 = vcombine.low %v12398_v56, %v12399_v16  ;;  %v9495_v10 = vcombine.low %v12400_v6, %v14733_v14 }
 0x23c   :  { %12837 = vmatmul.mubr.msk.bf16.vlgmr.msra.gmra.mxu0 %vm5967_vm15, %v14616_v42  ;;  %v10376_v54 = vcombine.high %v10368_v26, %v10368_v26  ;;  %v10819_v27 = vpack.i.b16 %v9778_v58, %v10483_v0  ;;  %v10827_v40 = vcombine.low %v14727_v33, %v12399_v16  ;;  %v10513_v41 = vcombine.high %v12439_v39, %v12439_v39 }
 0x23d   :  { %v9825_v42 = vrot.slane %v9809_v3, %v13011_v21  ;;  %v9841_v24 = vcombine.low %v14774_v37, %v9839_v52  ;;  %v9510_v35 = vrot.slane %v9494_v49, %v13011_v21  ;;  %v9517_v4 = vrot.slane %v9495_v10, %v13011_v21  ;;  %12847 = vmatpush3.bf16.msra.mxu0 %v9903_v36 }
 0x23e   :  { %12914 = vmatprep.subr.msk.bf16.mxu0 %vm5974_vm12, %v14785_v34  ;;  %v10828_v56 = vcombine.low %v12400_v6, %v10819_v27  ;;  %v10849_v55 = vrot.slane %v10827_v40, %v13011_v21  ;;  %v10520_v15 = vrot.slane %v12439_v39, %v13011_v21  ;;  %v12437_v39 = vld.sshfl [vmem:[#allocation2 + $0x14] sm:$0x13 pattern:$0x75316420] }
 0x23f   :  { %v9840_v7 = vcombine.low %v9818_v1, %v9825_v42  ;;  %12831 = vmatmul.mubr.msk.bf16.vlgmr.msra.gmra.mxu1 %vm5967_vm15, %v14628_v44  ;;  %v9855_v19 = vrot.slane %v9841_v24, %v13011_v21  ;;  %v9525_v63 = vcombine.low %v9503_v20, %v9510_v35  ;;  %v9526_v53 = vcombine.low %v9517_v4, %v9524_v22  ;;  %v12410_v42 = vld.sshfl [vmem:[#allocation2 + $0x18] sm:$0x13 pattern:$0x75316420] }
 0x240   :  { %12841 = vmatpush3.bf16.msra.mxu1 %v9588_v2  ;;  %v9857_v44 = vcombine.low %v14570_v32, %v14575_v47  ;;  %v10469_v2 = vunpack.i.h.s16 %v10368_v26  ;;  %v10471_v32 = vunpack.i.h.s16 %v10375_v13  ;;  %v10473_v47 = vunpack.i.h.s16 %v10376_v54  ;;  %v12440_v35 = vld.sshfl [vmem:[#allocation2 + $0x8] sm:$0x32 pattern:$0x75316420] }
 0x241   :  { %v14792_v18 = vrot.slane %v9840_v7, %v13011_v21  ;;  %12913 = vmatprep.subr.msk.bf16.mxu1 %vm5974_vm12, %v12444_v29  ;;  %v9533_v45 = vrot.slane %v9525_v63, %v13011_v21  ;;  %v9540_v62 = vrot.slane %v9526_v53, %v13011_v21  ;;  %v9752_v14 = vcombine.high %v12410_v42, %v12410_v42  ;;  %v12441_v53 = vld.sshfl [vmem:[#allocation2 + $0xc] sm:$0x32 pattern:$0x75316420] }
 0x242   :  { %v14817_v60 = vrot.slane %v9857_v44, %v13011_v21  ;;  %v12453_v3 = vpack.i.b16 %v10375_v13, %v10469_v2  ;;  %v12454_v30 = vpack.i.b16 %v10376_v54, %v10471_v32  ;;  %v10814_v1 = vpack.i.b16 %v9768_v9, %v10473_v47 }
 0x243   :  { %v9856_v17 = vcombine.low %v14792_v18, %v9855_v19  ;;  %v9541_v57 = vcombine.low %v9533_v45, %v9540_v62  ;;  %v9759_v58 = vrot.slane %v12410_v42, %v13011_v21  ;;  %v10856_v16 = vrot.slane %v10828_v56, %v13011_v21 }
 0x244   :  { %v10825_v52 = vcombine.low %v12453_v3, %v12454_v30  ;;  %v10826_v33 = vcombine.low %v10814_v1, %v14721_v11  ;;  %v9766_v9 = vrot.slane %v9752_v14, %v13011_v21  ;;  %v10527_v63 = vrot.slane %v10513_v41, %v13011_v21 }
 0x245   :  { %12848 = vmatprep.mubr.msk.bf16.mxu0 %vm5967_vm15, %v9856_v17  ;;  %12842 = vmatprep.mubr.msk.bf16.mxu1 %vm5967_vm15, %v9541_v57  ;;  %v9767_v6 = vcombine.high %v9759_v58, %v9759_v58  ;;  %v9788_v7 = vunpack.i.h.s16 %v9759_v58  ;;  %v10858_v43 = vcombine.low %v10849_v55, %v10856_v16  ;;  %v10528_v44 = vcombine.high %v10520_v15, %v10520_v15 }
 0x246   :  { %v10835_v49 = vrot.slane %v10825_v52, %v13011_v21  ;;  %v10842_v10 = vrot.slane %v10826_v33, %v13011_v21  ;;  %v9790_v20 = vunpack.i.h.s16 %v9766_v9  ;;  %v9543_v29 = vcombine.low %v9759_v58, %v9766_v9 }
 0x247   :  { %v9792_v36 = vunpack.i.h.s16 %v9767_v6  ;;  %v12416_v28 = vpack.i.b16 %v9766_v9, %v9788_v7  ;;  %v9477_v24 = vunpack.i.l.s16 %v9767_v6  ;;  %v14838_v4 = vrot.slane %v10858_v43, %v13011_v21  ;;  %v12477_v9 = vld.sshfl [vmem:[#allocation2 + $0x10] sm:$0x32 pattern:$0x75316420] }
 0x248   :  { %v10857_v11 = vcombine.low %v10835_v49, %v10842_v10  ;;  %v12417_v22 = vpack.i.b16 %v9767_v6, %v9790_v20  ;;  %v9557_v26 = vrot.slane %v9543_v29, %v13011_v21  ;;  %v10537_v0 = vcombine.high %v12440_v35, %v12440_v35  ;;  %v14880_v10 = vld [vmem:[%s15320_s3 + $0xe] sm:$0x1] }
 0x249   :  { %v9879_v31 = vrot.slane %v9792_v36, %v13011_v21  ;;  %v9564_v19 = vrot.slane %v9477_v24, %v13011_v21  ;;  %v10529_v54 = vcombine.high %v10527_v63, %v10527_v63  ;;  %v10544_v32 = vrot.slane %v12440_v35, %v13011_v21 }
 0x24a   :  { %v10865_v59 = vrot.slane %v10857_v11, %v13011_v21  ;;  %v9858_v17 = vcombine.low %v12416_v28, %v12417_v22  ;;  %v9565_v2 = vcombine.low %v14610_v8, %v9557_v26  ;;  %v14853_v47 = vrot.slane %v10537_v0, %v13011_v21 }
 0x24b   :  { %v14846_v45 = vrot.slane %v9879_v31, %v13011_v21  ;;  %v9579_v13 = vrot.slane %v9564_v19, %v13011_v21  ;;  %v10561_v57 = vcombine.high %v12441_v53, %v12441_v53  ;;  %v10568_v3 = vrot.slane %v12441_v53, %v13011_v21 }
 0x24c   :  { %v10873_v62 = vcombine.low %v10865_v59, %v14838_v4  ;;  %v14856_v27 = vrot.slane %v9858_v17, %v13011_v21  ;;  %v10666_v40 = vcombine.low %v10527_v63, %v10528_v44  ;;  %v9572_v30 = vrot.slane %v9565_v2, %v13011_v21 }
 0x24d   :  { %v14860_v1 = vcombine.high %v10544_v32, %v10544_v32  ;;  %v14864_v56 = vcombine.high %v14853_v47, %v14853_v47  ;;  %v10632_v8 = vunpack.i.h.s16 %v14853_v47  ;;  %v10575_v55 = vrot.slane %v10561_v57, %v13011_v21 }
 0x24e   :  { %v9880_v42 = vcombine.low %v14817_v60, %v14856_v27  ;;  %v10576_v14 = vcombine.high %v10568_v3, %v10568_v3  ;;  %v12445_v58 = vpack.i.b16 %v14853_v47, %v10529_v54  ;;  %v9580_v52 = vcombine.low %v9572_v30, %v9579_v13 }
 0x24f   :  { %v10634_v33 = vunpack.i.h.s16 %v14860_v1  ;;  %v12446_v16 = vpack.i.b16 %v14860_v1, %v10632_v8  ;;  %v10676_v41 = vrot.slane %v10666_v40, %v13011_v21  ;;  %v10577_v7 = vcombine.high %v10575_v55, %v10575_v55 }
 0x250   :  { %v9887_v6 = vrot.slane %v9880_v42, %v13011_v21  ;;  %v10920_v49 = vsel %vm5974_vm12, %v14785_v34, 0  ;;  %v10453_v60 = vcombine.high %v12437_v39, %v12437_v39  ;;  %12843 = vmatmul.mubr.msk.bf16.vlgmr.msra.gmra.mxu1 %vm5967_vm15, %v9580_v52  ;;  %v10460_v20 = vrot.slane %v12437_v39, %v13011_v21 }
 0x251   :  { %v12447_v43 = vpack.i.b16 %v14864_v56, %v10634_v33  ;;  %v10667_v15 = vcombine.low %v12445_v58, %v12446_v16  ;;  %v10874_v36 = vcombine.low %v14739_v5, %v14743_v48  ;;  %12853 = vmatpush3.bf16.msra.mxu1 %v14828_v51  ;;  %v12448_v34 = vpack.i.b16 %v14638_v12, %v10577_v7  ;;  %v12480_v5 = vld [vmem:[%s15320_s3 + $0xf] sm:$0x1] }
 0x252   :  { %v9895_v28 = vcombine.low %v9887_v6, %v14846_v45  ;;  %v14891_v24 = vrot.slane %v10453_v60, %v13011_v21  ;;  %v11351_v35 = vcombine.high %v12477_v9, %v12477_v9  ;;  %v14894_v29 = vcombine.high %v10460_v20, %v10460_v20  ;;  %12915 = vmatprep.subr.msk.bf16.mxu1 %vm5974_vm12, %v14880_v10 }
 0x253   :  { %v10668_v11 = vcombine.low %v12447_v43, %v10575_v55  ;;  %v10683_v4 = vrot.slane %v10667_v15, %v13011_v21  ;;  %v10489_v22 = vunpack.i.h.s16 %v10460_v20  ;;  %v10669_v12 = vcombine.low %v10576_v14, %v12448_v34 }
 0x254   :  { %12849 = vmatmul.mubr.msk.bf16.vlgmr.msra.gmra.mxu0 %vm5967_vm15, %v9895_v28  ;;  %v10491_v51 = vunpack.i.h.s16 %v14891_v24  ;;  %v11358_v31 = vrot.slane %v12477_v9, %v13011_v21  ;;  %v10493_v59 = vunpack.i.h.s16 %v14894_v29  ;;  %v10882_v26 = vrot.slane %v10874_v36, %v13011_v21 }
 0x255   :  { %12860 = vmatprep.mubr.msk.bf16.mxu0 %vm5967_vm15, %v10873_v62  ;;  %v10690_v19 = vrot.slane %v10668_v11, %v13011_v21  ;;  %v10698_v63 = vcombine.low %v10676_v41, %v10683_v4  ;;  %12859 = vmatpush3.bf16.msra.mxu0 %v10920_v49  ;;  %v10697_v53 = vrot.slane %v10669_v12, %v13011_v21  ;;  %v11422_v62 = vunpack.i.h.s16 %v10575_v55 }
 0x256   :  { %v12457_v44 = vpack.i.b16 %v14891_v24, %v10489_v22  ;;  %v12458_v0 = vpack.i.b16 %v14894_v29, %v10491_v51  ;;  %v11365_v17 = vrot.slane %v11351_v35, %v13011_v21  ;;  %12916 = vmatprep.subr.msk.bf16.mxu0 %vm5974_vm12, %v12480_v5  ;;  %v10896_v13 = vrot.slane %v10493_v59, %v13011_v21 }
 0x257   :  { %v11366_v54 = vcombine.high %v11358_v31, %v11358_v31  ;;  %v11424_v2 = vunpack.i.h.s16 %v10576_v14  ;;  %v10699_v32 = vcombine.low %v10690_v19, %v10697_v53  ;;  %v10706_v57 = vrot.slane %v10698_v63, %v13011_v21 }
 0x258   :  { %v10875_v3 = vcombine.low %v12457_v44, %v12458_v0  ;;  %v11367_v40 = vcombine.high %v11365_v17, %v11365_v17  ;;  %v12481_v30 = vpack.i.b16 %v10575_v55, %v14864_v56  ;;  %v12482_v8 = vpack.i.b16 %v10576_v14, %v11422_v62 }
 0x259   :  { %v12483_v39 = vpack.i.b16 %v10577_v7, %v11424_v2  ;;  %v11456_v42 = vcombine.low %v14853_v47, %v14860_v1  ;;  %v10713_v58 = vrot.slane %v10699_v32, %v13011_v21  ;;  %v10911_v16 = vrot.slane %v10896_v13, %v13011_v21  ;;  %v12479_v7 = vld.sshfl [vmem:[#allocation2 + $0x18] sm:$0x32 pattern:$0x75316420] }
 0x25a   :  { %v10889_v52 = vrot.slane %v10875_v3, %v13011_v21  ;;  %v12484_v33 = vpack.i.b16 %v14676_v50, %v11367_v40  ;;  %v11457_v41 = vcombine.low %v12481_v30, %v12482_v8  ;;  %v11130_v47 = vpack.i.b16 %v10489_v22, %v9782_v61 }
 0x25b   :  { %v11458_v9 = vcombine.low %v12483_v39, %v11365_v17  ;;  %v11466_v6 = vrot.slane %v11456_v42, %v13011_v21  ;;  %v10714_v49 = vcombine.low %v10706_v57, %v10713_v58  ;;  %v11551_v1 = vsel %vm5974_vm12, %v12480_v5, 0 }
 0x25c   :  { %v10897_v60 = vcombine.low %v10882_v26, %v10889_v52  ;;  %v11459_v56 = vcombine.low %v11366_v54, %v12484_v33  ;;  %v11473_v55 = vrot.slane %v11457_v41, %v13011_v21  ;;  %v11139_v36 = vcombine.low %v14761_v25, %v11130_v47 }
 0x25d   :  { %v11480_v14 = vrot.slane %v11458_v9, %v13011_v21  ;;  %12854 = vmatprep.mubr.msk.bf16.mxu1 %vm5967_vm15, %v10714_v49  ;;  %v11399_v35 = vcombine.high %v12479_v7, %v12479_v7  ;;  %v11406_v61 = vrot.slane %v12479_v7, %v13011_v21  ;;  %v11432_v5 = vunpack.i.h.s16 %v14676_v50 }
 0x25e   :  { %v10904_v43 = vrot.slane %v10897_v60, %v13011_v21  ;;  %v11487_v15 = vrot.slane %v11459_v56, %v13011_v21  ;;  %v11488_v20 = vcombine.low %v11466_v6, %v11473_v55  ;;  %v11167_v48 = vrot.slane %v11139_v36, %v13011_v21  ;;  %12855 = vmatmul.mubr.msk.bf16.vlgmr.msra.gmra.mxu1 %vm5967_vm15, %v14701_v38 }
 0x25f   :  { %v11413_v22 = vrot.slane %v11399_v35, %v13011_v21  ;;  %v11414_v25 = vcombine.high %v11406_v61, %v11406_v61  ;;  %v11434_v51 = vunpack.i.h.s16 %v14679_v23  ;;  %v11185_v31 = vcombine.low %v14891_v24, %v14894_v29 }
 0x260   :  { %v10912_v28 = vcombine.low %v10904_v43, %v10911_v16  ;;  %v11489_v34 = vcombine.low %v11480_v14, %v11487_v15  ;;  %v11496_v11 = vrot.slane %v11488_v20, %v13011_v21  ;;  %v11169_v12 = vcombine.low %v14774_v37, %v11167_v48 }
 0x261   :  { %v11415_v63 = vcombine.high %v11413_v22, %v11413_v22  ;;  %v12485_v59 = vpack.i.b16 %v14679_v23, %v11432_v5  ;;  %v12486_v26 = vpack.i.b16 %v14683_v46, %v11434_v51  ;;  %v11506_v53 = vcombine.low %v11413_v22, %v11414_v25 }
 0x262   :  { %12861 = vmatmul.mubr.msk.bf16.vlgmr.msra.gmra.mxu0 %vm5967_vm15, %v10912_v28  ;;  %v11503_v4 = vrot.slane %v11489_v34, %v13011_v21  ;;  %v11193_v50 = vrot.slane %v11185_v31, %v13011_v21  ;;  %v11183_v37 = vrot.slane %v11169_v12, %v13011_v21  ;;  %v11231_v23 = vsel %vm5974_vm12, %v14880_v10, 0 }
 0x263   :  { %12871 = vmatpush3.bf16.msra.mxu0 %v11551_v1  ;;  %v11440_v44 = vunpack.i.l.s16 %v11415_v63  ;;  %v11505_v0 = vcombine.low %v12485_v59, %v12486_v26  ;;  %v11520_v17 = vrot.slane %v11506_v53, %v13011_v21  ;;  %12865 = vmatpush3.bf16.msra.mxu1 %v11231_v23 }
 0x264   :  { %v11504_v19 = vcombine.low %v11496_v11, %v11503_v4  ;;  %v11208_v46 = vcombine.low %v11193_v50, %v14856_v27  ;;  %v11184_v29 = vcombine.low %v14792_v18, %v11183_v37 }
 0x265   :  { %v11527_v13 = vrot.slane %v11440_v44, %v13011_v21  ;;  %v11513_v24 = vrot.slane %v11505_v0, %v13011_v21 }
 0x266   :  { %12872 = vmatprep.mubr.msk.bf16.mxu0 %vm5967_vm15, %v11504_v19  ;;  %12866 = vmatprep.mubr.msk.bf16.mxu1 %vm5967_vm15, %v11184_v29  ;;  %v11215_v32 = vrot.slane %v11208_v46, %v13011_v21 }
 0x267   :  { %v11528_v54 = vcombine.low %v11513_v24, %v11520_v17  ;;  %v11542_v62 = vrot.slane %v11527_v13, %v13011_v21 }
 0x268   :  { %v11223_v27 = vcombine.low %v11215_v32, %v14846_v45 }
 0x269   :  { %v11535_v2 = vrot.slane %v11528_v54, %v13011_v21 }
 0x26a   :  { %12867 = vmatmul.mubr.msk.bf16.vlgmr.msra.gmra.mxu1 %vm5967_vm15, %v11223_v27 }
 0x26b   :  { %v11543_v57 = vcombine.low %v11535_v2, %v11542_v62 }
 0x26d   :  { %12873 = vmatmul.mubr.msk.bf16.vlgmr.msra.gmra.mxu0 %vm5967_vm15, %v11543_v57 }
 0x2c9   :  { %v12790_v18 = vpop.f32.mrf.mxu0 }
 0x2cb   :  { %v6171_v10 = vpop.f32.mrf.mxu0 }
 0x2cd   :  { %v12791_v30 = vpop.f32.mrf.mxu0 }
 0x2cf   :  { %v6174_v42 = vpop.f32.mrf.mxu0 }
 0x2d0   :  { %v12784_v3 = vpop.f32.mrf.mxu1 }
 0x2d1   :  { %v6180_v39 = vadd.f32 %v12790_v18, %v12784_v3 }
 0x2d2   :  { %v6012_v40 = vpop.f32.mrf.mxu1 }
 0x2d3   :  { %v6172_v52 = vadd.f32 %v6171_v10, %v6012_v40 }
 0x2d4   :  { %v12785_v38 = vpop.f32.mrf.mxu1 }
 0x2d5   :  { %v6183_v41 = vadd.f32 %v12791_v30, %v12785_v38 }
 0x2d6   :  { %v6015_v8 = vpop.f32.mrf.mxu1 }
 0x2d7   :  { %v6175_v1 = vadd.f32 %v6174_v42, %v6015_v8 }
 0x2d8   :  { %v12796_v58 = vpop.f32.mrf.mxu1 }
 0x2d9   :  { %v6499_v33 = vadd.f32 %v12796_v58, %v6180_v39 }
 0x2da   :  { %v6482_v16 = vpop.f32.mrf.mxu1 }
 0x2db   :  { %v12802_v9 = vpop.f32.mrf.mxu0  ;;  %v6497_v6 = vadd.f32 %v6482_v16, %v6172_v52 }
 0x2dc   :  { %v6814_v49 = vadd.f32 %v12802_v9, %v6499_v33  ;;  %v12797_v45 = vpop.f32.mrf.mxu1 }
 0x2dd   :  { %v6797_v60 = vpop.f32.mrf.mxu0  ;;  %v6500_v56 = vadd.f32 %v12797_v45, %v6183_v41 }
 0x2de   :  { %v6918_v55 = vcombine.high %v6814_v49, %v6814_v49  ;;  %v6812_v14 = vadd.f32 %v6797_v60, %v6497_v6  ;;  %v6485_v47 = vpop.f32.mrf.mxu1  ;;  %v6925_v35 = vrot.slane %v6814_v49, %v13011_v21  ;;  %v7199_v60 = vld [vmem:[%s15321_s5 + $0x10] sm:$0x7] }
 0x2df   :  { %v12803_v15 = vpop.f32.mrf.mxu0  ;;  %v6498_v34 = vadd.f32 %v6485_v47, %v6175_v1  ;;  %v7187_v47 = vld [vmem:[%s15321_s5] sm:$0x7] }
 0x2e0   :  { %v6932_v7 = vrot.slane %v6918_v55, %v13011_v21  ;;  %v6820_v43 = vcombine.high %v6812_v14, %v6812_v14  ;;  %v6827_v20 = vrot.slane %v6812_v14, %v13011_v21  ;;  %v6815_v36 = vadd.f32 %v12803_v15, %v6500_v56 }
 0x2e1   :  { %v6800_v19 = vpop.f32.mrf.mxu0  ;;  %v6933_v53 = vcombine.high %v6925_v35, %v6925_v35  ;;  %v6941_v54 = vrot.slane %v6925_v35, %v13011_v21 }
 0x2e2   :  { %v6934_v28 = vcombine.high %v6932_v7, %v6932_v7  ;;  %v6834_v11 = vrot.slane %v6820_v43, %v13011_v21  ;;  %v6835_v48 = vcombine.high %v6827_v20, %v6827_v20  ;;  %v6973_v61 = vrot.slane %v6815_v36, %v13011_v21 }
 0x2e3   :  { %v6948_v4 = vrot.slane %v6932_v7, %v13011_v21  ;;  %v6843_v5 = vrot.slane %v6827_v20, %v13011_v21  ;;  %v6813_v26 = vadd.f32 %v6800_v19, %v6498_v34  ;;  %v14983_v32 = vpop.f32.mrf.mxu0  ;;  %v6955_v57 = vrot.slane %v6933_v53, %v13011_v21 }
 0x2e4   :  { %v6962_v22 = vrot.slane %v6934_v28, %v13011_v21  ;;  %v6836_v12 = vcombine.high %v6834_v11, %v6834_v11  ;;  %v6850_v25 = vrot.slane %v6834_v11, %v13011_v21  ;;  %v6857_v51 = vrot.slane %v6835_v48, %v13011_v21 }
 0x2e5   :  { %v6980_v31 = vrot.slane %v6973_v61, %v13011_v21  ;;  %v6869_v2 = vcombine.high %v6813_v26, %v6813_v26  ;;  %v6876_v10 = vrot.slane %v6813_v26, %v13011_v21  ;;  %v6963_v52 = vcombine.high %v6941_v54, %v6941_v54  ;;  %v7814_v9 = vpop.f32.mrf.mxu0 }
 0x2e6   :  { %v7137_v63 = vcombine.low %v6948_v4, %v6962_v22  ;;  %v12299_v59 = vcombine.high %v6948_v4, %v6962_v22  ;;  %v6864_v44 = vrot.slane %v6836_v12, %v13011_v21  ;;  %v6981_v50 = vcombine.low %v6843_v5, %v6857_v51 }
 0x2e7   :  { %v12297_v37 = vcombine.high %v6843_v5, %v6857_v51  ;;  %v6866_v13 = vcombine.high %v6850_v25, %v6850_v25  ;;  %v7003_v46 = vrot.slane %v6850_v25, %v13011_v21  ;;  %v7159_v29 = vrot.slane %v6980_v31, %v13011_v21  ;;  %v12815_v22 = vpop.f32.mrf.mxu0 }
 0x2e8   :  { %v7145_v0 = vrot.slane %v7137_v63, %v13011_v21  ;;  %v7152_v17 = vrot.slane %v12299_v59, %v13011_v21  ;;  %v6989_v24 = vrot.slane %v6981_v50, %v13011_v21  ;;  %v6868_v18 = vcombine.high %v6864_v44, %v6864_v44 }
 0x2e9   :  { %v6996_v23 = vrot.slane %v12297_v37, %v13011_v21  ;;  %v7020_v3 = vcombine.low %v6864_v44, %v6866_v13  ;;  %v7174_v30 = vrot.slane %v7159_v29, %v13011_v21  ;;  %v6883_v38 = vrot.slane %v6869_v2, %v13011_v21  ;;  %v7190_v29 = vld [vmem:[%s15321_s5 + $0x4] sm:$0x7] }
 0x2ea   :  { %v7160_v62 = vcombine.low %v7145_v0, %v7152_v17  ;;  %v7018_v39 = vrot.slane %v7003_v46, %v13011_v21  ;;  %v6884_v42 = vcombine.high %v6876_v10, %v6876_v10  ;;  %v6892_v58 = vrot.slane %v6876_v10, %v13011_v21  ;;  %v7817_v0 = vpop.f32.mrf.mxu0 }
 0x2eb   :  { %v7004_v27 = vcombine.low %v6989_v24, %v6996_v23  ;;  %v6885_v16 = vcombine.high %v6883_v38, %v6883_v38  ;;  %v6899_v41 = vrot.slane %v6883_v38, %v13011_v21  ;;  %v6965_v49 = vcombine.high %v6955_v57, %v6955_v57 }
 0x2ec   :  { %v7167_v40 = vrot.slane %v7160_v62, %v13011_v21  ;;  %v6906_v56 = vrot.slane %v6884_v42, %v13011_v21  ;;  %v7021_v55 = vcombine.low %v6868_v18, %v6892_v58  ;;  %v7028_v15 = vrot.slane %v7020_v3, %v13011_v21  ;;  %v7193_v3 = vld [vmem:[%s15321_s5 + $0x8] sm:$0x7] }
 0x2ed   :  { %v7011_v8 = vrot.slane %v7004_v27, %v13011_v21  ;;  %v6913_v7 = vrot.slane %v6885_v16, %v13011_v21  ;;  %v6915_v43 = vcombine.high %v6899_v41, %v6899_v41  ;;  %v7099_v11 = vcombine.low %v6955_v57, %v6963_v52 }
 0x2ee   :  { %v7175_v33 = vcombine.low %v7167_v40, %v7174_v30  ;;  %v7035_v36 = vrot.slane %v7021_v55, %v13011_v21  ;;  %v7042_v28 = vrot.slane %v6906_v56, %v13011_v21  ;;  %v12298_v34 = vcombine.high %v6892_v58, %v6906_v56 }
 0x2ef   :  { %v7019_v45 = vcombine.low %v7011_v8, %v7018_v39  ;;  %v12808_v14 = vpop.f32.mrf.mxu1  ;;  %v6917_v61 = vcombine.high %v6913_v7, %v6913_v7  ;;  %v7060_v4 = vcombine.low %v6899_v41, %v6913_v7  ;;  %v7081_v19 = vrot.slane %v6915_v43, %v13011_v21 }
 0x2f0   :  { %v7185_v1 = vpack.c.bf16 %v7175_v33, %v7175_v33  ;;  %v7043_v12 = vcombine.low %v7028_v15, %v7035_v36  ;;  %v7067_v51 = vrot.slane %v12298_v34, %v13011_v21  ;;  %v7057_v26 = vrot.slane %v7042_v28, %v13011_v21 }
 0x2f1   :  { %v7181_v20 = vpack.c.bf16 %v7019_v45, %v7019_v45  ;;  %v7655_v35 = vpop.f32.mrf.mxu1  ;;  %v7074_v31 = vrot.slane %v7060_v4, %v13011_v21  ;;  %v7098_v63 = vcombine.low %v6917_v61, %v6941_v54  ;;  %v7113_v53 = vrot.slane %v7099_v11, %v13011_v21 }
 0x2f2   :  { %v7200_v48 = vsel %vm14996_vm4, %v7185_v1, %v7199_v60  ;;  %v7050_v59 = vrot.slane %v7043_v12, %v13011_v21  ;;  %v7120_v44 = vrot.slane %v6965_v49, %v13011_v21  ;;  %v7096_v23 = vrot.slane %v7081_v19, %v13011_v21 }
 0x2f3   :  { %v7188_v5 = vsel %vm14996_vm4, %v7181_v20, %v7187_v47  ;;  %7201 = vst [vmem:[%s15321_s5 + $0x10] sm:$0x7] %v7200_v48  ;;  %v12809_v25 = vpop.f32.mrf.mxu1  ;;  %v7082_v50 = vcombine.low %v7067_v51, %v7074_v31  ;;  %v7106_v37 = vrot.slane %v7098_v63, %v13011_v21  ;;  %v7823_v27 = vadd.f32 %v14983_v32, %v12808_v14  ;;  %v7196_v32 = vld [vmem:[%s15321_s5 + $0xc] sm:$0x7] }
 0x2f4   :  { %7189 = vst [vmem:[%s15321_s5] sm:$0x7] %v7188_v5  ;;  %v7058_v17 = vcombine.low %v7050_v59, %v7057_v26  ;;  %v7135_v62 = vrot.slane %v7120_v44, %v13011_v21  ;;  %v12826_v18 = vpop.f32.mrf.mxu0  ;;  %v7815_v8 = vadd.f32 %v7814_v9, %v7655_v35  ;;  %v7826_v49 = vadd.f32 %v12815_v22, %v12809_v25 }
 0x2f5   :  { %v7658_v13 = vpop.f32.mrf.mxu1  ;;  %v7089_v24 = vrot.slane %v7082_v50, %v13011_v21  ;;  %v7121_v46 = vcombine.low %v7106_v37, %v7113_v53 }
 0x2f6   :  { %v7182_v54 = vpack.c.bf16 %v7058_v17, %v7058_v17  ;;  %v8445_v16 = vpop.f32.mrf.mxu0  ;;  %v7818_v47 = vadd.f32 %v7817_v0, %v7658_v13 }
 0x2f7   :  { %v7097_v2 = vcombine.low %v7089_v24, %v7096_v23  ;;  %v7128_v57 = vrot.slane %v7121_v46, %v13011_v21  ;;  %v12820_v40 = vpop.f32.mrf.mxu1 }
 0x2f8   :  { %v7191_v10 = vsel %vm14996_vm4, %v7182_v54, %v7190_v29  ;;  %v8142_v39 = vadd.f32 %v12820_v40, %v7823_v27  ;;  %v12827_v43 = vpop.f32.mrf.mxu0 }
 0x2f9   :  { %v7136_v30 = vcombine.low %v7128_v57, %v7135_v62  ;;  %v7183_v38 = vpack.c.bf16 %v7097_v2, %v7097_v2  ;;  %7192 = vst [vmem:[%s15321_s5 + $0x4] sm:$0x7] %v7191_v10  ;;  %v8125_v42 = vpop.f32.mrf.mxu1 }
 0x2fa   :  { %v8462_v33 = vadd.f32 %v12826_v18, %v8142_v39  ;;  %v8140_v41 = vadd.f32 %v8125_v42, %v7815_v8  ;;  %v8448_v31 = vpop.f32.mrf.mxu0 }
 0x2fb   :  { %v7184_v58 = vpack.c.bf16 %v7136_v30, %v7136_v30  ;;  %v7194_v52 = vsel %vm14996_vm4, %v7183_v38, %v7193_v3  ;;  %v12821_v45 = vpop.f32.mrf.mxu1 }
 0x2fc   :  { %7195 = vst [vmem:[%s15321_s5 + $0x8] sm:$0x7] %v7194_v52  ;;  %v8566_v60 = vcombine.high %v8462_v33, %v8462_v33  ;;  %v8460_v56 = vadd.f32 %v8445_v16, %v8140_v41  ;;  %v8143_v55 = vadd.f32 %v12821_v45, %v7826_v49  ;;  %v8573_v34 = vrot.slane %v8462_v33, %v13011_v21  ;;  %v12367_v49 = vld [vmem:[%s15321_s5 + $0x24] sm:$0x7] }
 0x2fd   :  { %v7197_v9 = vsel %vm14996_vm4, %v7184_v58, %v7196_v32  ;;  %v8128_v14 = vpop.f32.mrf.mxu1 }
 0x2fe   :  { %7198 = vst [vmem:[%s15321_s5 + $0xc] sm:$0x7] %v7197_v9  ;;  %v8580_v1 = vrot.slane %v8566_v60, %v13011_v21  ;;  %v8468_v7 = vcombine.high %v8460_v56, %v8460_v56  ;;  %v8475_v15 = vrot.slane %v8460_v56, %v13011_v21  ;;  %v8463_v20 = vadd.f32 %v12827_v43, %v8143_v55  ;;  %v12359_v60 = vld [vmem:[%s15321_s5 + $0x14] sm:$0x7] }
 0x2ff   :  { %v8141_v28 = vadd.f32 %v8128_v14, %v7818_v47  ;;  %v8581_v26 = vcombine.high %v8573_v34, %v8573_v34  ;;  %v8589_v29 = vrot.slane %v8573_v34, %v13011_v21 }
 0x300   :  { %v8582_v36 = vcombine.high %v8580_v1, %v8580_v1  ;;  %v8482_v35 = vrot.slane %v8468_v7, %v13011_v21  ;;  %v8483_v11 = vcombine.high %v8475_v15, %v8475_v15  ;;  %v8621_v48 = vrot.slane %v8463_v20, %v13011_v21 }
 0x301   :  { %v8596_v61 = vrot.slane %v8580_v1, %v13011_v21  ;;  %v8491_v22 = vrot.slane %v8475_v15, %v13011_v21  ;;  %v8461_v59 = vadd.f32 %v8448_v31, %v8141_v28  ;;  %v8603_v2 = vrot.slane %v8581_v26, %v13011_v21 }
 0x302   :  { %v8610_v4 = vrot.slane %v8582_v36, %v13011_v21  ;;  %v8484_v5 = vcombine.high %v8482_v35, %v8482_v35  ;;  %v8498_v12 = vrot.slane %v8482_v35, %v13011_v21  ;;  %v8505_v25 = vrot.slane %v8483_v11, %v13011_v21  ;;  %v12832_v35 = vpop.f32.mrf.mxu1 }
 0x303   :  { %v8628_v51 = vrot.slane %v8621_v48, %v13011_v21  ;;  %v8517_v62 = vcombine.high %v8461_v59, %v8461_v59  ;;  %v8524_v18 = vrot.slane %v8461_v59, %v13011_v21  ;;  %v8611_v42 = vcombine.high %v8589_v29, %v8589_v29 }
 0x304   :  { %v8785_v19 = vcombine.low %v8596_v61, %v8610_v4  ;;  %v12358_v63 = vcombine.high %v8596_v61, %v8610_v4  ;;  %v8512_v53 = vrot.slane %v8484_v5, %v13011_v21  ;;  %v8629_v44 = vcombine.low %v8491_v22, %v8505_v25  ;;  %v9153_v26 = vpop.f32.mrf.mxu1 }
 0x305   :  { %v12356_v50 = vcombine.high %v8491_v22, %v8505_v25  ;;  %v8514_v17 = vcombine.high %v8498_v12, %v8498_v12  ;;  %v8651_v23 = vrot.slane %v8498_v12, %v13011_v21  ;;  %v8807_v46 = vrot.slane %v8628_v51, %v13011_v21  ;;  %v12838_v51 = vpop.f32.mrf.mxu0 }
 0x306   :  { %v8793_v37 = vrot.slane %v8785_v19, %v13011_v21  ;;  %v8800_v0 = vrot.slane %v12358_v63, %v13011_v21  ;;  %v8637_v13 = vrot.slane %v8629_v44, %v13011_v21  ;;  %v8516_v27 = vcombine.high %v8512_v53, %v8512_v53 }
 0x307   :  { %v8644_v24 = vrot.slane %v12356_v50, %v13011_v21  ;;  %v8668_v10 = vcombine.low %v8512_v53, %v8514_v17  ;;  %v8822_v40 = vrot.slane %v8807_v46, %v13011_v21  ;;  %v8531_v30 = vrot.slane %v8517_v62, %v13011_v21  ;;  %v12363_v62 = vld [vmem:[%s15321_s5 + $0x1c] sm:$0x7] }
 0x308   :  { %v8808_v54 = vcombine.low %v8793_v37, %v8800_v0  ;;  %v8666_v8 = vrot.slane %v8651_v23, %v13011_v21  ;;  %v8532_v39 = vcombine.high %v8524_v18, %v8524_v18  ;;  %v8540_v32 = vrot.slane %v8524_v18, %v13011_v21  ;;  %v12361_v0 = vld [vmem:[%s15321_s5 + $0x18] sm:$0x7] }
 0x309   :  { %v8652_v57 = vcombine.low %v8637_v13, %v8644_v24  ;;  %v8533_v52 = vcombine.high %v8531_v30, %v8531_v30  ;;  %v8547_v33 = vrot.slane %v8531_v30, %v13011_v21  ;;  %v8613_v16 = vcombine.high %v8603_v2, %v8603_v2  ;;  %v9312_v13 = vpop.f32.mrf.mxu0 }
 0x30a   :  { %v8815_v3 = vrot.slane %v8808_v54, %v13011_v21  ;;  %v8554_v45 = vrot.slane %v8532_v39, %v13011_v21  ;;  %v8669_v9 = vcombine.low %v8516_v27, %v8540_v32  ;;  %v8676_v47 = vrot.slane %v8668_v10, %v13011_v21  ;;  %v12365_v27 = vld [vmem:[%s15321_s5 + $0x20] sm:$0x7] }
 0x30b   :  { %v8659_v38 = vrot.slane %v8652_v57, %v13011_v21  ;;  %v8561_v55 = vrot.slane %v8533_v52, %v13011_v21  ;;  %v8563_v14 = vcombine.high %v8547_v33, %v8547_v33  ;;  %v8747_v20 = vcombine.low %v8603_v2, %v8611_v42  ;;  %v12839_v18 = vpop.f32.mrf.mxu0 }
 0x30c   :  { %v8823_v58 = vcombine.low %v8815_v3, %v8822_v40  ;;  %v8683_v7 = vrot.slane %v8669_v9, %v13011_v21  ;;  %v8690_v43 = vrot.slane %v8554_v45, %v13011_v21  ;;  %v12357_v15 = vcombine.high %v8540_v32, %v8554_v45 }
 0x30d   :  { %v8667_v41 = vcombine.low %v8659_v38, %v8666_v8  ;;  %v8565_v28 = vcombine.high %v8561_v55, %v8561_v55  ;;  %v8708_v34 = vcombine.low %v8547_v33, %v8561_v55  ;;  %v8729_v22 = vrot.slane %v8563_v14, %v13011_v21  ;;  %v9315_v8 = vpop.f32.mrf.mxu0 }
 0x30e   :  { %v8833_v56 = vpack.c.bf16 %v8823_v58, %v8823_v58  ;;  %v8691_v48 = vcombine.low %v8676_v47, %v8683_v7  ;;  %v8715_v61 = vrot.slane %v12357_v15, %v13011_v21  ;;  %v8705_v25 = vrot.slane %v8690_v43, %v13011_v21 }
 0x30f   :  { %v8829_v1 = vpack.c.bf16 %v8667_v41, %v8667_v41  ;;  %v8722_v4 = vrot.slane %v8708_v34, %v13011_v21  ;;  %v8746_v5 = vcombine.low %v8565_v28, %v8589_v29  ;;  %v8761_v31 = vrot.slane %v8747_v20, %v13011_v21  ;;  %v12833_v29 = vpop.f32.mrf.mxu1 }
 0x310   :  { %v8848_v36 = vsel %vm14996_vm4, %v8833_v56, %v12367_v49  ;;  %v8698_v12 = vrot.slane %v8691_v48, %v13011_v21  ;;  %v8768_v19 = vrot.slane %v8613_v16, %v13011_v21  ;;  %v8744_v50 = vrot.slane %v8729_v22, %v13011_v21 }
 0x311   :  { %v8836_v11 = vsel %vm14996_vm4, %v8829_v1, %v12359_v60  ;;  %12368 = vst [vmem:[%s15321_s5 + $0x24] sm:$0x7] %v8848_v36  ;;  %v8730_v63 = vcombine.low %v8715_v61, %v8722_v4  ;;  %v8754_v59 = vrot.slane %v8746_v5, %v13011_v21  ;;  %v9156_v40 = vpop.f32.mrf.mxu1  ;;  %v9321_v38 = vadd.f32 %v12838_v51, %v12832_v35 }
 0x312   :  { %12360 = vst [vmem:[%s15321_s5 + $0x14] sm:$0x7] %v8836_v11  ;;  %v8706_v53 = vcombine.low %v8698_v12, %v8705_v25  ;;  %v8783_v24 = vrot.slane %v8768_v19, %v13011_v21  ;;  %v9313_v32 = vadd.f32 %v9312_v13, %v9153_v26  ;;  %v9324_v52 = vadd.f32 %v12839_v18, %v12833_v29 }
 0x313   :  { %v8737_v44 = vrot.slane %v8730_v63, %v13011_v21  ;;  %v8769_v37 = vcombine.low %v8754_v59, %v8761_v31  ;;  %v12844_v39 = vpop.f32.mrf.mxu1  ;;  %v9316_v14 = vadd.f32 %v9315_v8, %v9156_v40 }
 0x314   :  { %v8830_v17 = vpack.c.bf16 %v8706_v53, %v8706_v53  ;;  %v9641_v42 = vadd.f32 %v12844_v39, %v9321_v38  ;;  %v12850_v33 = vpop.f32.mrf.mxu0 }
 0x315   :  { %v8745_v23 = vcombine.low %v8737_v44, %v8744_v50  ;;  %v8776_v46 = vrot.slane %v8769_v37, %v13011_v21  ;;  %v9624_v58 = vpop.f32.mrf.mxu1 }
 0x316   :  { %v8839_v54 = vsel %vm14996_vm4, %v8830_v17, %v12361_v0  ;;  %v9639_v16 = vadd.f32 %v9624_v58, %v9313_v32  ;;  %v9956_v41 = vadd.f32 %v12850_v33, %v9641_v42  ;;  %v9939_v45 = vpop.f32.mrf.mxu0 }
 0x317   :  { %v8784_v2 = vcombine.low %v8776_v46, %v8783_v24  ;;  %v8831_v57 = vpack.c.bf16 %v8745_v23, %v8745_v23  ;;  %12362 = vst [vmem:[%s15321_s5 + $0x18] sm:$0x7] %v8839_v54  ;;  %v12845_v49 = vpop.f32.mrf.mxu1 }
 0x318   :  { %v9642_v9 = vadd.f32 %v12845_v49, %v9324_v52  ;;  %v10060_v60 = vcombine.high %v9956_v41, %v9956_v41  ;;  %v9954_v56 = vadd.f32 %v9939_v45, %v9639_v16  ;;  %v12851_v7 = vpop.f32.mrf.mxu0  ;;  %v10067_v28 = vrot.slane %v9956_v41, %v13011_v21  ;;  %v12431_v45 = vld [vmem:[%s15321_s5 + $0x38] sm:$0x7] }
 0x319   :  { %v8832_v10 = vpack.c.bf16 %v8784_v2, %v8784_v2  ;;  %v8842_v3 = vsel %vm14996_vm4, %v8831_v57, %v12363_v62  ;;  %v9627_v55 = vpop.f32.mrf.mxu1 }
 0x31a   :  { %12364 = vst [vmem:[%s15321_s5 + $0x1c] sm:$0x7] %v8842_v3  ;;  %v10074_v47 = vrot.slane %v10060_v60, %v13011_v21  ;;  %v9962_v1 = vcombine.high %v9954_v56, %v9954_v56  ;;  %v9969_v43 = vrot.slane %v9954_v56, %v13011_v21  ;;  %v9957_v15 = vadd.f32 %v12851_v7, %v9642_v9  ;;  %v9942_v51 = vpop.f32.mrf.mxu0  ;;  %v12423_v56 = vld [vmem:[%s15321_s5 + $0x28] sm:$0x7] }
 0x31b   :  { %v8845_v30 = vsel %vm14996_vm4, %v8832_v10, %v12365_v27  ;;  %v9640_v36 = vadd.f32 %v9627_v55, %v9316_v14  ;;  %v10075_v59 = vcombine.high %v10067_v28, %v10067_v28  ;;  %v10083_v46 = vrot.slane %v10067_v28, %v13011_v21 }
 0x31c   :  { %12366 = vst [vmem:[%s15321_s5 + $0x20] sm:$0x7] %v8845_v30  ;;  %v10076_v20 = vcombine.high %v10074_v47, %v10074_v47  ;;  %v9976_v34 = vrot.slane %v9962_v1, %v13011_v21  ;;  %v9977_v35 = vcombine.high %v9969_v43, %v9969_v43  ;;  %v10115_v11 = vrot.slane %v9957_v15, %v13011_v21 }
 0x31d   :  { %v10090_v48 = vrot.slane %v10074_v47, %v13011_v21  ;;  %v9985_v4 = vrot.slane %v9969_v43, %v13011_v21  ;;  %v9955_v63 = vadd.f32 %v9942_v51, %v9640_v36  ;;  %v10097_v2 = vrot.slane %v10075_v59, %v13011_v21 }
 0x31e   :  { %v10104_v61 = vrot.slane %v10076_v20, %v13011_v21  ;;  %v9978_v22 = vcombine.high %v9976_v34, %v9976_v34  ;;  %v9992_v5 = vrot.slane %v9976_v34, %v13011_v21  ;;  %v9999_v12 = vrot.slane %v9977_v35, %v13011_v21 }
 0x31f   :  { %v10122_v25 = vrot.slane %v10115_v11, %v13011_v21  ;;  %v10011_v54 = vcombine.high %v9955_v63, %v9955_v63  ;;  %v10018_v18 = vrot.slane %v9955_v63, %v13011_v21  ;;  %v10105_v42 = vcombine.high %v10083_v46, %v10083_v46 }
 0x320   :  { %v10279_v31 = vcombine.low %v10090_v48, %v10104_v61  ;;  %v12422_v19 = vcombine.high %v10090_v48, %v10104_v61  ;;  %v10006_v26 = vrot.slane %v9978_v22, %v13011_v21  ;;  %v10123_v53 = vcombine.low %v9985_v4, %v9999_v12 }
 0x321   :  { %v12420_v44 = vcombine.high %v9985_v4, %v9999_v12  ;;  %v10008_v0 = vcombine.high %v9992_v5, %v9992_v5  ;;  %v10145_v24 = vrot.slane %v9992_v5, %v13011_v21  ;;  %v10301_v23 = vrot.slane %v10122_v25, %v13011_v21  ;;  %v12856_v4 = vpop.f32.mrf.mxu1 }
 0x322   :  { %v10287_v50 = vrot.slane %v10279_v31, %v13011_v21  ;;  %v10294_v37 = vrot.slane %v12422_v19, %v13011_v21  ;;  %v10131_v17 = vrot.slane %v10123_v53, %v13011_v21  ;;  %v15162_v62 = vpop.f32.mrf.mxu0  ;;  %v10010_v27 = vcombine.high %v10006_v26, %v10006_v26 }
 0x323   :  { %v10138_v13 = vrot.slane %v12420_v44, %v13011_v21  ;;  %v10162_v10 = vcombine.low %v10006_v26, %v10008_v0  ;;  %v10316_v40 = vrot.slane %v10301_v23, %v13011_v21  ;;  %v10025_v30 = vrot.slane %v10011_v54, %v13011_v21  ;;  %v10797_v19 = vpop.f32.mrf.mxu1 }
 0x324   :  { %v10302_v29 = vcombine.low %v10287_v50, %v10294_v37  ;;  %v10160_v8 = vrot.slane %v10145_v24, %v13011_v21  ;;  %v10026_v39 = vcombine.high %v10018_v18, %v10018_v18  ;;  %v10034_v32 = vrot.slane %v10018_v18, %v13011_v21  ;;  %v10956_v16 = vpop.f32.mrf.mxu0  ;;  %v12425_v24 = vld [vmem:[%s15321_s5 + $0x2c] sm:$0x7] }
 0x325   :  { %v10146_v57 = vcombine.low %v10131_v17, %v10138_v13  ;;  %v10027_v52 = vcombine.high %v10025_v30, %v10025_v30  ;;  %v10041_v33 = vrot.slane %v10025_v30, %v13011_v21  ;;  %v10107_v41 = vcombine.high %v10097_v2, %v10097_v2  ;;  %v12857_v37 = vpop.f32.mrf.mxu1 }
 0x326   :  { %v10309_v3 = vrot.slane %v10302_v29, %v13011_v21  ;;  %v10048_v9 = vrot.slane %v10026_v39, %v13011_v21  ;;  %v10163_v60 = vcombine.low %v10010_v27, %v10034_v32  ;;  %v10170_v1 = vrot.slane %v10162_v10, %v13011_v21  ;;  %v12863_v11 = vpop.f32.mrf.mxu0  ;;  %v12427_v10 = vld [vmem:[%s15321_s5 + $0x30] sm:$0x7] }
 0x327   :  { %v10153_v38 = vrot.slane %v10146_v57, %v13011_v21  ;;  %v10055_v14 = vrot.slane %v10027_v52, %v13011_v21  ;;  %v10057_v47 = vcombine.high %v10041_v33, %v10041_v33  ;;  %v10241_v36 = vcombine.low %v10097_v2, %v10105_v42 }
 0x328   :  { %v10317_v58 = vcombine.low %v10309_v3, %v10316_v40  ;;  %v10177_v43 = vrot.slane %v10163_v60, %v13011_v21  ;;  %v10184_v15 = vrot.slane %v10048_v9, %v13011_v21  ;;  %v12421_v20 = vcombine.high %v10034_v32, %v10048_v9  ;;  %v10959_v44 = vpop.f32.mrf.mxu0 }
 0x329   :  { %v10161_v49 = vcombine.low %v10153_v38, %v10160_v8  ;;  %v10059_v34 = vcombine.high %v10055_v14, %v10055_v14  ;;  %v10202_v35 = vcombine.low %v10041_v33, %v10055_v14  ;;  %v10223_v12 = vrot.slane %v10057_v47, %v13011_v21 }
 0x32a   :  { %v10327_v55 = vpack.c.bf16 %v10317_v58, %v10317_v58  ;;  %v10185_v61 = vcombine.low %v10170_v1, %v10177_v43  ;;  %v10209_v22 = vrot.slane %v12421_v20, %v13011_v21  ;;  %v10199_v31 = vrot.slane %v10184_v15, %v13011_v21 }
 0x32b   :  { %v10323_v7 = vpack.c.bf16 %v10161_v49, %v10161_v49  ;;  %v10216_v5 = vrot.slane %v10202_v35, %v13011_v21  ;;  %v10240_v25 = vcombine.low %v10059_v34, %v10083_v46  ;;  %v10255_v63 = vrot.slane %v10241_v36, %v13011_v21  ;;  %v10800_v46 = vpop.f32.mrf.mxu1 }
 0x32c   :  { %v10342_v28 = vsel %vm14996_vm4, %v10327_v55, %v12431_v45  ;;  %v10192_v51 = vrot.slane %v10185_v61, %v13011_v21  ;;  %v10262_v59 = vrot.slane %v10107_v41, %v13011_v21  ;;  %v10238_v17 = vrot.slane %v10223_v12, %v13011_v21 }
 0x32d   :  { %v10330_v48 = vsel %vm14996_vm4, %v10323_v7, %v12423_v56  ;;  %12432 = vst [vmem:[%s15321_s5 + $0x38] sm:$0x7] %v10342_v28  ;;  %v10224_v26 = vcombine.low %v10209_v22, %v10216_v5  ;;  %v10248_v53 = vrot.slane %v10240_v25, %v13011_v21  ;;  %v10965_v57 = vadd.f32 %v15162_v62, %v12856_v4  ;;  %v12874_v27 = vpop.f32.mrf.mxu0  ;;  %v12868_v3 = vpop.f32.mrf.mxu1  ;;  %v12429_v62 = vld [vmem:[%s15321_s5 + $0x34] sm:$0x7] }
 0x32e   :  { %12424 = vst [vmem:[%s15321_s5 + $0x28] sm:$0x7] %v10330_v48  ;;  %v10200_v50 = vcombine.low %v10192_v51, %v10199_v31  ;;  %v10277_v29 = vrot.slane %v10262_v59, %v13011_v21  ;;  %v10957_v38 = vadd.f32 %v10956_v16, %v10797_v19  ;;  %v10968_v41 = vadd.f32 %v12863_v11, %v12857_v37 }
 0x32f   :  { %v10231_v0 = vrot.slane %v10224_v26, %v13011_v21  ;;  %v10263_v13 = vcombine.low %v10248_v53, %v10255_v63  ;;  %v11284_v8 = vadd.f32 %v12868_v3, %v10965_v57  ;;  %v11267_v39 = vpop.f32.mrf.mxu1  ;;  %v11587_v52 = vpop.f32.mrf.mxu0  ;;  %v10960_v55 = vadd.f32 %v10959_v44, %v10800_v46 }
 0x330   :  { %v10324_v23 = vpack.c.bf16 %v10200_v50, %v10200_v50  ;;  %v11282_v33 = vadd.f32 %v11267_v39, %v10957_v38 }
 0x331   :  { %v10239_v54 = vcombine.low %v10231_v0, %v10238_v17  ;;  %v10270_v2 = vrot.slane %v10263_v13, %v13011_v21  ;;  %v11604_v58 = vadd.f32 %v12874_v27, %v11284_v8  ;;  %v12869_v49 = vpop.f32.mrf.mxu1  ;;  %v12875_v1 = vpop.f32.mrf.mxu0 }
 0x332   :  { %v10333_v18 = vsel %vm14996_vm4, %v10324_v23, %v12425_v24  ;;  %v11602_v9 = vadd.f32 %v11587_v52, %v11282_v33  ;;  %v11285_v60 = vadd.f32 %v12869_v49, %v10968_v41  ;;  %v12500_v41 = vld [vmem:[%s15321_s5 + $0x4c] sm:$0x7] }
 0x333   :  { %v10278_v40 = vcombine.low %v10270_v2, %v10277_v29  ;;  %v10325_v30 = vpack.c.bf16 %v10239_v54, %v10239_v54  ;;  %12426 = vst [vmem:[%s15321_s5 + $0x2c] sm:$0x7] %v10333_v18  ;;  %v11708_v45 = vcombine.high %v11604_v58, %v11604_v58  ;;  %v11270_v56 = vpop.f32.mrf.mxu1  ;;  %v11715_v36 = vrot.slane %v11604_v58, %v13011_v21  ;;  %v11590_v25 = vpop.f32.mrf.mxu0 }
 0x334   :  { %v11610_v47 = vcombine.high %v11602_v9, %v11602_v9  ;;  %v11617_v7 = vrot.slane %v11602_v9, %v13011_v21  ;;  %v11605_v43 = vadd.f32 %v12875_v1, %v11285_v60  ;;  %v11283_v20 = vadd.f32 %v11270_v56, %v10960_v55 }
 0x335   :  { %v10326_v32 = vpack.c.bf16 %v10278_v40, %v10278_v40  ;;  %v10336_v42 = vsel %vm14996_vm4, %v10325_v30, %v12427_v10  ;;  %v11722_v14 = vrot.slane %v11708_v45, %v13011_v21  ;;  %v11723_v63 = vcombine.high %v11715_v36, %v11715_v36  ;;  %v12492_v45 = vld [vmem:[%s15321_s5 + $0x3c] sm:$0x7] }
 0x336   :  { %12428 = vst [vmem:[%s15321_s5 + $0x30] sm:$0x7] %v10336_v42  ;;  %v11624_v28 = vrot.slane %v11610_v47, %v13011_v21  ;;  %v11625_v34 = vcombine.high %v11617_v7, %v11617_v7  ;;  %v11763_v35 = vrot.slane %v11605_v43, %v13011_v21  ;;  %v11633_v61 = vrot.slane %v11617_v7, %v13011_v21 }
 0x337   :  { %v10339_v16 = vsel %vm14996_vm4, %v10326_v32, %v12429_v62  ;;  %v11724_v15 = vcombine.high %v11722_v14, %v11722_v14  ;;  %v11738_v11 = vrot.slane %v11722_v14, %v13011_v21  ;;  %v11603_v19 = vadd.f32 %v11590_v25, %v11283_v20 }
 0x338   :  { %12430 = vst [vmem:[%s15321_s5 + $0x34] sm:$0x7] %v10339_v16  ;;  %v11626_v4 = vcombine.high %v11624_v28, %v11624_v28  ;;  %v11640_v22 = vrot.slane %v11624_v28, %v13011_v21  ;;  %v11647_v5 = vrot.slane %v11625_v34, %v13011_v21  ;;  %v11770_v12 = vrot.slane %v11763_v35, %v13011_v21 }
 0x339   :  { %v11752_v48 = vrot.slane %v11724_v15, %v13011_v21  ;;  %v11731_v23 = vrot.slane %v11715_v36, %v13011_v21  ;;  %v11659_v29 = vcombine.high %v11603_v19, %v11603_v19  ;;  %v11745_v54 = vrot.slane %v11723_v63, %v13011_v21 }
 0x33a   :  { %v11654_v59 = vrot.slane %v11626_v4, %v13011_v21  ;;  %v11771_v26 = vcombine.low %v11633_v61, %v11647_v5  ;;  %v12489_v53 = vcombine.high %v11633_v61, %v11647_v5  ;;  %v11656_v37 = vcombine.high %v11640_v22, %v11640_v22 }
 0x33b   :  { %v11927_v51 = vcombine.low %v11738_v11, %v11752_v48  ;;  %v12491_v31 = vcombine.high %v11738_v11, %v11752_v48  ;;  %v11793_v13 = vrot.slane %v11640_v22, %v13011_v21  ;;  %v11949_v24 = vrot.slane %v11770_v12, %v13011_v21 }
 0x33c   :  { %v11779_v0 = vrot.slane %v11771_v26, %v13011_v21  ;;  %v11786_v17 = vrot.slane %v12489_v53, %v13011_v21  ;;  %v11658_v57 = vcombine.high %v11654_v59, %v11654_v59  ;;  %v11666_v27 = vrot.slane %v11603_v19, %v13011_v21  ;;  %v12494_v26 = vld [vmem:[%s15321_s5 + $0x40] sm:$0x7] }
 0x33d   :  { %v11935_v44 = vrot.slane %v11927_v51, %v13011_v21  ;;  %v11942_v50 = vrot.slane %v12491_v31, %v13011_v21  ;;  %v11810_v18 = vcombine.low %v11654_v59, %v11656_v37  ;;  %v11964_v3 = vrot.slane %v11949_v24, %v13011_v21 }
 0x33e   :  { %v11794_v2 = vcombine.low %v11779_v0, %v11786_v17  ;;  %v11673_v40 = vrot.slane %v11659_v29, %v13011_v21  ;;  %v11808_v38 = vrot.slane %v11793_v13, %v13011_v21  ;;  %v11674_v8 = vcombine.high %v11666_v27, %v11666_v27  ;;  %v12496_v17 = vld [vmem:[%s15321_s5 + $0x44] sm:$0x7] }
 0x33f   :  { %v11950_v46 = vcombine.low %v11935_v44, %v11942_v50  ;;  %v11682_v62 = vrot.slane %v11666_v27, %v13011_v21  ;;  %v11753_v39 = vcombine.high %v11731_v23, %v11731_v23  ;;  %v11755_v52 = vcombine.high %v11745_v54, %v11745_v54 }
 0x340   :  { %v11801_v30 = vrot.slane %v11794_v2, %v13011_v21  ;;  %v11675_v42 = vcombine.high %v11673_v40, %v11673_v40  ;;  %v11689_v58 = vrot.slane %v11673_v40, %v13011_v21  ;;  %v11696_v49 = vrot.slane %v11674_v8, %v13011_v21 }
 0x341   :  { %v11957_v10 = vrot.slane %v11950_v46, %v13011_v21  ;;  %v11811_v16 = vcombine.low %v11658_v57, %v11682_v62  ;;  %v11818_v55 = vrot.slane %v11810_v18, %v13011_v21  ;;  %v11889_v43 = vcombine.low %v11745_v54, %v11753_v39 }
 0x342   :  { %v11809_v33 = vcombine.low %v11801_v30, %v11808_v38  ;;  %v11703_v60 = vrot.slane %v11675_v42, %v13011_v21  ;;  %v11705_v56 = vcombine.high %v11689_v58, %v11689_v58  ;;  %v11832_v1 = vrot.slane %v11696_v49, %v13011_v21 }
 0x343   :  { %v11965_v32 = vcombine.low %v11957_v10, %v11964_v3  ;;  %v11825_v47 = vrot.slane %v11811_v16, %v13011_v21  ;;  %v12490_v7 = vcombine.high %v11682_v62, %v11696_v49  ;;  %v11903_v5 = vrot.slane %v11889_v43, %v13011_v21 }
 0x344   :  { %v11971_v14 = vpack.c.bf16 %v11809_v33, %v11809_v33  ;;  %v11707_v20 = vcombine.high %v11703_v60, %v11703_v60  ;;  %v11850_v36 = vcombine.low %v11689_v58, %v11703_v60  ;;  %v11871_v48 = vrot.slane %v11705_v56, %v13011_v21 }
 0x345   :  { %v11975_v9 = vpack.c.bf16 %v11965_v32, %v11965_v32  ;;  %v11833_v34 = vcombine.low %v11818_v55, %v11825_v47  ;;  %v11857_v35 = vrot.slane %v12490_v7, %v13011_v21  ;;  %v11847_v22 = vrot.slane %v11832_v1, %v13011_v21 }
 0x346   :  { %v11978_v28 = vsel %vm14996_vm4, %v11971_v14, %v12492_v45  ;;  %v11864_v11 = vrot.slane %v11850_v36, %v13011_v21  ;;  %v11888_v61 = vcombine.low %v11707_v20, %v11731_v23  ;;  %v11910_v12 = vrot.slane %v11755_v52, %v13011_v21  ;;  %v12498_v23 = vld [vmem:[%s15321_s5 + $0x48] sm:$0x7] }
 0x347   :  { %v11990_v15 = vsel %vm14996_vm4, %v11975_v9, %v12500_v41  ;;  %12493 = vst [vmem:[%s15321_s5 + $0x3c] sm:$0x7] %v11978_v28  ;;  %v11840_v4 = vrot.slane %v11833_v34, %v13011_v21  ;;  %v11886_v63 = vrot.slane %v11871_v48, %v13011_v21 }
 0x348   :  { %12501 = vst [vmem:[%s15321_s5 + $0x4c] sm:$0x7] %v11990_v15  ;;  %v11872_v25 = vcombine.low %v11857_v35, %v11864_v11  ;;  %v11896_v51 = vrot.slane %v11888_v61, %v13011_v21  ;;  %v11925_v44 = vrot.slane %v11910_v12, %v13011_v21 }
 0x349   :  { %v11848_v31 = vcombine.low %v11840_v4, %v11847_v22 }
 0x34a   :  { %v11879_v19 = vrot.slane %v11872_v25, %v13011_v21  ;;  %v11911_v59 = vcombine.low %v11896_v51, %v11903_v5 }
 0x34b   :  { %v11972_v53 = vpack.c.bf16 %v11848_v31, %v11848_v31 }
 0x34c   :  { %v11887_v50 = vcombine.low %v11879_v19, %v11886_v63  ;;  %v11918_v37 = vrot.slane %v11911_v59, %v13011_v21 }
 0x34d   :  { %v11981_v0 = vsel %vm14996_vm4, %v11972_v53, %v12494_v26 }
 0x34e   :  { %v11926_v13 = vcombine.low %v11918_v37, %v11925_v44  ;;  %v11973_v24 = vpack.c.bf16 %v11887_v50, %v11887_v50  ;;  %12495 = vst [vmem:[%s15321_s5 + $0x40] sm:$0x7] %v11981_v0 }
 0x350   :  { %v11974_v46 = vpack.c.bf16 %v11926_v13, %v11926_v13  ;;  %v11984_v21 = vsel %vm14996_vm4, %v11973_v24, %v12496_v17 }
 0x351   :  { %12497 = vst [vmem:[%s15321_s5 + $0x44] sm:$0x7] %v11984_v21 }
 0x352   :  { %v11987_v29 = vsel %vm14996_vm4, %v11974_v46, %v12498_v23 }
 0x353   :  { %12499 = vst [vmem:[%s15321_s5 + $0x48] sm:$0x7] %v11987_v29 }

</bundles_post_ra>
